<compile_context>
chip_gen: v7x
topology: tpu7x:2x2x1
jax: 0.10.0
libtpu: 0.0.40
codegen_flags: <defaults>
</compile_context>

<pallas_src>
import jax
import jax.numpy as jnp
from jax.experimental import pallas as pl
from jax.experimental.pallas import tpu as pltpu


def _round_up(x, m):
    return ((x + m - 1) // m) * m


def _pad_gate_cols(w, H, Hp):
    """Re-pack a (..., 4*H) [i,f,o,g] gate axis into (..., 4*Hp), each gate
    lane-padded to the 128-aligned Hp boundary (pad columns are zero)."""
    lead = w.shape[:-1]
    w4 = w.reshape(*lead, 4, H)
    pad = [(0, 0)] * (w4.ndim - 1) + [(0, Hp - H)]
    return jnp.pad(w4, pad).reshape(*lead, 4 * Hp)


# ----------------------------------------------------------------------------
# Encoder kernel: whole src loop in ONE invocation (no grid).
# ----------------------------------------------------------------------------
def _encoder_kernel(xw_ref, whh_ref, h_ref, c_ref):
    S, B, Gp = xw_ref.shape
    Hp = h_ref.shape[1]
    whh = whh_ref[...]                               # (Hp, Gp) bf16, resident

    def step(t, carry):
        h, c = carry
        gates = xw_ref[t] + jnp.dot(h.astype(jnp.bfloat16), whh,
                                    preferred_element_type=jnp.float32)
        i_g = jax.nn.sigmoid(gates[:, 0:Hp])         # lane-aligned slices
        f_g = jax.nn.sigmoid(gates[:, Hp:2 * Hp])
        o_g = jax.nn.sigmoid(gates[:, 2 * Hp:3 * Hp])
        g_g = jnp.tanh(gates[:, 3 * Hp:4 * Hp])
        c_new = f_g * c + i_g * g_g
        h_new = o_g * jnp.tanh(c_new)
        return h_new, c_new

    h0 = jnp.zeros((B, Hp), jnp.float32)
    c0 = jnp.zeros((B, Hp), jnp.float32)
    h, c = jax.lax.fori_loop(0, S, step, (h0, c0), unroll=True)
    h_ref[...] = h
    c_ref[...] = c


def run_encoder(xw, whh_bf16):
    S, B, Gp = xw.shape
    Hp = whh_bf16.shape[0]
    return pl.pallas_call(
        _encoder_kernel,
        out_shape=(jax.ShapeDtypeStruct((B, Hp), jnp.float32),
                   jax.ShapeDtypeStruct((B, Hp), jnp.float32)),
        in_specs=[pl.BlockSpec(memory_space=pltpu.MemorySpace.VMEM),  # x@W_ih+b slab
                  pl.BlockSpec(memory_space=pltpu.MemorySpace.VMEM)], # W_hh (bf16)
        out_specs=(pl.BlockSpec(memory_space=pltpu.MemorySpace.VMEM),
                   pl.BlockSpec(memory_space=pltpu.MemorySpace.VMEM)),
        compiler_params=pltpu.CompilerParams(vmem_limit_bytes=32 * 1024 * 1024),
    )(xw, whh_bf16)


# ----------------------------------------------------------------------------
# Decoder kernel: whole trg loop in ONE invocation
# (LSTM cell + fc projection + greedy argmax + teacher-forcing select).
# ----------------------------------------------------------------------------
def _decoder_kernel(force_ref,            # (steps,) int32 in SMEM
                    teach_ref, h0_ref, c0_ref, embwih_ref,
                    whh_ref, fcw_ref, fcb_ref,
                    out_ref):
    steps, B, Gp = teach_ref.shape
    Hp = h0_ref.shape[1]
    Vp = fcw_ref.shape[1]

    # Hoisted loop invariants (JAX does not CSE broadcasts inside the loop).
    lane = jax.lax.broadcasted_iota(jnp.int32, (B, Vp), 1)
    whh = whh_ref[...]                    # (Hp, Gp) bf16
    fcw = fcw_ref[...]                    # (Hp, Vp) bf16
    fcb = fcb_ref[...]                    # (1, Vp)  f32 (-1e30 in pad lanes)
    embwih = embwih_ref[...]              # (Vp, Gp) bf16 (bias folded in)

    def step(t, carry):
        h, c, pred_xw = carry
        # Teacher-forcing select (force_ref[0] is always 1 -> first input trg[0]).
        force = jnp.full((B, Gp), force_ref[t]) != 0
        x_gates = jnp.where(force, teach_ref[t], pred_xw)      # (B, Gp)

        gates = x_gates + jnp.dot(h.astype(jnp.bfloat16), whh,
                                  preferred_element_type=jnp.float32)
        i_g = jax.nn.sigmoid(gates[:, 0:Hp])
        f_g = jax.nn.sigmoid(gates[:, Hp:2 * Hp])
        o_g = jax.nn.sigmoid(gates[:, 2 * Hp:3 * Hp])
        g_g = jnp.tanh(gates[:, 3 * Hp:4 * Hp])
        c_new = f_g * c + i_g * g_g
        h_new = o_g * jnp.tanh(c_new)

        # Lane-padded output projection (pad lanes get -1e30 -> never argmax).
        logits = jnp.dot(h_new.astype(jnp.bfloat16), fcw,
                         preferred_element_type=jnp.float32) + fcb   # (B, Vp)
        out_ref[t] = logits

        # Greedy feedback: first-occurrence argmax -> one-hot -> pre-projected
        # gate contribution pred_oh @ (emb @ W_ih + b), carried to next step.
        # TODO(synk): replace the one-hot matmul with a DMA row gather when the
        # vocab is too large for the (Vp, Gp) block to stay VMEM-resident.
        m = jnp.max(logits, axis=1, keepdims=True)
        cand = jnp.where(logits == m, lane, Vp)
        first = jnp.min(cand, axis=1, keepdims=True)
        pred_oh = (lane == first).astype(jnp.bfloat16)               # (B, Vp)
        pred_xw_new = jnp.dot(pred_oh, embwih,
                              preferred_element_type=jnp.float32)    # (B, Gp)
        return h_new, c_new, pred_xw_new

    init = (h0_ref[...], c0_ref[...], jnp.zeros((B, Gp), jnp.float32))
    jax.lax.fori_loop(0, steps, step, init, unroll=True)


def run_decoder(force_mask, teach_xw, h0, c0, embwih_bf16, whh_bf16,
                fcw_bf16, fcb):
    steps, B, Gp = teach_xw.shape
    Vp = fcw_bf16.shape[1]
    vmem = pl.BlockSpec(memory_space=pltpu.MemorySpace.VMEM)
    return pl.pallas_call(
        _decoder_kernel,
        out_shape=jax.ShapeDtypeStruct((steps, B, Vp), jnp.float32),
        in_specs=[pl.BlockSpec(memory_space=pltpu.MemorySpace.SMEM),  # force mask
                  vmem,   # teacher x@W_ih + b slab
                  vmem,   # h0
                  vmem,   # c0
                  vmem,   # emb @ W_ih + b (padded, bf16)
                  vmem,   # W_hh (bf16)
                  vmem,   # fc_w (padded, bf16)
                  vmem],  # fc_b (padded, f32)
        out_specs=vmem,
        compiler_params=pltpu.CompilerParams(vmem_limit_bytes=32 * 1024 * 1024),
    )(force_mask, teach_xw, h0, c0, embwih_bf16, whh_bf16, fcw_bf16, fcb)


# ----------------------------------------------------------------------------
# Seq2Seq forward (mirrors the PyTorch module)
# ----------------------------------------------------------------------------
def _forward(params, src_tokens, trg_tokens, force_mask):
    B = src_tokens.shape[1]
    H = params["enc_whh"].shape[0]
    V = params["fc_w"].shape[1]
    Hp = _round_up(H, 128)      # lane-aligned hidden dim (gate slices hit vreg bounds)
    Vp = _round_up(V, 128)      # lane-dense logits

    # ---- Encoder: gate-pad weights; hoist embedding gather + x@W_ih + bias.
    enc_wih_p = _pad_gate_cols(params["enc_wih"], H, Hp)                 # (E, Gp)
    enc_whh_p = jnp.pad(_pad_gate_cols(params["enc_whh"], H, Hp),
                        ((0, Hp - H), (0, 0)))                           # (Hp, Gp)
    enc_b_p = _pad_gate_cols(params["enc_b"], H, Hp)                     # (1, Gp)

    emb_src = jnp.take(params["enc_emb"], src_tokens, axis=0)            # (S, B, E)
    enc_xw = jnp.einsum("sbe,eg->sbg", emb_src, enc_wih_p) + enc_b_p     # (S, B, Gp)

    h0, c0 = run_encoder(enc_xw, enc_whh_p.astype(jnp.bfloat16))

    # ---- Decoder precompute (teacher path + greedy-feedback path, bias folded).
    dec_wih_p = _pad_gate_cols(params["dec_wih"], H, Hp)
    dec_whh_p = jnp.pad(_pad_gate_cols(params["dec_whh"], H, Hp),
                        ((0, Hp - H), (0, 0)))
    dec_b_p = _pad_gate_cols(params["dec_b"], H, Hp)

    steps = trg_tokens.shape[0] - 1
    teach_emb = jnp.take(params["dec_emb"], trg_tokens[:steps], axis=0)  # (steps, B, E)
    teach_xw = jnp.einsum("sbe,eg->sbg", teach_emb, dec_wih_p) + dec_b_p # (steps, B, Gp)

    emb_wih = jnp.dot(params["dec_emb"], dec_wih_p) + dec_b_p            # (V, Gp)
    emb_wih_p = jnp.pad(emb_wih, ((0, Vp - V), (0, 0)))                  # (Vp, Gp)

    fc_w_p = jnp.pad(params["fc_w"], ((0, Hp - H), (0, Vp - V)))         # (Hp, Vp)
    fc_b_p = jnp.full((1, Vp), -1e30, jnp.float32).at[:, :V].set(params["fc_b"])

    logits_p = run_decoder(force_mask, teach_xw, h0, c0,
                           emb_wih_p.astype(jnp.bfloat16),
                           dec_whh_p.astype(jnp.bfloat16),
                           fc_w_p.astype(jnp.bfloat16),
                           fc_b_p)
    logits = logits_p[:, :, :V]                                          # drop lane padding
    outputs = jnp.concatenate(
        [jnp.zeros((1, B, V), jnp.float32), logits], axis=0)             # row 0 stays zero
    return outputs


_forward_jit = jax.jit(_forward)


def seq2seq_forward(params, src_tokens, trg_tokens,
                    force_teaching_ratio=0.5, rng_key=None):
    """src_tokens: (src_len, B) int32; trg_tokens: (trg_len, B) int32.
    Returns (trg_len, B, output_dim) float32."""
    if rng_key is None:
        rng_key = jax.random.PRNGKey(0)
    steps = trg_tokens.shape[0] - 1
    # TODO(synk): PyTorch draws random.random() per step at runtime; here the
    # teacher-forcing coin flips are a precomputed Bernoulli mask (behaviorally
    # equivalent in distribution, enables the fully fused on-chip decoder loop).
    flips = jax.random.bernoulli(rng_key, force_teaching_ratio, (steps,))
    force_mask = flips.astype(jnp.int32).at[0].set(1)   # step 0 always uses trg[0]
    return _forward_jit(params, src_tokens, trg_tokens, force_mask)


# ----------------------------------------------------------------------------
# Deterministic parameter init (shapes implied by the PyTorch module).
# Weights are (in_features, out_features); gate order in the 4H axis is
# [i, f, o, g]; bias represents b_ih + b_hh.
# ----------------------------------------------------------------------------
def init_params(key, input_vocab, output_vocab, emb_dim, hidden_dim):
    ks = jax.random.split(key, 10)
    s = 0.1
    G = 4 * hidden_dim
    return {
        # encoder
        "enc_emb": s * jax.random.normal(ks[0], (input_vocab, emb_dim), jnp.float32),
        "enc_wih": s * jax.random.normal(ks[1], (emb_dim, G), jnp.float32),
        "enc_whh": s * jax.random.normal(ks[2], (hidden_dim, G), jnp.float32),
        "enc_b":   s * jax.random.normal(ks[3], (1, G), jnp.float32),
        # decoder
        "dec_emb": s * jax.random.normal(ks[4], (output_vocab, emb_dim), jnp.float32),
        "dec_wih": s * jax.random.normal(ks[5], (emb_dim, G), jnp.float32),
        "dec_whh": s * jax.random.normal(ks[6], (hidden_dim, G), jnp.float32),
        "dec_b":   s * jax.random.normal(ks[7], (1, G), jnp.float32),
        # decoder output projection (decoder.output_dim == output_vocab)
        "fc_w":    s * jax.random.normal(ks[8], (hidden_dim, output_vocab), jnp.float32),
        "fc_b":    s * jax.random.normal(ks[9], (1, output_vocab), jnp.float32),
    }


if __name__ == "__main__":
    INPUT_VOCAB = 20
    OUTPUT_VOCAB = 32      # decoder.output_dim
    EMB_DIM = 16
    HIDDEN_DIM = 32
    BATCH = 8
    SRC_LEN = 6
    TRG_LEN = 8

    key = jax.random.PRNGKey(0)
    k_par, k_src, k_trg, k_tf = jax.random.split(key, 4)

    params = init_params(k_par, INPUT_VOCAB, OUTPUT_VOCAB, EMB_DIM, HIDDEN_DIM)

    src = jax.random.randint(k_src, (SRC_LEN, BATCH), 0, INPUT_VOCAB, dtype=jnp.int32)
    trg = jax.random.randint(k_trg, (TRG_LEN, BATCH), 0, OUTPUT_VOCAB, dtype=jnp.int32)

    outputs = seq2seq_forward(params, src, trg, force_teaching_ratio=0.5, rng_key=k_tf)
    outputs = jax.block_until_ready(outputs)

    assert outputs.shape == (TRG_LEN, BATCH, OUTPUT_VOCAB)
    assert outputs.dtype == jnp.float32
    assert bool(jnp.all(outputs[0] == 0.0))          # row 0 stays zero (as in PyTorch)
    assert bool(jnp.all(jnp.isfinite(outputs)))
    print("KERNEL_OK")
</pallas_src>

<mosaic_0001>
module attributes {stable_mosaic.version = 11 : i64} {
  func.func @_decoder_kernel(%arg0: memref<7xi32, #tpu.memory_space<smem>>, %arg1: memref<7x8x512xf32, #tpu.memory_space<vmem>>, %arg2: memref<8x128xf32, #tpu.memory_space<vmem>>, %arg3: memref<8x128xf32, #tpu.memory_space<vmem>>, %arg4: memref<128x512xbf16, #tpu.memory_space<vmem>>, %arg5: memref<128x512xbf16, #tpu.memory_space<vmem>>, %arg6: memref<128x128xbf16, #tpu.memory_space<vmem>>, %arg7: memref<1x128xf32, #tpu.memory_space<vmem>>, %arg8: memref<7x8x128xf32, #tpu.memory_space<vmem>>) attributes {dimension_semantics = [], scalar_prefetch = 0 : i64, scratch_operands = 0 : i64, tpu.core_type = #tpu.core_type<tc>} {
    %0 = tpu.iota {dimensions = array<i32: 1>} : vector<8x128xi32>
    %c0 = arith.constant 0 : index
    %c0_0 = arith.constant 0 : index
    %1 = vector.load %arg5[%c0, %c0_0] : memref<128x512xbf16, #tpu.memory_space<vmem>>, vector<128x512xbf16>
    %c0_1 = arith.constant 0 : index
    %c0_2 = arith.constant 0 : index
    %2 = vector.load %arg6[%c0_1, %c0_2] : memref<128x128xbf16, #tpu.memory_space<vmem>>, vector<128x128xbf16>
    %c0_3 = arith.constant 0 : index
    %c0_4 = arith.constant 0 : index
    %3 = vector.load %arg7[%c0_3, %c0_4] : memref<1x128xf32, #tpu.memory_space<vmem>>, vector<1x128xf32>
    %c0_5 = arith.constant 0 : index
    %c0_6 = arith.constant 0 : index
    %4 = vector.load %arg4[%c0_5, %c0_6] : memref<128x512xbf16, #tpu.memory_space<vmem>>, vector<128x512xbf16>
    %c0_7 = arith.constant 0 : index
    %c0_8 = arith.constant 0 : index
    %5 = vector.load %arg2[%c0_7, %c0_8] : memref<8x128xf32, #tpu.memory_space<vmem>>, vector<8x128xf32>
    %c0_9 = arith.constant 0 : index
    %c0_10 = arith.constant 0 : index
    %6 = vector.load %arg3[%c0_9, %c0_10] : memref<8x128xf32, #tpu.memory_space<vmem>>, vector<8x128xf32>
    %cst = arith.constant 0.000000e+00 : f32
    %7 = vector.broadcast %cst : f32 to vector<8x512xf32>
    %c0_i32 = arith.constant 0 : i32
    %8 = arith.index_cast %c0_i32 : i32 to index
    %9 = memref.load %arg0[%8] : memref<7xi32, #tpu.memory_space<smem>>
    %10 = vector.broadcast %9 : i32 to vector<8x512xi32>
    %c0_i32_11 = arith.constant 0 : i32
    %11 = vector.broadcast %c0_i32_11 : i32 to vector<8x512xi32>
    %12 = arith.cmpi ne, %10, %11 : vector<8x512xi32>
    %13 = arith.index_cast %c0_i32 : i32 to index
    %c0_12 = arith.constant 0 : index
    %c0_13 = arith.constant 0 : index
    %14 = vector.load %arg1[%13, %c0_12, %c0_13] : memref<7x8x512xf32, #tpu.memory_space<vmem>>, vector<1x8x512xf32>
    %15 = vector.shape_cast %14 : vector<1x8x512xf32> to vector<8x512xf32>
    %16 = arith.select %12, %15, %7 : vector<8x512xi1>, vector<8x512xf32>
    %17 = arith.truncf %5 : vector<8x128xf32> to vector<8x128xbf16>
    %cst_14 = arith.constant dense<0.000000e+00> : vector<8x512xf32>
    %18 = tpu.matmul %17, %1, %cst_14 {dimension_numbers = #tpu.dot_dimension_numbers<[1], [0], [0], [1], [0, 0, 1, 1], [], []>} : vector<8x128xbf16>, vector<128x512xbf16>, vector<8x512xf32> -> vector<8x512xf32>
    %19 = arith.addf %16, %18 : vector<8x512xf32>
    %20 = vector.extract_strided_slice %19 {offsets = [0, 0], sizes = [8, 128], strides = [1, 1]} : vector<8x512xf32> to vector<8x128xf32>
    %21 = arith.negf %20 : vector<8x128xf32>
    %22 = math.exp %21 : vector<8x128xf32>
    %cst_15 = arith.constant 1.000000e+00 : f32
    %23 = vector.broadcast %cst_15 : f32 to vector<8x128xf32>
    %24 = arith.addf %23, %22 : vector<8x128xf32>
    %25 = arith.divf %23, %24 : vector<8x128xf32>
    %26 = vector.extract_strided_slice %19 {offsets = [0, 128], sizes = [8, 128], strides = [1, 1]} : vector<8x512xf32> to vector<8x128xf32>
    %27 = arith.negf %26 : vector<8x128xf32>
    %28 = math.exp %27 : vector<8x128xf32>
    %cst_16 = arith.constant 1.000000e+00 : f32
    %29 = vector.broadcast %cst_16 : f32 to vector<8x128xf32>
    %30 = arith.addf %29, %28 : vector<8x128xf32>
    %31 = arith.divf %29, %30 : vector<8x128xf32>
    %32 = vector.extract_strided_slice %19 {offsets = [0, 256], sizes = [8, 128], strides = [1, 1]} : vector<8x512xf32> to vector<8x128xf32>
    %33 = arith.negf %32 : vector<8x128xf32>
    %34 = math.exp %33 : vector<8x128xf32>
    %cst_17 = arith.constant 1.000000e+00 : f32
    %35 = vector.broadcast %cst_17 : f32 to vector<8x128xf32>
    %36 = arith.addf %35, %34 : vector<8x128xf32>
    %37 = arith.divf %35, %36 : vector<8x128xf32>
    %38 = vector.extract_strided_slice %19 {offsets = [0, 384], sizes = [8, 128], strides = [1, 1]} : vector<8x512xf32> to vector<8x128xf32>
    %39 = math.tanh %38 : vector<8x128xf32>
    %40 = arith.mulf %31, %6 : vector<8x128xf32>
    %41 = arith.mulf %25, %39 : vector<8x128xf32>
    %42 = arith.addf %40, %41 : vector<8x128xf32>
    %43 = math.tanh %42 : vector<8x128xf32>
    %44 = arith.mulf %37, %43 : vector<8x128xf32>
    %45 = arith.truncf %44 : vector<8x128xf32> to vector<8x128xbf16>
    %cst_18 = arith.constant dense<0.000000e+00> : vector<8x128xf32>
    %46 = tpu.matmul %45, %2, %cst_18 {dimension_numbers = #tpu.dot_dimension_numbers<[1], [0], [0], [1], [0, 0, 1, 1], [], []>} : vector<8x128xbf16>, vector<128x128xbf16>, vector<8x128xf32> -> vector<8x128xf32>
    %47 = vector.broadcast %3 : vector<1x128xf32> to vector<8x128xf32>
    %48 = arith.addf %46, %47 : vector<8x128xf32>
    %49 = arith.index_cast %c0_i32 : i32 to index
    %c0_19 = arith.constant 0 : index
    %c0_20 = arith.constant 0 : index
    %50 = vector.load %arg8[%49, %c0_19, %c0_20] : memref<7x8x128xf32, #tpu.memory_space<vmem>>, vector<1x8x128xf32>
    %51 = vector.shape_cast %50 : vector<1x8x128xf32> to vector<8x128xf32>
    %52 = vector.shape_cast %48 : vector<8x128xf32> to vector<1x8x128xf32>
    tpu.vector_store %arg8[%49, %c0_19, %c0_20], %52 {strides = array<i32>} : memref<7x8x128xf32, #tpu.memory_space<vmem>>, vector<1x8x128xf32>,
    %cst_21 = arith.constant dense<0xFF800000> : vector<8xf32>
    %53 = vector.multi_reduction <maximumf>, %48, %cst_21 [1] : vector<8x128xf32> to vector<8xf32>
    %54 = vector.shape_cast %53 : vector<8xf32> to vector<8x1xf32>
    %55 = vector.broadcast %54 : vector<8x1xf32> to vector<8x128xf32>
    %56 = arith.cmpf oeq, %48, %55 : vector<8x128xf32>
    %c128_i32 = arith.constant 128 : i32
    %57 = vector.broadcast %c128_i32 : i32 to vector<8x128xi32>
    %58 = arith.select %56, %0, %57 : vector<8x128xi1>, vector<8x128xi32>
    %cst_22 = arith.constant dense<2147483647> : vector<8xi32>
    %59 = vector.multi_reduction <minsi>, %58, %cst_22 [1] : vector<8x128xi32> to vector<8xi32>
    %60 = vector.shape_cast %59 : vector<8xi32> to vector<8x1xi32>
    %61 = vector.broadcast %60 : vector<8x1xi32> to vector<8x128xi32>
    %62 = arith.cmpi eq, %0, %61 : vector<8x128xi32>
    %63 = arith.extui %62 : vector<8x128xi1> to vector<8x128xi32>
    %64 = arith.sitofp %63 : vector<8x128xi32> to vector<8x128xf32>
    %65 = arith.truncf %64 : vector<8x128xf32> to vector<8x128xbf16>
    %cst_23 = arith.constant dense<0.000000e+00> : vector<8x512xf32>
    %66 = tpu.matmul %65, %4, %cst_23 {dimension_numbers = #tpu.dot_dimension_numbers<[1], [0], [0], [1], [0, 0, 1, 1], [], []>} : vector<8x128xbf16>, vector<128x512xbf16>, vector<8x512xf32> -> vector<8x512xf32>
    %c1_i32 = arith.constant 1 : i32
    %67 = arith.index_cast %c1_i32 : i32 to index
    %68 = memref.load %arg0[%67] : memref<7xi32, #tpu.memory_space<smem>>
    %69 = vector.broadcast %68 : i32 to vector<8x512xi32>
    %c0_i32_24 = arith.constant 0 : i32
    %70 = vector.broadcast %c0_i32_24 : i32 to vector<8x512xi32>
    %71 = arith.cmpi ne, %69, %70 : vector<8x512xi32>
    %72 = arith.index_cast %c1_i32 : i32 to index
    %c0_25 = arith.constant 0 : index
    %c0_26 = arith.constant 0 : index
    %73 = vector.load %arg1[%72, %c0_25, %c0_26] : memref<7x8x512xf32, #tpu.memory_space<vmem>>, vector<1x8x512xf32>
    %74 = vector.shape_cast %73 : vector<1x8x512xf32> to vector<8x512xf32>
    %75 = arith.select %71, %74, %66 : vector<8x512xi1>, vector<8x512xf32>
    %76 = arith.truncf %44 : vector<8x128xf32> to vector<8x128xbf16>
    %cst_27 = arith.constant dense<0.000000e+00> : vector<8x512xf32>
    %77 = tpu.matmul %76, %1, %cst_27 {dimension_numbers = #tpu.dot_dimension_numbers<[1], [0], [0], [1], [0, 0, 1, 1], [], []>} : vector<8x128xbf16>, vector<128x512xbf16>, vector<8x512xf32> -> vector<8x512xf32>
    %78 = arith.addf %75, %77 : vector<8x512xf32>
    %79 = vector.extract_strided_slice %78 {offsets = [0, 0], sizes = [8, 128], strides = [1, 1]} : vector<8x512xf32> to vector<8x128xf32>
    %80 = arith.negf %79 : vector<8x128xf32>
    %81 = math.exp %80 : vector<8x128xf32>
    %cst_28 = arith.constant 1.000000e+00 : f32
    %82 = vector.broadcast %cst_28 : f32 to vector<8x128xf32>
    %83 = arith.addf %82, %81 : vector<8x128xf32>
    %84 = arith.divf %82, %83 : vector<8x128xf32>
    %85 = vector.extract_strided_slice %78 {offsets = [0, 128], sizes = [8, 128], strides = [1, 1]} : vector<8x512xf32> to vector<8x128xf32>
    %86 = arith.negf %85 : vector<8x128xf32>
    %87 = math.exp %86 : vector<8x128xf32>
    %cst_29 = arith.constant 1.000000e+00 : f32
    %88 = vector.broadcast %cst_29 : f32 to vector<8x128xf32>
    %89 = arith.addf %88, %87 : vector<8x128xf32>
    %90 = arith.divf %88, %89 : vector<8x128xf32>
    %91 = vector.extract_strided_slice %78 {offsets = [0, 256], sizes = [8, 128], strides = [1, 1]} : vector<8x512xf32> to vector<8x128xf32>
    %92 = arith.negf %91 : vector<8x128xf32>
    %93 = math.exp %92 : vector<8x128xf32>
    %cst_30 = arith.constant 1.000000e+00 : f32
    %94 = vector.broadcast %cst_30 : f32 to vector<8x128xf32>
    %95 = arith.addf %94, %93 : vector<8x128xf32>
    %96 = arith.divf %94, %95 : vector<8x128xf32>
    %97 = vector.extract_strided_slice %78 {offsets = [0, 384], sizes = [8, 128], strides = [1, 1]} : vector<8x512xf32> to vector<8x128xf32>
    %98 = math.tanh %97 : vector<8x128xf32>
    %99 = arith.mulf %90, %42 : vector<8x128xf32>
    %100 = arith.mulf %84, %98 : vector<8x128xf32>
    %101 = arith.addf %99, %100 : vector<8x128xf32>
    %102 = math.tanh %101 : vector<8x128xf32>
    %103 = arith.mulf %96, %102 : vector<8x128xf32>
    %104 = arith.truncf %103 : vector<8x128xf32> to vector<8x128xbf16>
    %cst_31 = arith.constant dense<0.000000e+00> : vector<8x128xf32>
    %105 = tpu.matmul %104, %2, %cst_31 {dimension_numbers = #tpu.dot_dimension_numbers<[1], [0], [0], [1], [0, 0, 1, 1], [], []>} : vector<8x128xbf16>, vector<128x128xbf16>, vector<8x128xf32> -> vector<8x128xf32>
    %106 = vector.broadcast %3 : vector<1x128xf32> to vector<8x128xf32>
    %107 = arith.addf %105, %106 : vector<8x128xf32>
    %108 = arith.index_cast %c1_i32 : i32 to index
    %c0_32 = arith.constant 0 : index
    %c0_33 = arith.constant 0 : index
    %109 = vector.load %arg8[%108, %c0_32, %c0_33] : memref<7x8x128xf32, #tpu.memory_space<vmem>>, vector<1x8x128xf32>
    %110 = vector.shape_cast %109 : vector<1x8x128xf32> to vector<8x128xf32>
    %111 = vector.shape_cast %107 : vector<8x128xf32> to vector<1x8x128xf32>
    tpu.vector_store %arg8[%108, %c0_32, %c0_33], %111 {strides = array<i32>} : memref<7x8x128xf32, #tpu.memory_space<vmem>>, vector<1x8x128xf32>,
    %cst_34 = arith.constant dense<0xFF800000> : vector<8xf32>
    %112 = vector.multi_reduction <maximumf>, %107, %cst_34 [1] : vector<8x128xf32> to vector<8xf32>
    %113 = vector.shape_cast %112 : vector<8xf32> to vector<8x1xf32>
    %114 = vector.broadcast %113 : vector<8x1xf32> to vector<8x128xf32>
    %115 = arith.cmpf oeq, %107, %114 : vector<8x128xf32>
    %c128_i32_35 = arith.constant 128 : i32
    %116 = vector.broadcast %c128_i32_35 : i32 to vector<8x128xi32>
    %117 = arith.select %115, %0, %116 : vector<8x128xi1>, vector<8x128xi32>
    %cst_36 = arith.constant dense<2147483647> : vector<8xi32>
    %118 = vector.multi_reduction <minsi>, %117, %cst_36 [1] : vector<8x128xi32> to vector<8xi32>
    %119 = vector.shape_cast %118 : vector<8xi32> to vector<8x1xi32>
    %120 = vector.broadcast %119 : vector<8x1xi32> to vector<8x128xi32>
    %121 = arith.cmpi eq, %0, %120 : vector<8x128xi32>
    %122 = arith.extui %121 : vector<8x128xi1> to vector<8x128xi32>
    %123 = arith.sitofp %122 : vector<8x128xi32> to vector<8x128xf32>
    %124 = arith.truncf %123 : vector<8x128xf32> to vector<8x128xbf16>
    %cst_37 = arith.constant dense<0.000000e+00> : vector<8x512xf32>
    %125 = tpu.matmul %124, %4, %cst_37 {dimension_numbers = #tpu.dot_dimension_numbers<[1], [0], [0], [1], [0, 0, 1, 1], [], []>} : vector<8x128xbf16>, vector<128x512xbf16>, vector<8x512xf32> -> vector<8x512xf32>
    %c2_i32 = arith.constant 2 : i32
    %126 = arith.index_cast %c2_i32 : i32 to index
    %127 = memref.load %arg0[%126] : memref<7xi32, #tpu.memory_space<smem>>
    %128 = vector.broadcast %127 : i32 to vector<8x512xi32>
    %c0_i32_38 = arith.constant 0 : i32
    %129 = vector.broadcast %c0_i32_38 : i32 to vector<8x512xi32>
    %130 = arith.cmpi ne, %128, %129 : vector<8x512xi32>
    %131 = arith.index_cast %c2_i32 : i32 to index
    %c0_39 = arith.constant 0 : index
    %c0_40 = arith.constant 0 : index
    %132 = vector.load %arg1[%131, %c0_39, %c0_40] : memref<7x8x512xf32, #tpu.memory_space<vmem>>, vector<1x8x512xf32>
    %133 = vector.shape_cast %132 : vector<1x8x512xf32> to vector<8x512xf32>
    %134 = arith.select %130, %133, %125 : vector<8x512xi1>, vector<8x512xf32>
    %135 = arith.truncf %103 : vector<8x128xf32> to vector<8x128xbf16>
    %cst_41 = arith.constant dense<0.000000e+00> : vector<8x512xf32>
    %136 = tpu.matmul %135, %1, %cst_41 {dimension_numbers = #tpu.dot_dimension_numbers<[1], [0], [0], [1], [0, 0, 1, 1], [], []>} : vector<8x128xbf16>, vector<128x512xbf16>, vector<8x512xf32> -> vector<8x512xf32>
    %137 = arith.addf %134, %136 : vector<8x512xf32>
    %138 = vector.extract_strided_slice %137 {offsets = [0, 0], sizes = [8, 128], strides = [1, 1]} : vector<8x512xf32> to vector<8x128xf32>
    %139 = arith.negf %138 : vector<8x128xf32>
    %140 = math.exp %139 : vector<8x128xf32>
    %cst_42 = arith.constant 1.000000e+00 : f32
    %141 = vector.broadcast %cst_42 : f32 to vector<8x128xf32>
    %142 = arith.addf %141, %140 : vector<8x128xf32>
    %143 = arith.divf %141, %142 : vector<8x128xf32>
    %144 = vector.extract_strided_slice %137 {offsets = [0, 128], sizes = [8, 128], strides = [1, 1]} : vector<8x512xf32> to vector<8x128xf32>
    %145 = arith.negf %144 : vector<8x128xf32>
    %146 = math.exp %145 : vector<8x128xf32>
    %cst_43 = arith.constant 1.000000e+00 : f32
    %147 = vector.broadcast %cst_43 : f32 to vector<8x128xf32>
    %148 = arith.addf %147, %146 : vector<8x128xf32>
    %149 = arith.divf %147, %148 : vector<8x128xf32>
    %150 = vector.extract_strided_slice %137 {offsets = [0, 256], sizes = [8, 128], strides = [1, 1]} : vector<8x512xf32> to vector<8x128xf32>
    %151 = arith.negf %150 : vector<8x128xf32>
    %152 = math.exp %151 : vector<8x128xf32>
    %cst_44 = arith.constant 1.000000e+00 : f32
    %153 = vector.broadcast %cst_44 : f32 to vector<8x128xf32>
    %154 = arith.addf %153, %152 : vector<8x128xf32>
    %155 = arith.divf %153, %154 : vector<8x128xf32>
    %156 = vector.extract_strided_slice %137 {offsets = [0, 384], sizes = [8, 128], strides = [1, 1]} : vector<8x512xf32> to vector<8x128xf32>
    %157 = math.tanh %156 : vector<8x128xf32>
    %158 = arith.mulf %149, %101 : vector<8x128xf32>
    %159 = arith.mulf %143, %157 : vector<8x128xf32>
    %160 = arith.addf %158, %159 : vector<8x128xf32>
    %161 = math.tanh %160 : vector<8x128xf32>
    %162 = arith.mulf %155, %161 : vector<8x128xf32>
    %163 = arith.truncf %162 : vector<8x128xf32> to vector<8x128xbf16>
    %cst_45 = arith.constant dense<0.000000e+00> : vector<8x128xf32>
    %164 = tpu.matmul %163, %2, %cst_45 {dimension_numbers = #tpu.dot_dimension_numbers<[1], [0], [0], [1], [0, 0, 1, 1], [], []>} : vector<8x128xbf16>, vector<128x128xbf16>, vector<8x128xf32> -> vector<8x128xf32>
    %165 = vector.broadcast %3 : vector<1x128xf32> to vector<8x128xf32>
    %166 = arith.addf %164, %165 : vector<8x128xf32>
    %167 = arith.index_cast %c2_i32 : i32 to index
    %c0_46 = arith.constant 0 : index
    %c0_47 = arith.constant 0 : index
    %168 = vector.load %arg8[%167, %c0_46, %c0_47] : memref<7x8x128xf32, #tpu.memory_space<vmem>>, vector<1x8x128xf32>
    %169 = vector.shape_cast %168 : vector<1x8x128xf32> to vector<8x128xf32>
    %170 = vector.shape_cast %166 : vector<8x128xf32> to vector<1x8x128xf32>
    tpu.vector_store %arg8[%167, %c0_46, %c0_47], %170 {strides = array<i32>} : memref<7x8x128xf32, #tpu.memory_space<vmem>>, vector<1x8x128xf32>,
    %cst_48 = arith.constant dense<0xFF800000> : vector<8xf32>
    %171 = vector.multi_reduction <maximumf>, %166, %cst_48 [1] : vector<8x128xf32> to vector<8xf32>
    %172 = vector.shape_cast %171 : vector<8xf32> to vector<8x1xf32>
    %173 = vector.broadcast %172 : vector<8x1xf32> to vector<8x128xf32>
    %174 = arith.cmpf oeq, %166, %173 : vector<8x128xf32>
    %c128_i32_49 = arith.constant 128 : i32
    %175 = vector.broadcast %c128_i32_49 : i32 to vector<8x128xi32>
    %176 = arith.select %174, %0, %175 : vector<8x128xi1>, vector<8x128xi32>
    %cst_50 = arith.constant dense<2147483647> : vector<8xi32>
    %177 = vector.multi_reduction <minsi>, %176, %cst_50 [1] : vector<8x128xi32> to vector<8xi32>
    %178 = vector.shape_cast %177 : vector<8xi32> to vector<8x1xi32>
    %179 = vector.broadcast %178 : vector<8x1xi32> to vector<8x128xi32>
    %180 = arith.cmpi eq, %0, %179 : vector<8x128xi32>
    %181 = arith.extui %180 : vector<8x128xi1> to vector<8x128xi32>
    %182 = arith.sitofp %181 : vector<8x128xi32> to vector<8x128xf32>
    %183 = arith.truncf %182 : vector<8x128xf32> to vector<8x128xbf16>
    %cst_51 = arith.constant dense<0.000000e+00> : vector<8x512xf32>
    %184 = tpu.matmul %183, %4, %cst_51 {dimension_numbers = #tpu.dot_dimension_numbers<[1], [0], [0], [1], [0, 0, 1, 1], [], []>} : vector<8x128xbf16>, vector<128x512xbf16>, vector<8x512xf32> -> vector<8x512xf32>
    %c3_i32 = arith.constant 3 : i32
    %185 = arith.index_cast %c3_i32 : i32 to index
    %186 = memref.load %arg0[%185] : memref<7xi32, #tpu.memory_space<smem>>
    %187 = vector.broadcast %186 : i32 to vector<8x512xi32>
    %c0_i32_52 = arith.constant 0 : i32
    %188 = vector.broadcast %c0_i32_52 : i32 to vector<8x512xi32>
    %189 = arith.cmpi ne, %187, %188 : vector<8x512xi32>
    %190 = arith.index_cast %c3_i32 : i32 to index
    %c0_53 = arith.constant 0 : index
    %c0_54 = arith.constant 0 : index
    %191 = vector.load %arg1[%190, %c0_53, %c0_54] : memref<7x8x512xf32, #tpu.memory_space<vmem>>, vector<1x8x512xf32>
    %192 = vector.shape_cast %191 : vector<1x8x512xf32> to vector<8x512xf32>
    %193 = arith.select %189, %192, %184 : vector<8x512xi1>, vector<8x512xf32>
    %194 = arith.truncf %162 : vector<8x128xf32> to vector<8x128xbf16>
    %cst_55 = arith.constant dense<0.000000e+00> : vector<8x512xf32>
    %195 = tpu.matmul %194, %1, %cst_55 {dimension_numbers = #tpu.dot_dimension_numbers<[1], [0], [0], [1], [0, 0, 1, 1], [], []>} : vector<8x128xbf16>, vector<128x512xbf16>, vector<8x512xf32> -> vector<8x512xf32>
    %196 = arith.addf %193, %195 : vector<8x512xf32>
    %197 = vector.extract_strided_slice %196 {offsets = [0, 0], sizes = [8, 128], strides = [1, 1]} : vector<8x512xf32> to vector<8x128xf32>
    %198 = arith.negf %197 : vector<8x128xf32>
    %199 = math.exp %198 : vector<8x128xf32>
    %cst_56 = arith.constant 1.000000e+00 : f32
    %200 = vector.broadcast %cst_56 : f32 to vector<8x128xf32>
    %201 = arith.addf %200, %199 : vector<8x128xf32>
    %202 = arith.divf %200, %201 : vector<8x128xf32>
    %203 = vector.extract_strided_slice %196 {offsets = [0, 128], sizes = [8, 128], strides = [1, 1]} : vector<8x512xf32> to vector<8x128xf32>
    %204 = arith.negf %203 : vector<8x128xf32>
    %205 = math.exp %204 : vector<8x128xf32>
    %cst_57 = arith.constant 1.000000e+00 : f32
    %206 = vector.broadcast %cst_57 : f32 to vector<8x128xf32>
    %207 = arith.addf %206, %205 : vector<8x128xf32>
    %208 = arith.divf %206, %207 : vector<8x128xf32>
    %209 = vector.extract_strided_slice %196 {offsets = [0, 256], sizes = [8, 128], strides = [1, 1]} : vector<8x512xf32> to vector<8x128xf32>
    %210 = arith.negf %209 : vector<8x128xf32>
    %211 = math.exp %210 : vector<8x128xf32>
    %cst_58 = arith.constant 1.000000e+00 : f32
    %212 = vector.broadcast %cst_58 : f32 to vector<8x128xf32>
    %213 = arith.addf %212, %211 : vector<8x128xf32>
    %214 = arith.divf %212, %213 : vector<8x128xf32>
    %215 = vector.extract_strided_slice %196 {offsets = [0, 384], sizes = [8, 128], strides = [1, 1]} : vector<8x512xf32> to vector<8x128xf32>
    %216 = math.tanh %215 : vector<8x128xf32>
    %217 = arith.mulf %208, %160 : vector<8x128xf32>
    %218 = arith.mulf %202, %216 : vector<8x128xf32>
    %219 = arith.addf %217, %218 : vector<8x128xf32>
    %220 = math.tanh %219 : vector<8x128xf32>
    %221 = arith.mulf %214, %220 : vector<8x128xf32>
    %222 = arith.truncf %221 : vector<8x128xf32> to vector<8x128xbf16>
    %cst_59 = arith.constant dense<0.000000e+00> : vector<8x128xf32>
    %223 = tpu.matmul %222, %2, %cst_59 {dimension_numbers = #tpu.dot_dimension_numbers<[1], [0], [0], [1], [0, 0, 1, 1], [], []>} : vector<8x128xbf16>, vector<128x128xbf16>, vector<8x128xf32> -> vector<8x128xf32>
    %224 = vector.broadcast %3 : vector<1x128xf32> to vector<8x128xf32>
    %225 = arith.addf %223, %224 : vector<8x128xf32>
    %226 = arith.index_cast %c3_i32 : i32 to index
    %c0_60 = arith.constant 0 : index
    %c0_61 = arith.constant 0 : index
    %227 = vector.load %arg8[%226, %c0_60, %c0_61] : memref<7x8x128xf32, #tpu.memory_space<vmem>>, vector<1x8x128xf32>
    %228 = vector.shape_cast %227 : vector<1x8x128xf32> to vector<8x128xf32>
    %229 = vector.shape_cast %225 : vector<8x128xf32> to vector<1x8x128xf32>
    tpu.vector_store %arg8[%226, %c0_60, %c0_61], %229 {strides = array<i32>} : memref<7x8x128xf32, #tpu.memory_space<vmem>>, vector<1x8x128xf32>,
    %cst_62 = arith.constant dense<0xFF800000> : vector<8xf32>
    %230 = vector.multi_reduction <maximumf>, %225, %cst_62 [1] : vector<8x128xf32> to vector<8xf32>
    %231 = vector.shape_cast %230 : vector<8xf32> to vector<8x1xf32>
    %232 = vector.broadcast %231 : vector<8x1xf32> to vector<8x128xf32>
    %233 = arith.cmpf oeq, %225, %232 : vector<8x128xf32>
    %c128_i32_63 = arith.constant 128 : i32
    %234 = vector.broadcast %c128_i32_63 : i32 to vector<8x128xi32>
    %235 = arith.select %233, %0, %234 : vector<8x128xi1>, vector<8x128xi32>
    %cst_64 = arith.constant dense<2147483647> : vector<8xi32>
    %236 = vector.multi_reduction <minsi>, %235, %cst_64 [1] : vector<8x128xi32> to vector<8xi32>
    %237 = vector.shape_cast %236 : vector<8xi32> to vector<8x1xi32>
    %238 = vector.broadcast %237 : vector<8x1xi32> to vector<8x128xi32>
    %239 = arith.cmpi eq, %0, %238 : vector<8x128xi32>
    %240 = arith.extui %239 : vector<8x128xi1> to vector<8x128xi32>
    %241 = arith.sitofp %240 : vector<8x128xi32> to vector<8x128xf32>
    %242 = arith.truncf %241 : vector<8x128xf32> to vector<8x128xbf16>
    %cst_65 = arith.constant dense<0.000000e+00> : vector<8x512xf32>
    %243 = tpu.matmul %242, %4, %cst_65 {dimension_numbers = #tpu.dot_dimension_numbers<[1], [0], [0], [1], [0, 0, 1, 1], [], []>} : vector<8x128xbf16>, vector<128x512xbf16>, vector<8x512xf32> -> vector<8x512xf32>
    %c4_i32 = arith.constant 4 : i32
    %244 = arith.index_cast %c4_i32 : i32 to index
    %245 = memref.load %arg0[%244] : memref<7xi32, #tpu.memory_space<smem>>
    %246 = vector.broadcast %245 : i32 to vector<8x512xi32>
    %c0_i32_66 = arith.constant 0 : i32
    %247 = vector.broadcast %c0_i32_66 : i32 to vector<8x512xi32>
    %248 = arith.cmpi ne, %246, %247 : vector<8x512xi32>
    %249 = arith.index_cast %c4_i32 : i32 to index
    %c0_67 = arith.constant 0 : index
    %c0_68 = arith.constant 0 : index
    %250 = vector.load %arg1[%249, %c0_67, %c0_68] : memref<7x8x512xf32, #tpu.memory_space<vmem>>, vector<1x8x512xf32>
    %251 = vector.shape_cast %250 : vector<1x8x512xf32> to vector<8x512xf32>
    %252 = arith.select %248, %251, %243 : vector<8x512xi1>, vector<8x512xf32>
    %253 = arith.truncf %221 : vector<8x128xf32> to vector<8x128xbf16>
    %cst_69 = arith.constant dense<0.000000e+00> : vector<8x512xf32>
    %254 = tpu.matmul %253, %1, %cst_69 {dimension_numbers = #tpu.dot_dimension_numbers<[1], [0], [0], [1], [0, 0, 1, 1], [], []>} : vector<8x128xbf16>, vector<128x512xbf16>, vector<8x512xf32> -> vector<8x512xf32>
    %255 = arith.addf %252, %254 : vector<8x512xf32>
    %256 = vector.extract_strided_slice %255 {offsets = [0, 0], sizes = [8, 128], strides = [1, 1]} : vector<8x512xf32> to vector<8x128xf32>
    %257 = arith.negf %256 : vector<8x128xf32>
    %258 = math.exp %257 : vector<8x128xf32>
    %cst_70 = arith.constant 1.000000e+00 : f32
    %259 = vector.broadcast %cst_70 : f32 to vector<8x128xf32>
    %260 = arith.addf %259, %258 : vector<8x128xf32>
    %261 = arith.divf %259, %260 : vector<8x128xf32>
    %262 = vector.extract_strided_slice %255 {offsets = [0, 128], sizes = [8, 128], strides = [1, 1]} : vector<8x512xf32> to vector<8x128xf32>
    %263 = arith.negf %262 : vector<8x128xf32>
    %264 = math.exp %263 : vector<8x128xf32>
    %cst_71 = arith.constant 1.000000e+00 : f32
    %265 = vector.broadcast %cst_71 : f32 to vector<8x128xf32>
    %266 = arith.addf %265, %264 : vector<8x128xf32>
    %267 = arith.divf %265, %266 : vector<8x128xf32>
    %268 = vector.extract_strided_slice %255 {offsets = [0, 256], sizes = [8, 128], strides = [1, 1]} : vector<8x512xf32> to vector<8x128xf32>
    %269 = arith.negf %268 : vector<8x128xf32>
    %270 = math.exp %269 : vector<8x128xf32>
    %cst_72 = arith.constant 1.000000e+00 : f32
    %271 = vector.broadcast %cst_72 : f32 to vector<8x128xf32>
    %272 = arith.addf %271, %270 : vector<8x128xf32>
    %273 = arith.divf %271, %272 : vector<8x128xf32>
    %274 = vector.extract_strided_slice %255 {offsets = [0, 384], sizes = [8, 128], strides = [1, 1]} : vector<8x512xf32> to vector<8x128xf32>
    %275 = math.tanh %274 : vector<8x128xf32>
    %276 = arith.mulf %267, %219 : vector<8x128xf32>
    %277 = arith.mulf %261, %275 : vector<8x128xf32>
    %278 = arith.addf %276, %277 : vector<8x128xf32>
    %279 = math.tanh %278 : vector<8x128xf32>
    %280 = arith.mulf %273, %279 : vector<8x128xf32>
    %281 = arith.truncf %280 : vector<8x128xf32> to vector<8x128xbf16>
    %cst_73 = arith.constant dense<0.000000e+00> : vector<8x128xf32>
    %282 = tpu.matmul %281, %2, %cst_73 {dimension_numbers = #tpu.dot_dimension_numbers<[1], [0], [0], [1], [0, 0, 1, 1], [], []>} : vector<8x128xbf16>, vector<128x128xbf16>, vector<8x128xf32> -> vector<8x128xf32>
    %283 = vector.broadcast %3 : vector<1x128xf32> to vector<8x128xf32>
    %284 = arith.addf %282, %283 : vector<8x128xf32>
    %285 = arith.index_cast %c4_i32 : i32 to index
    %c0_74 = arith.constant 0 : index
    %c0_75 = arith.constant 0 : index
    %286 = vector.load %arg8[%285, %c0_74, %c0_75] : memref<7x8x128xf32, #tpu.memory_space<vmem>>, vector<1x8x128xf32>
    %287 = vector.shape_cast %286 : vector<1x8x128xf32> to vector<8x128xf32>
    %288 = vector.shape_cast %284 : vector<8x128xf32> to vector<1x8x128xf32>
    tpu.vector_store %arg8[%285, %c0_74, %c0_75], %288 {strides = array<i32>} : memref<7x8x128xf32, #tpu.memory_space<vmem>>, vector<1x8x128xf32>,
    %cst_76 = arith.constant dense<0xFF800000> : vector<8xf32>
    %289 = vector.multi_reduction <maximumf>, %284, %cst_76 [1] : vector<8x128xf32> to vector<8xf32>
    %290 = vector.shape_cast %289 : vector<8xf32> to vector<8x1xf32>
    %291 = vector.broadcast %290 : vector<8x1xf32> to vector<8x128xf32>
    %292 = arith.cmpf oeq, %284, %291 : vector<8x128xf32>
    %c128_i32_77 = arith.constant 128 : i32
    %293 = vector.broadcast %c128_i32_77 : i32 to vector<8x128xi32>
    %294 = arith.select %292, %0, %293 : vector<8x128xi1>, vector<8x128xi32>
    %cst_78 = arith.constant dense<2147483647> : vector<8xi32>
    %295 = vector.multi_reduction <minsi>, %294, %cst_78 [1] : vector<8x128xi32> to vector<8xi32>
    %296 = vector.shape_cast %295 : vector<8xi32> to vector<8x1xi32>
    %297 = vector.broadcast %296 : vector<8x1xi32> to vector<8x128xi32>
    %298 = arith.cmpi eq, %0, %297 : vector<8x128xi32>
    %299 = arith.extui %298 : vector<8x128xi1> to vector<8x128xi32>
    %300 = arith.sitofp %299 : vector<8x128xi32> to vector<8x128xf32>
    %301 = arith.truncf %300 : vector<8x128xf32> to vector<8x128xbf16>
    %cst_79 = arith.constant dense<0.000000e+00> : vector<8x512xf32>
    %302 = tpu.matmul %301, %4, %cst_79 {dimension_numbers = #tpu.dot_dimension_numbers<[1], [0], [0], [1], [0, 0, 1, 1], [], []>} : vector<8x128xbf16>, vector<128x512xbf16>, vector<8x512xf32> -> vector<8x512xf32>
    %c5_i32 = arith.constant 5 : i32
    %303 = arith.index_cast %c5_i32 : i32 to index
    %304 = memref.load %arg0[%303] : memref<7xi32, #tpu.memory_space<smem>>
    %305 = vector.broadcast %304 : i32 to vector<8x512xi32>
    %c0_i32_80 = arith.constant 0 : i32
    %306 = vector.broadcast %c0_i32_80 : i32 to vector<8x512xi32>
    %307 = arith.cmpi ne, %305, %306 : vector<8x512xi32>
    %308 = arith.index_cast %c5_i32 : i32 to index
    %c0_81 = arith.constant 0 : index
    %c0_82 = arith.constant 0 : index
    %309 = vector.load %arg1[%308, %c0_81, %c0_82] : memref<7x8x512xf32, #tpu.memory_space<vmem>>, vector<1x8x512xf32>
    %310 = vector.shape_cast %309 : vector<1x8x512xf32> to vector<8x512xf32>
    %311 = arith.select %307, %310, %302 : vector<8x512xi1>, vector<8x512xf32>
    %312 = arith.truncf %280 : vector<8x128xf32> to vector<8x128xbf16>
    %cst_83 = arith.constant dense<0.000000e+00> : vector<8x512xf32>
    %313 = tpu.matmul %312, %1, %cst_83 {dimension_numbers = #tpu.dot_dimension_numbers<[1], [0], [0], [1], [0, 0, 1, 1], [], []>} : vector<8x128xbf16>, vector<128x512xbf16>, vector<8x512xf32> -> vector<8x512xf32>
    %314 = arith.addf %311, %313 : vector<8x512xf32>
    %315 = vector.extract_strided_slice %314 {offsets = [0, 0], sizes = [8, 128], strides = [1, 1]} : vector<8x512xf32> to vector<8x128xf32>
    %316 = arith.negf %315 : vector<8x128xf32>
    %317 = math.exp %316 : vector<8x128xf32>
    %cst_84 = arith.constant 1.000000e+00 : f32
    %318 = vector.broadcast %cst_84 : f32 to vector<8x128xf32>
    %319 = arith.addf %318, %317 : vector<8x128xf32>
    %320 = arith.divf %318, %319 : vector<8x128xf32>
    %321 = vector.extract_strided_slice %314 {offsets = [0, 128], sizes = [8, 128], strides = [1, 1]} : vector<8x512xf32> to vector<8x128xf32>
    %322 = arith.negf %321 : vector<8x128xf32>
    %323 = math.exp %322 : vector<8x128xf32>
    %cst_85 = arith.constant 1.000000e+00 : f32
    %324 = vector.broadcast %cst_85 : f32 to vector<8x128xf32>
    %325 = arith.addf %324, %323 : vector<8x128xf32>
    %326 = arith.divf %324, %325 : vector<8x128xf32>
    %327 = vector.extract_strided_slice %314 {offsets = [0, 256], sizes = [8, 128], strides = [1, 1]} : vector<8x512xf32> to vector<8x128xf32>
    %328 = arith.negf %327 : vector<8x128xf32>
    %329 = math.exp %328 : vector<8x128xf32>
    %cst_86 = arith.constant 1.000000e+00 : f32
    %330 = vector.broadcast %cst_86 : f32 to vector<8x128xf32>
    %331 = arith.addf %330, %329 : vector<8x128xf32>
    %332 = arith.divf %330, %331 : vector<8x128xf32>
    %333 = vector.extract_strided_slice %314 {offsets = [0, 384], sizes = [8, 128], strides = [1, 1]} : vector<8x512xf32> to vector<8x128xf32>
    %334 = math.tanh %333 : vector<8x128xf32>
    %335 = arith.mulf %326, %278 : vector<8x128xf32>
    %336 = arith.mulf %320, %334 : vector<8x128xf32>
    %337 = arith.addf %335, %336 : vector<8x128xf32>
    %338 = math.tanh %337 : vector<8x128xf32>
    %339 = arith.mulf %332, %338 : vector<8x128xf32>
    %340 = arith.truncf %339 : vector<8x128xf32> to vector<8x128xbf16>
    %cst_87 = arith.constant dense<0.000000e+00> : vector<8x128xf32>
    %341 = tpu.matmul %340, %2, %cst_87 {dimension_numbers = #tpu.dot_dimension_numbers<[1], [0], [0], [1], [0, 0, 1, 1], [], []>} : vector<8x128xbf16>, vector<128x128xbf16>, vector<8x128xf32> -> vector<8x128xf32>
    %342 = vector.broadcast %3 : vector<1x128xf32> to vector<8x128xf32>
    %343 = arith.addf %341, %342 : vector<8x128xf32>
    %344 = arith.index_cast %c5_i32 : i32 to index
    %c0_88 = arith.constant 0 : index
    %c0_89 = arith.constant 0 : index
    %345 = vector.load %arg8[%344, %c0_88, %c0_89] : memref<7x8x128xf32, #tpu.memory_space<vmem>>, vector<1x8x128xf32>
    %346 = vector.shape_cast %345 : vector<1x8x128xf32> to vector<8x128xf32>
    %347 = vector.shape_cast %343 : vector<8x128xf32> to vector<1x8x128xf32>
    tpu.vector_store %arg8[%344, %c0_88, %c0_89], %347 {strides = array<i32>} : memref<7x8x128xf32, #tpu.memory_space<vmem>>, vector<1x8x128xf32>,
    %cst_90 = arith.constant dense<0xFF800000> : vector<8xf32>
    %348 = vector.multi_reduction <maximumf>, %343, %cst_90 [1] : vector<8x128xf32> to vector<8xf32>
    %349 = vector.shape_cast %348 : vector<8xf32> to vector<8x1xf32>
    %350 = vector.broadcast %349 : vector<8x1xf32> to vector<8x128xf32>
    %351 = arith.cmpf oeq, %343, %350 : vector<8x128xf32>
    %c128_i32_91 = arith.constant 128 : i32
    %352 = vector.broadcast %c128_i32_91 : i32 to vector<8x128xi32>
    %353 = arith.select %351, %0, %352 : vector<8x128xi1>, vector<8x128xi32>
    %cst_92 = arith.constant dense<2147483647> : vector<8xi32>
    %354 = vector.multi_reduction <minsi>, %353, %cst_92 [1] : vector<8x128xi32> to vector<8xi32>
    %355 = vector.shape_cast %354 : vector<8xi32> to vector<8x1xi32>
    %356 = vector.broadcast %355 : vector<8x1xi32> to vector<8x128xi32>
    %357 = arith.cmpi eq, %0, %356 : vector<8x128xi32>
    %358 = arith.extui %357 : vector<8x128xi1> to vector<8x128xi32>
    %359 = arith.sitofp %358 : vector<8x128xi32> to vector<8x128xf32>
    %360 = arith.truncf %359 : vector<8x128xf32> to vector<8x128xbf16>
    %cst_93 = arith.constant dense<0.000000e+00> : vector<8x512xf32>
    %361 = tpu.matmul %360, %4, %cst_93 {dimension_numbers = #tpu.dot_dimension_numbers<[1], [0], [0], [1], [0, 0, 1, 1], [], []>} : vector<8x128xbf16>, vector<128x512xbf16>, vector<8x512xf32> -> vector<8x512xf32>
    %c6_i32 = arith.constant 6 : i32
    %362 = arith.index_cast %c6_i32 : i32 to index
    %363 = memref.load %arg0[%362] : memref<7xi32, #tpu.memory_space<smem>>
    %364 = vector.broadcast %363 : i32 to vector<8x512xi32>
    %c0_i32_94 = arith.constant 0 : i32
    %365 = vector.broadcast %c0_i32_94 : i32 to vector<8x512xi32>
    %366 = arith.cmpi ne, %364, %365 : vector<8x512xi32>
    %367 = arith.index_cast %c6_i32 : i32 to index
    %c0_95 = arith.constant 0 : index
    %c0_96 = arith.constant 0 : index
    %368 = vector.load %arg1[%367, %c0_95, %c0_96] : memref<7x8x512xf32, #tpu.memory_space<vmem>>, vector<1x8x512xf32>
    %369 = vector.shape_cast %368 : vector<1x8x512xf32> to vector<8x512xf32>
    %370 = arith.select %366, %369, %361 : vector<8x512xi1>, vector<8x512xf32>
    %371 = arith.truncf %339 : vector<8x128xf32> to vector<8x128xbf16>
    %cst_97 = arith.constant dense<0.000000e+00> : vector<8x512xf32>
    %372 = tpu.matmul %371, %1, %cst_97 {dimension_numbers = #tpu.dot_dimension_numbers<[1], [0], [0], [1], [0, 0, 1, 1], [], []>} : vector<8x128xbf16>, vector<128x512xbf16>, vector<8x512xf32> -> vector<8x512xf32>
    %373 = arith.addf %370, %372 : vector<8x512xf32>
    %374 = vector.extract_strided_slice %373 {offsets = [0, 0], sizes = [8, 128], strides = [1, 1]} : vector<8x512xf32> to vector<8x128xf32>
    %375 = arith.negf %374 : vector<8x128xf32>
    %376 = math.exp %375 : vector<8x128xf32>
    %cst_98 = arith.constant 1.000000e+00 : f32
    %377 = vector.broadcast %cst_98 : f32 to vector<8x128xf32>
    %378 = arith.addf %377, %376 : vector<8x128xf32>
    %379 = arith.divf %377, %378 : vector<8x128xf32>
    %380 = vector.extract_strided_slice %373 {offsets = [0, 128], sizes = [8, 128], strides = [1, 1]} : vector<8x512xf32> to vector<8x128xf32>
    %381 = arith.negf %380 : vector<8x128xf32>
    %382 = math.exp %381 : vector<8x128xf32>
    %cst_99 = arith.constant 1.000000e+00 : f32
    %383 = vector.broadcast %cst_99 : f32 to vector<8x128xf32>
    %384 = arith.addf %383, %382 : vector<8x128xf32>
    %385 = arith.divf %383, %384 : vector<8x128xf32>
    %386 = vector.extract_strided_slice %373 {offsets = [0, 256], sizes = [8, 128], strides = [1, 1]} : vector<8x512xf32> to vector<8x128xf32>
    %387 = arith.negf %386 : vector<8x128xf32>
    %388 = math.exp %387 : vector<8x128xf32>
    %cst_100 = arith.constant 1.000000e+00 : f32
    %389 = vector.broadcast %cst_100 : f32 to vector<8x128xf32>
    %390 = arith.addf %389, %388 : vector<8x128xf32>
    %391 = arith.divf %389, %390 : vector<8x128xf32>
    %392 = vector.extract_strided_slice %373 {offsets = [0, 384], sizes = [8, 128], strides = [1, 1]} : vector<8x512xf32> to vector<8x128xf32>
    %393 = math.tanh %392 : vector<8x128xf32>
    %394 = arith.mulf %385, %337 : vector<8x128xf32>
    %395 = arith.mulf %379, %393 : vector<8x128xf32>
    %396 = arith.addf %394, %395 : vector<8x128xf32>
    %397 = math.tanh %396 : vector<8x128xf32>
    %398 = arith.mulf %391, %397 : vector<8x128xf32>
    %399 = arith.truncf %398 : vector<8x128xf32> to vector<8x128xbf16>
    %cst_101 = arith.constant dense<0.000000e+00> : vector<8x128xf32>
    %400 = tpu.matmul %399, %2, %cst_101 {dimension_numbers = #tpu.dot_dimension_numbers<[1], [0], [0], [1], [0, 0, 1, 1], [], []>} : vector<8x128xbf16>, vector<128x128xbf16>, vector<8x128xf32> -> vector<8x128xf32>
    %401 = vector.broadcast %3 : vector<1x128xf32> to vector<8x128xf32>
    %402 = arith.addf %400, %401 : vector<8x128xf32>
    %403 = arith.index_cast %c6_i32 : i32 to index
    %c0_102 = arith.constant 0 : index
    %c0_103 = arith.constant 0 : index
    %404 = vector.load %arg8[%403, %c0_102, %c0_103] : memref<7x8x128xf32, #tpu.memory_space<vmem>>, vector<1x8x128xf32>
    %405 = vector.shape_cast %404 : vector<1x8x128xf32> to vector<8x128xf32>
    %406 = vector.shape_cast %402 : vector<8x128xf32> to vector<1x8x128xf32>
    tpu.vector_store %arg8[%403, %c0_102, %c0_103], %406 {strides = array<i32>} : memref<7x8x128xf32, #tpu.memory_space<vmem>>, vector<1x8x128xf32>,
    %cst_104 = arith.constant dense<0xFF800000> : vector<8xf32>
    %407 = vector.multi_reduction <maximumf>, %402, %cst_104 [1] : vector<8x128xf32> to vector<8xf32>
    %408 = vector.shape_cast %407 : vector<8xf32> to vector<8x1xf32>
    %409 = vector.broadcast %408 : vector<8x1xf32> to vector<8x128xf32>
    %410 = arith.cmpf oeq, %402, %409 : vector<8x128xf32>
    %c128_i32_105 = arith.constant 128 : i32
    %411 = vector.broadcast %c128_i32_105 : i32 to vector<8x128xi32>
    %412 = arith.select %410, %0, %411 : vector<8x128xi1>, vector<8x128xi32>
    %cst_106 = arith.constant dense<2147483647> : vector<8xi32>
    %413 = vector.multi_reduction <minsi>, %412, %cst_106 [1] : vector<8x128xi32> to vector<8xi32>
    %414 = vector.shape_cast %413 : vector<8xi32> to vector<8x1xi32>
    %415 = vector.broadcast %414 : vector<8x1xi32> to vector<8x128xi32>
    %416 = arith.cmpi eq, %0, %415 : vector<8x128xi32>
    %417 = arith.extui %416 : vector<8x128xi1> to vector<8x128xi32>
    %418 = arith.sitofp %417 : vector<8x128xi32> to vector<8x128xf32>
    %419 = arith.truncf %418 : vector<8x128xf32> to vector<8x128xbf16>
    %cst_107 = arith.constant dense<0.000000e+00> : vector<8x512xf32>
    %420 = tpu.matmul %419, %4, %cst_107 {dimension_numbers = #tpu.dot_dimension_numbers<[1], [0], [0], [1], [0, 0, 1, 1], [], []>} : vector<8x128xbf16>, vector<128x512xbf16>, vector<8x512xf32> -> vector<8x512xf32>
    %c7_i32 = arith.constant 7 : i32
    return
  }
}

module attributes {stable_mosaic.version = 11 : i64} {
  func.func @_encoder_kernel(%arg0: memref<6x8x512xf32, #tpu.memory_space<vmem>>, %arg1: memref<128x512xbf16, #tpu.memory_space<vmem>>, %arg2: memref<8x128xf32, #tpu.memory_space<vmem>>, %arg3: memref<8x128xf32, #tpu.memory_space<vmem>>) attributes {dimension_semantics = [], scalar_prefetch = 0 : i64, scratch_operands = 0 : i64, tpu.core_type = #tpu.core_type<tc>} {
    %c0 = arith.constant 0 : index
    %c0_0 = arith.constant 0 : index
    %0 = vector.load %arg1[%c0, %c0_0] : memref<128x512xbf16, #tpu.memory_space<vmem>>, vector<128x512xbf16>
    %cst = arith.constant 0.000000e+00 : f32
    %1 = vector.broadcast %cst : f32 to vector<8x128xf32>
    %cst_1 = arith.constant 0.000000e+00 : f32
    %2 = vector.broadcast %cst_1 : f32 to vector<8x128xf32>
    %c0_i32 = arith.constant 0 : i32
    %3 = arith.index_cast %c0_i32 : i32 to index
    %c0_2 = arith.constant 0 : index
    %c0_3 = arith.constant 0 : index
    %4 = vector.load %arg0[%3, %c0_2, %c0_3] : memref<6x8x512xf32, #tpu.memory_space<vmem>>, vector<1x8x512xf32>
    %5 = vector.shape_cast %4 : vector<1x8x512xf32> to vector<8x512xf32>
    %6 = arith.truncf %1 : vector<8x128xf32> to vector<8x128xbf16>
    %cst_4 = arith.constant dense<0.000000e+00> : vector<8x512xf32>
    %7 = tpu.matmul %6, %0, %cst_4 {dimension_numbers = #tpu.dot_dimension_numbers<[1], [0], [0], [1], [0, 0, 1, 1], [], []>} : vector<8x128xbf16>, vector<128x512xbf16>, vector<8x512xf32> -> vector<8x512xf32>
    %8 = arith.addf %5, %7 : vector<8x512xf32>
    %9 = vector.extract_strided_slice %8 {offsets = [0, 0], sizes = [8, 128], strides = [1, 1]} : vector<8x512xf32> to vector<8x128xf32>
    %10 = arith.negf %9 : vector<8x128xf32>
    %11 = math.exp %10 : vector<8x128xf32>
    %cst_5 = arith.constant 1.000000e+00 : f32
    %12 = vector.broadcast %cst_5 : f32 to vector<8x128xf32>
    %13 = arith.addf %12, %11 : vector<8x128xf32>
    %14 = arith.divf %12, %13 : vector<8x128xf32>
    %15 = vector.extract_strided_slice %8 {offsets = [0, 128], sizes = [8, 128], strides = [1, 1]} : vector<8x512xf32> to vector<8x128xf32>
    %16 = arith.negf %15 : vector<8x128xf32>
    %17 = math.exp %16 : vector<8x128xf32>
    %cst_6 = arith.constant 1.000000e+00 : f32
    %18 = vector.broadcast %cst_6 : f32 to vector<8x128xf32>
    %19 = arith.addf %18, %17 : vector<8x128xf32>
    %20 = arith.divf %18, %19 : vector<8x128xf32>
    %21 = vector.extract_strided_slice %8 {offsets = [0, 256], sizes = [8, 128], strides = [1, 1]} : vector<8x512xf32> to vector<8x128xf32>
    %22 = arith.negf %21 : vector<8x128xf32>
    %23 = math.exp %22 : vector<8x128xf32>
    %cst_7 = arith.constant 1.000000e+00 : f32
    %24 = vector.broadcast %cst_7 : f32 to vector<8x128xf32>
    %25 = arith.addf %24, %23 : vector<8x128xf32>
    %26 = arith.divf %24, %25 : vector<8x128xf32>
    %27 = vector.extract_strided_slice %8 {offsets = [0, 384], sizes = [8, 128], strides = [1, 1]} : vector<8x512xf32> to vector<8x128xf32>
    %28 = math.tanh %27 : vector<8x128xf32>
    %29 = arith.mulf %20, %2 : vector<8x128xf32>
    %30 = arith.mulf %14, %28 : vector<8x128xf32>
    %31 = arith.addf %29, %30 : vector<8x128xf32>
    %32 = math.tanh %31 : vector<8x128xf32>
    %33 = arith.mulf %26, %32 : vector<8x128xf32>
    %c1_i32 = arith.constant 1 : i32
    %34 = arith.index_cast %c1_i32 : i32 to index
    %c0_8 = arith.constant 0 : index
    %c0_9 = arith.constant 0 : index
    %35 = vector.load %arg0[%34, %c0_8, %c0_9] : memref<6x8x512xf32, #tpu.memory_space<vmem>>, vector<1x8x512xf32>
    %36 = vector.shape_cast %35 : vector<1x8x512xf32> to vector<8x512xf32>
    %37 = arith.truncf %33 : vector<8x128xf32> to vector<8x128xbf16>
    %cst_10 = arith.constant dense<0.000000e+00> : vector<8x512xf32>
    %38 = tpu.matmul %37, %0, %cst_10 {dimension_numbers = #tpu.dot_dimension_numbers<[1], [0], [0], [1], [0, 0, 1, 1], [], []>} : vector<8x128xbf16>, vector<128x512xbf16>, vector<8x512xf32> -> vector<8x512xf32>
    %39 = arith.addf %36, %38 : vector<8x512xf32>
    %40 = vector.extract_strided_slice %39 {offsets = [0, 0], sizes = [8, 128], strides = [1, 1]} : vector<8x512xf32> to vector<8x128xf32>
    %41 = arith.negf %40 : vector<8x128xf32>
    %42 = math.exp %41 : vector<8x128xf32>
    %cst_11 = arith.constant 1.000000e+00 : f32
    %43 = vector.broadcast %cst_11 : f32 to vector<8x128xf32>
    %44 = arith.addf %43, %42 : vector<8x128xf32>
    %45 = arith.divf %43, %44 : vector<8x128xf32>
    %46 = vector.extract_strided_slice %39 {offsets = [0, 128], sizes = [8, 128], strides = [1, 1]} : vector<8x512xf32> to vector<8x128xf32>
    %47 = arith.negf %46 : vector<8x128xf32>
    %48 = math.exp %47 : vector<8x128xf32>
    %cst_12 = arith.constant 1.000000e+00 : f32
    %49 = vector.broadcast %cst_12 : f32 to vector<8x128xf32>
    %50 = arith.addf %49, %48 : vector<8x128xf32>
    %51 = arith.divf %49, %50 : vector<8x128xf32>
    %52 = vector.extract_strided_slice %39 {offsets = [0, 256], sizes = [8, 128], strides = [1, 1]} : vector<8x512xf32> to vector<8x128xf32>
    %53 = arith.negf %52 : vector<8x128xf32>
    %54 = math.exp %53 : vector<8x128xf32>
    %cst_13 = arith.constant 1.000000e+00 : f32
    %55 = vector.broadcast %cst_13 : f32 to vector<8x128xf32>
    %56 = arith.addf %55, %54 : vector<8x128xf32>
    %57 = arith.divf %55, %56 : vector<8x128xf32>
    %58 = vector.extract_strided_slice %39 {offsets = [0, 384], sizes = [8, 128], strides = [1, 1]} : vector<8x512xf32> to vector<8x128xf32>
    %59 = math.tanh %58 : vector<8x128xf32>
    %60 = arith.mulf %51, %31 : vector<8x128xf32>
    %61 = arith.mulf %45, %59 : vector<8x128xf32>
    %62 = arith.addf %60, %61 : vector<8x128xf32>
    %63 = math.tanh %62 : vector<8x128xf32>
    %64 = arith.mulf %57, %63 : vector<8x128xf32>
    %c2_i32 = arith.constant 2 : i32
    %65 = arith.index_cast %c2_i32 : i32 to index
    %c0_14 = arith.constant 0 : index
    %c0_15 = arith.constant 0 : index
    %66 = vector.load %arg0[%65, %c0_14, %c0_15] : memref<6x8x512xf32, #tpu.memory_space<vmem>>, vector<1x8x512xf32>
    %67 = vector.shape_cast %66 : vector<1x8x512xf32> to vector<8x512xf32>
    %68 = arith.truncf %64 : vector<8x128xf32> to vector<8x128xbf16>
    %cst_16 = arith.constant dense<0.000000e+00> : vector<8x512xf32>
    %69 = tpu.matmul %68, %0, %cst_16 {dimension_numbers = #tpu.dot_dimension_numbers<[1], [0], [0], [1], [0, 0, 1, 1], [], []>} : vector<8x128xbf16>, vector<128x512xbf16>, vector<8x512xf32> -> vector<8x512xf32>
    %70 = arith.addf %67, %69 : vector<8x512xf32>
    %71 = vector.extract_strided_slice %70 {offsets = [0, 0], sizes = [8, 128], strides = [1, 1]} : vector<8x512xf32> to vector<8x128xf32>
    %72 = arith.negf %71 : vector<8x128xf32>
    %73 = math.exp %72 : vector<8x128xf32>
    %cst_17 = arith.constant 1.000000e+00 : f32
    %74 = vector.broadcast %cst_17 : f32 to vector<8x128xf32>
    %75 = arith.addf %74, %73 : vector<8x128xf32>
    %76 = arith.divf %74, %75 : vector<8x128xf32>
    %77 = vector.extract_strided_slice %70 {offsets = [0, 128], sizes = [8, 128], strides = [1, 1]} : vector<8x512xf32> to vector<8x128xf32>
    %78 = arith.negf %77 : vector<8x128xf32>
    %79 = math.exp %78 : vector<8x128xf32>
    %cst_18 = arith.constant 1.000000e+00 : f32
    %80 = vector.broadcast %cst_18 : f32 to vector<8x128xf32>
    %81 = arith.addf %80, %79 : vector<8x128xf32>
    %82 = arith.divf %80, %81 : vector<8x128xf32>
    %83 = vector.extract_strided_slice %70 {offsets = [0, 256], sizes = [8, 128], strides = [1, 1]} : vector<8x512xf32> to vector<8x128xf32>
    %84 = arith.negf %83 : vector<8x128xf32>
    %85 = math.exp %84 : vector<8x128xf32>
    %cst_19 = arith.constant 1.000000e+00 : f32
    %86 = vector.broadcast %cst_19 : f32 to vector<8x128xf32>
    %87 = arith.addf %86, %85 : vector<8x128xf32>
    %88 = arith.divf %86, %87 : vector<8x128xf32>
    %89 = vector.extract_strided_slice %70 {offsets = [0, 384], sizes = [8, 128], strides = [1, 1]} : vector<8x512xf32> to vector<8x128xf32>
    %90 = math.tanh %89 : vector<8x128xf32>
    %91 = arith.mulf %82, %62 : vector<8x128xf32>
    %92 = arith.mulf %76, %90 : vector<8x128xf32>
    %93 = arith.addf %91, %92 : vector<8x128xf32>
    %94 = math.tanh %93 : vector<8x128xf32>
    %95 = arith.mulf %88, %94 : vector<8x128xf32>
    %c3_i32 = arith.constant 3 : i32
    %96 = arith.index_cast %c3_i32 : i32 to index
    %c0_20 = arith.constant 0 : index
    %c0_21 = arith.constant 0 : index
    %97 = vector.load %arg0[%96, %c0_20, %c0_21] : memref<6x8x512xf32, #tpu.memory_space<vmem>>, vector<1x8x512xf32>
    %98 = vector.shape_cast %97 : vector<1x8x512xf32> to vector<8x512xf32>
    %99 = arith.truncf %95 : vector<8x128xf32> to vector<8x128xbf16>
    %cst_22 = arith.constant dense<0.000000e+00> : vector<8x512xf32>
    %100 = tpu.matmul %99, %0, %cst_22 {dimension_numbers = #tpu.dot_dimension_numbers<[1], [0], [0], [1], [0, 0, 1, 1], [], []>} : vector<8x128xbf16>, vector<128x512xbf16>, vector<8x512xf32> -> vector<8x512xf32>
    %101 = arith.addf %98, %100 : vector<8x512xf32>
    %102 = vector.extract_strided_slice %101 {offsets = [0, 0], sizes = [8, 128], strides = [1, 1]} : vector<8x512xf32> to vector<8x128xf32>
    %103 = arith.negf %102 : vector<8x128xf32>
    %104 = math.exp %103 : vector<8x128xf32>
    %cst_23 = arith.constant 1.000000e+00 : f32
    %105 = vector.broadcast %cst_23 : f32 to vector<8x128xf32>
    %106 = arith.addf %105, %104 : vector<8x128xf32>
    %107 = arith.divf %105, %106 : vector<8x128xf32>
    %108 = vector.extract_strided_slice %101 {offsets = [0, 128], sizes = [8, 128], strides = [1, 1]} : vector<8x512xf32> to vector<8x128xf32>
    %109 = arith.negf %108 : vector<8x128xf32>
    %110 = math.exp %109 : vector<8x128xf32>
    %cst_24 = arith.constant 1.000000e+00 : f32
    %111 = vector.broadcast %cst_24 : f32 to vector<8x128xf32>
    %112 = arith.addf %111, %110 : vector<8x128xf32>
    %113 = arith.divf %111, %112 : vector<8x128xf32>
    %114 = vector.extract_strided_slice %101 {offsets = [0, 256], sizes = [8, 128], strides = [1, 1]} : vector<8x512xf32> to vector<8x128xf32>
    %115 = arith.negf %114 : vector<8x128xf32>
    %116 = math.exp %115 : vector<8x128xf32>
    %cst_25 = arith.constant 1.000000e+00 : f32
    %117 = vector.broadcast %cst_25 : f32 to vector<8x128xf32>
    %118 = arith.addf %117, %116 : vector<8x128xf32>
    %119 = arith.divf %117, %118 : vector<8x128xf32>
    %120 = vector.extract_strided_slice %101 {offsets = [0, 384], sizes = [8, 128], strides = [1, 1]} : vector<8x512xf32> to vector<8x128xf32>
    %121 = math.tanh %120 : vector<8x128xf32>
    %122 = arith.mulf %113, %93 : vector<8x128xf32>
    %123 = arith.mulf %107, %121 : vector<8x128xf32>
    %124 = arith.addf %122, %123 : vector<8x128xf32>
    %125 = math.tanh %124 : vector<8x128xf32>
    %126 = arith.mulf %119, %125 : vector<8x128xf32>
    %c4_i32 = arith.constant 4 : i32
    %127 = arith.index_cast %c4_i32 : i32 to index
    %c0_26 = arith.constant 0 : index
    %c0_27 = arith.constant 0 : index
    %128 = vector.load %arg0[%127, %c0_26, %c0_27] : memref<6x8x512xf32, #tpu.memory_space<vmem>>, vector<1x8x512xf32>
    %129 = vector.shape_cast %128 : vector<1x8x512xf32> to vector<8x512xf32>
    %130 = arith.truncf %126 : vector<8x128xf32> to vector<8x128xbf16>
    %cst_28 = arith.constant dense<0.000000e+00> : vector<8x512xf32>
    %131 = tpu.matmul %130, %0, %cst_28 {dimension_numbers = #tpu.dot_dimension_numbers<[1], [0], [0], [1], [0, 0, 1, 1], [], []>} : vector<8x128xbf16>, vector<128x512xbf16>, vector<8x512xf32> -> vector<8x512xf32>
    %132 = arith.addf %129, %131 : vector<8x512xf32>
    %133 = vector.extract_strided_slice %132 {offsets = [0, 0], sizes = [8, 128], strides = [1, 1]} : vector<8x512xf32> to vector<8x128xf32>
    %134 = arith.negf %133 : vector<8x128xf32>
    %135 = math.exp %134 : vector<8x128xf32>
    %cst_29 = arith.constant 1.000000e+00 : f32
    %136 = vector.broadcast %cst_29 : f32 to vector<8x128xf32>
    %137 = arith.addf %136, %135 : vector<8x128xf32>
    %138 = arith.divf %136, %137 : vector<8x128xf32>
    %139 = vector.extract_strided_slice %132 {offsets = [0, 128], sizes = [8, 128], strides = [1, 1]} : vector<8x512xf32> to vector<8x128xf32>
    %140 = arith.negf %139 : vector<8x128xf32>
    %141 = math.exp %140 : vector<8x128xf32>
    %cst_30 = arith.constant 1.000000e+00 : f32
    %142 = vector.broadcast %cst_30 : f32 to vector<8x128xf32>
    %143 = arith.addf %142, %141 : vector<8x128xf32>
    %144 = arith.divf %142, %143 : vector<8x128xf32>
    %145 = vector.extract_strided_slice %132 {offsets = [0, 256], sizes = [8, 128], strides = [1, 1]} : vector<8x512xf32> to vector<8x128xf32>
    %146 = arith.negf %145 : vector<8x128xf32>
    %147 = math.exp %146 : vector<8x128xf32>
    %cst_31 = arith.constant 1.000000e+00 : f32
    %148 = vector.broadcast %cst_31 : f32 to vector<8x128xf32>
    %149 = arith.addf %148, %147 : vector<8x128xf32>
    %150 = arith.divf %148, %149 : vector<8x128xf32>
    %151 = vector.extract_strided_slice %132 {offsets = [0, 384], sizes = [8, 128], strides = [1, 1]} : vector<8x512xf32> to vector<8x128xf32>
    %152 = math.tanh %151 : vector<8x128xf32>
    %153 = arith.mulf %144, %124 : vector<8x128xf32>
    %154 = arith.mulf %138, %152 : vector<8x128xf32>
    %155 = arith.addf %153, %154 : vector<8x128xf32>
    %156 = math.tanh %155 : vector<8x128xf32>
    %157 = arith.mulf %150, %156 : vector<8x128xf32>
    %c5_i32 = arith.constant 5 : i32
    %158 = arith.index_cast %c5_i32 : i32 to index
    %c0_32 = arith.constant 0 : index
    %c0_33 = arith.constant 0 : index
    %159 = vector.load %arg0[%158, %c0_32, %c0_33] : memref<6x8x512xf32, #tpu.memory_space<vmem>>, vector<1x8x512xf32>
    %160 = vector.shape_cast %159 : vector<1x8x512xf32> to vector<8x512xf32>
    %161 = arith.truncf %157 : vector<8x128xf32> to vector<8x128xbf16>
    %cst_34 = arith.constant dense<0.000000e+00> : vector<8x512xf32>
    %162 = tpu.matmul %161, %0, %cst_34 {dimension_numbers = #tpu.dot_dimension_numbers<[1], [0], [0], [1], [0, 0, 1, 1], [], []>} : vector<8x128xbf16>, vector<128x512xbf16>, vector<8x512xf32> -> vector<8x512xf32>
    %163 = arith.addf %160, %162 : vector<8x512xf32>
    %164 = vector.extract_strided_slice %163 {offsets = [0, 0], sizes = [8, 128], strides = [1, 1]} : vector<8x512xf32> to vector<8x128xf32>
    %165 = arith.negf %164 : vector<8x128xf32>
    %166 = math.exp %165 : vector<8x128xf32>
    %cst_35 = arith.constant 1.000000e+00 : f32
    %167 = vector.broadcast %cst_35 : f32 to vector<8x128xf32>
    %168 = arith.addf %167, %166 : vector<8x128xf32>
    %169 = arith.divf %167, %168 : vector<8x128xf32>
    %170 = vector.extract_strided_slice %163 {offsets = [0, 128], sizes = [8, 128], strides = [1, 1]} : vector<8x512xf32> to vector<8x128xf32>
    %171 = arith.negf %170 : vector<8x128xf32>
    %172 = math.exp %171 : vector<8x128xf32>
    %cst_36 = arith.constant 1.000000e+00 : f32
    %173 = vector.broadcast %cst_36 : f32 to vector<8x128xf32>
    %174 = arith.addf %173, %172 : vector<8x128xf32>
    %175 = arith.divf %173, %174 : vector<8x128xf32>
    %176 = vector.extract_strided_slice %163 {offsets = [0, 256], sizes = [8, 128], strides = [1, 1]} : vector<8x512xf32> to vector<8x128xf32>
    %177 = arith.negf %176 : vector<8x128xf32>
    %178 = math.exp %177 : vector<8x128xf32>
    %cst_37 = arith.constant 1.000000e+00 : f32
    %179 = vector.broadcast %cst_37 : f32 to vector<8x128xf32>
    %180 = arith.addf %179, %178 : vector<8x128xf32>
    %181 = arith.divf %179, %180 : vector<8x128xf32>
    %182 = vector.extract_strided_slice %163 {offsets = [0, 384], sizes = [8, 128], strides = [1, 1]} : vector<8x512xf32> to vector<8x128xf32>
    %183 = math.tanh %182 : vector<8x128xf32>
    %184 = arith.mulf %175, %155 : vector<8x128xf32>
    %185 = arith.mulf %169, %183 : vector<8x128xf32>
    %186 = arith.addf %184, %185 : vector<8x128xf32>
    %187 = math.tanh %186 : vector<8x128xf32>
    %188 = arith.mulf %181, %187 : vector<8x128xf32>
    %c6_i32 = arith.constant 6 : i32
    %c0_38 = arith.constant 0 : index
    %c0_39 = arith.constant 0 : index
    %189 = vector.load %arg2[%c0_38, %c0_39] : memref<8x128xf32, #tpu.memory_space<vmem>>, vector<8x128xf32>
    tpu.vector_store %arg2[%c0_38, %c0_39], %188 {strides = array<i32>} : memref<8x128xf32, #tpu.memory_space<vmem>>, vector<8x128xf32>,
    %c0_40 = arith.constant 0 : index
    %c0_41 = arith.constant 0 : index
    %190 = vector.load %arg3[%c0_40, %c0_41] : memref<8x128xf32, #tpu.memory_space<vmem>>, vector<8x128xf32>
    tpu.vector_store %arg3[%c0_40, %c0_41], %186 {strides = array<i32>} : memref<8x128xf32, #tpu.memory_space<vmem>>, vector<8x128xf32>,
    return
  }
}

</mosaic_0001>

<bundles_post_ra>
// kernel: _forward.2
= control target key start
LH: loop header
LB: loop body
LE: loop exit
PB: predicated region body
PF: predicated region fallthrough
CT: control target
= control target key end

     0   :  { %v1125_v1 = vmov 0   ;;  %s1606_s1 = inlined_call_operand.vmem [shape: bf16[128,512], index: 1, kind: input, shape index: {}]   ;;  %s1607_s0 = inlined_call_operand.vmem [shape: f32[6,8,512], index: 0, kind: input, shape index: {}]   ;;  %s1608_s3 = inlined_call_operand.vmem [shape: f32[8,128], index: 3, kind: output, shape index: {1}]   ;;  %s1609_s2 = inlined_call_operand.vmem [shape: f32[8,128], index: 2, kind: output, shape index: {0}]  }
   0x1   :  { %v1149_v0 = vld [vmem:[%s1606_s1 + $0x4] ss:$16 sps:$4 sm:$0xff]   ;;  %242 = vmatprep.mubr.bf16.mxu0 %v1125_v1  ;;  %283 = vmatprep.mubr.bf16.mxu1 %v1125_v1  ;;  %v1156_v2 = vld [vmem:[%s1606_s1] ss:$16 sps:$4 sm:$0xff]   ;;  %v1179_v6 = vld [vmem:[%s1606_s1 + $0xc] ss:$16 sps:$4 sm:$0xff]  }
   0x2   :  { %210 = vmatprep.subr.bf16.mxu0 %v1149_v0  ;;  %v1162_v3 = vld [vmem:[%s1606_s1 + $0x24] ss:$16 sps:$4 sm:$0xff]   ;;  %v1168_v4 = vld [vmem:[%s1606_s1 + $0x20] ss:$16 sps:$4 sm:$0xff]   ;;  %v1184_v7 = vld [vmem:[%s1606_s1 + $0x8] ss:$16 sps:$4 sm:$0xff]   ;;  %251 = vmatprep.subr.bf16.mxu1 %v1179_v6 }
   0x3   :  { %211 = vmatpush1.bf16.msra.mxu0 %v1156_v2  ;;  %v1174_v5 = vld [vmem:[%s1606_s1 + $0x44] ss:$16 sps:$4 sm:$0xff]   ;;  %v1190_v8 = vld [vmem:[%s1606_s1 + $0x40] ss:$16 sps:$4 sm:$0xff]   ;;  %252 = vmatpush1.bf16.msra.mxu1 %v1184_v7  ;;  %v1203_v10 = vld [vmem:[%s1606_s1 + $0x2c] ss:$16 sps:$4 sm:$0xff]  }
   0x4   :  { %212 = vmatprep.subr.bf16.mxu0 %v1162_v3  ;;  %v1197_v9 = vld [vmem:[%s1606_s1 + $0x64] ss:$16 sps:$4 sm:$0xff]   ;;  %v1208_v11 = vld [vmem:[%s1606_s1 + $0x28] ss:$16 sps:$4 sm:$0xff]   ;;  %253 = vmatprep.subr.bf16.mxu1 %v1203_v10  ;;  %v1215_v12 = vld [vmem:[%s1606_s1 + $0x60] ss:$16 sps:$4 sm:$0xff]  }
   0x5   :  { %v1220_v13 = vld [vmem:[%s1606_s1 + $0x84] ss:$16 sps:$4 sm:$0xff]   ;;  %v1225_v14 = vld [vmem:[%s1606_s1 + $0x4c] ss:$16 sps:$4 sm:$0xff]   ;;  %v1232_v15 = vld [vmem:[%s1606_s1 + $0x48] ss:$16 sps:$4 sm:$0xff]  }
   0x6   :  { %v1238_v16 = vld [vmem:[%s1606_s1 + $0x6c] ss:$16 sps:$4 sm:$0xff]   ;;  %v1244_v17 = vld [vmem:[%s1606_s1 + $0x80] ss:$16 sps:$4 sm:$0xff]   ;;  %v1250_v18 = vld [vmem:[%s1606_s1 + $0xa4] ss:$16 sps:$4 sm:$0xff]  }
   0x7   :  { %213 = vmatpush1.bf16.msra.mxu0 %v1168_v4  ;;  %254 = vmatpush1.bf16.msra.mxu1 %v1208_v11  ;;  %v1256_v19 = vld [vmem:[%s1606_s1 + $0x68] ss:$16 sps:$4 sm:$0xff]   ;;  %v1262_v20 = vld [vmem:[%s1606_s1 + $0x8c] ss:$16 sps:$4 sm:$0xff]   ;;  %v1268_v21 = vld [vmem:[%s1606_s1 + $0xa0] ss:$16 sps:$4 sm:$0xff]  }
   0x8   :  { %214 = vmatprep.subr.bf16.mxu0 %v1174_v5  ;;  %255 = vmatprep.subr.bf16.mxu1 %v1225_v14  ;;  %v1273_v22 = vld [vmem:[%s1606_s1 + $0xc4] ss:$16 sps:$4 sm:$0xff]   ;;  %v1280_v23 = vld [vmem:[%s1606_s1 + $0x88] ss:$16 sps:$4 sm:$0xff]   ;;  %v1286_v24 = vld [vmem:[%s1606_s1 + $0xac] ss:$16 sps:$4 sm:$0xff]  }
   0x9   :  { %v1292_v25 = vld [vmem:[%s1606_s1 + $0xc0] ss:$16 sps:$4 sm:$0xff]   ;;  %v1298_v26 = vld [vmem:[%s1606_s1 + $0xe4] ss:$16 sps:$4 sm:$0xff]   ;;  %v1304_v27 = vld [vmem:[%s1606_s1 + $0xa8] ss:$16 sps:$4 sm:$0xff]  }
   0xa   :  { %v1310_v28 = vld [vmem:[%s1606_s1 + $0xcc] ss:$16 sps:$4 sm:$0xff]   ;;  %v1316_v29 = vld [vmem:[%s1606_s1 + $0xe0] ss:$16 sps:$4 sm:$0xff]   ;;  %v1323_v30 = vld [vmem:[%s1606_s1 + $0xc8] ss:$16 sps:$4 sm:$0xff]  }
   0xb   :  { %215 = vmatpush1.bf16.msra.mxu0 %v1190_v8  ;;  %256 = vmatpush1.bf16.msra.mxu1 %v1232_v15  ;;  %v1329_v31 = vld [vmem:[%s1606_s1 + $0xec] ss:$16 sps:$4 sm:$0xff]   ;;  %v1336_v32 = vld [vmem:[%s1606_s1 + $0xe8] ss:$16 sps:$4 sm:$0xff]   ;;  %v46_v33 = vld [vmem:[%s1607_s0] sm:$0xff] }
   0xc   :  { %216 = vmatprep.subr.bf16.mxu0 %v1197_v9  ;;  %257 = vmatprep.subr.bf16.mxu1 %v1238_v16  ;;  %v47_v34 = vld [vmem:[%s1607_s0 + $0x8] sm:$0xff]  ;;  %v48_v43 = vld [vmem:[%s1607_s0 + $0x10] sm:$0xff]  ;;  %v49_v49 = vld [vmem:[%s1607_s0 + $0x18] sm:$0xff] }
   0xf   :  { %217 = vmatpush1.bf16.msra.mxu0 %v1215_v12  ;;  %258 = vmatpush1.bf16.msra.mxu1 %v1256_v19 }
  0x10   :  { %218 = vmatprep.subr.bf16.mxu0 %v1220_v13  ;;  %259 = vmatprep.subr.bf16.mxu1 %v1262_v20 }
  0x13   :  { %219 = vmatpush1.bf16.msra.mxu0 %v1244_v17  ;;  %260 = vmatpush1.bf16.msra.mxu1 %v1280_v23 }
  0x14   :  { %220 = vmatprep.subr.bf16.mxu0 %v1250_v18  ;;  %261 = vmatprep.subr.bf16.mxu1 %v1286_v24 }
  0x17   :  { %221 = vmatpush1.bf16.msra.mxu0 %v1268_v21  ;;  %262 = vmatpush1.bf16.msra.mxu1 %v1304_v27 }
  0x18   :  { %222 = vmatprep.subr.bf16.mxu0 %v1273_v22  ;;  %263 = vmatprep.subr.bf16.mxu1 %v1310_v28 }
  0x1b   :  { %223 = vmatpush1.bf16.msra.mxu0 %v1292_v25  ;;  %264 = vmatpush1.bf16.msra.mxu1 %v1323_v30 }
  0x1c   :  { %224 = vmatprep.subr.bf16.mxu0 %v1298_v26  ;;  %265 = vmatprep.subr.bf16.mxu1 %v1329_v31 }
  0x1f   :  { %225 = vmatpush1.bf16.msra.mxu0 %v1316_v29  ;;  %266 = vmatpush1.bf16.msra.mxu1 %v1336_v32 }
  0x20   :  { %326 = vmatprep.subr.bf16.mxu0 %v1149_v0  ;;  %367 = vmatprep.subr.bf16.mxu1 %v1179_v6 }
  0x22   :  { %243 = vmatmul.mubr.bf16.vlgmr.msra.gmra.mrb[0].mxu0 %v1125_v1  ;;  %284 = vmatmul.mubr.bf16.vlgmr.msra.gmra.mrb[0].mxu1 %v1125_v1 }
  0x23   :  { %327 = vmatpush1.bf16.msra.mxu0 %v1156_v2  ;;  %358 = vmatprep.mubr.bf16.mxu0 %v1125_v1 }
  0x24   :  { %328 = vmatprep.subr.bf16.mxu0 %v1162_v3  ;;  %368 = vmatpush1.bf16.msra.mxu1 %v1184_v7 }
  0x25   :  { %369 = vmatprep.subr.bf16.mxu1 %v1203_v10  ;;  %399 = vmatprep.mubr.bf16.mxu1 %v1125_v1 }
  0x27   :  { %329 = vmatpush1.bf16.msra.mxu0 %v1168_v4 }
  0x28   :  { %330 = vmatprep.subr.bf16.mxu0 %v1174_v5  ;;  %370 = vmatpush1.bf16.msra.mxu1 %v1208_v11 }
  0x29   :  { %371 = vmatprep.subr.bf16.mxu1 %v1225_v14 }
  0x2b   :  { %331 = vmatpush1.bf16.msra.mxu0 %v1190_v8 }
  0x2c   :  { %332 = vmatprep.subr.bf16.mxu0 %v1197_v9  ;;  %372 = vmatpush1.bf16.msra.mxu1 %v1232_v15 }
  0x2d   :  { %373 = vmatprep.subr.bf16.mxu1 %v1238_v16 }
  0x2f   :  { %333 = vmatpush1.bf16.msra.mxu0 %v1215_v12 }
  0x30   :  { %334 = vmatprep.subr.bf16.mxu0 %v1220_v13  ;;  %374 = vmatpush1.bf16.msra.mxu1 %v1256_v19 }
  0x31   :  { %375 = vmatprep.subr.bf16.mxu1 %v1262_v20 }
  0x33   :  { %335 = vmatpush1.bf16.msra.mxu0 %v1244_v17 }
  0x34   :  { %336 = vmatprep.subr.bf16.mxu0 %v1250_v18  ;;  %376 = vmatpush1.bf16.msra.mxu1 %v1280_v23 }
  0x35   :  { %377 = vmatprep.subr.bf16.mxu1 %v1286_v24 }
  0x37   :  { %337 = vmatpush1.bf16.msra.mxu0 %v1268_v21 }
  0x38   :  { %338 = vmatprep.subr.bf16.mxu0 %v1273_v22  ;;  %378 = vmatpush1.bf16.msra.mxu1 %v1304_v27 }
  0x39   :  { %379 = vmatprep.subr.bf16.mxu1 %v1310_v28 }
  0x3b   :  { %339 = vmatpush1.bf16.msra.mxu0 %v1292_v25 }
  0x3c   :  { %340 = vmatprep.subr.bf16.mxu0 %v1298_v26  ;;  %380 = vmatpush1.bf16.msra.mxu1 %v1323_v30 }
  0x3d   :  { %381 = vmatprep.subr.bf16.mxu1 %v1329_v31 }
  0x3f   :  { %341 = vmatpush1.bf16.msra.mxu0 %v1316_v29 }
  0x40   :  { %442 = vmatprep.subr.bf16.mxu0 %v1149_v0  ;;  %382 = vmatpush1.bf16.msra.mxu1 %v1336_v32 }
  0x41   :  { %483 = vmatprep.subr.bf16.mxu1 %v1179_v6 }
  0xf5   :  { %v244_v35 = vpop.f32.mrb[0].mxu0  ;;  %v285_v44 = vpop.f32.mrb[0].mxu1 }
  0xf6   :  { %v292_v36 = vadd.f32 %v244_v35, %v46_v33  ;;  %v246_v37 = vpop.f32.mrb[1].mxu0  ;;  %v287_v45 = vpop.f32.mrb[1].mxu1  ;;  %v294_v46 = vadd.f32 %v285_v44, %v48_v43 }
  0xf7   :  { %v293_v38 = vadd.f32 %v246_v37, %v47_v34  ;;  %v248_v39 = vpop.f32.mrb[2].mxu0  ;;  %v289_v47 = vpop.f32.mrb[2].mxu1  ;;  %v295_v51 = vadd.f32 %v287_v45, %v49_v49  ;;  %v945_v37 = vld [vmem:[%s1607_s0 + $0x20] sm:$0xff] }
  0xf8   :  { %v942_v40 = vmul.f32 -1.442695, %v292_v36  ;;  %v249_v41 = vpop.f32.mrb[3].mxu0  ;;  %v290_v48 = vpop.f32.mrb[3].mxu1  ;;  %v944_v50 = vmul.f32 -1.442695, %v294_v46 }
  0xf9   :  { %v943_v42 = vmul.f32 -1.442695, %v293_v38  ;;  %v946_v38 = vld [vmem:[%s1607_s0 + $0x28] sm:$0xff] }
  0xfa   :  { %1029 = vpow2.f32 %v942_v40 }
  0xfb   :  { %1031 = vpow2.f32 %v943_v42 }
  0xfc   :  { %1033 = vpow2.f32 %v944_v50 }
  0xfd   :  { %1035 = vtanh.f32 %v295_v51  ;;  %v947_v51 = vld [vmem:[%s1607_s0 + $0x30] sm:$0xff] }
 0x104   :  { %v1030_v52 = vpop.eup %1029 }
 0x105   :  { %v1032_v53 = vpop.eup %1031  ;;  %v299_v54 = vadd.f32 1.0, %v1030_v52 }
 0x106   :  { %v305_v55 = vadd.f32 1.0, %v1032_v53  ;;  %v1034_v56 = vpop.eup %1033  ;;  %v948_v53 = vld [vmem:[%s1607_s0 + $0x38] sm:$0xff] }
 0x107   :  { %1037 = vrcp.f32 %v299_v54  ;;  %v1036_v57 = vpop.eup %1035  ;;  %v311_v59 = vadd.f32 1.0, %v1034_v56 }
 0x108   :  { %1039 = vrcp.f32 %v305_v55 }
 0x109   :  { %1041 = vrcp.f32 %v311_v59 }
 0x111   :  { %v1038_v58 = vpop.eup %1037 }
 0x112   :  { %v1040_v60 = vpop.eup %1039  ;;  %v316_v61 = vmul.f32 %v1038_v58, %v1036_v57 }
 0x113   :  { %v315_v62 = vmul.f32 0.0, %v1040_v60  ;;  %v1042_v33 = vpop.eup %1041 }
 0x115   :  { %v1390_v63 = vadd.f32 %v316_v61, %v315_v62 }
 0x117   :  { %1043 = vtanh.f32 %v1390_v63 }
 0x121   :  { %v1044_v34 = vpop.eup %1043 }
 0x122   :  { %v319_v35 = vmul.f32 %v1044_v34, %v1042_v33 }
 0x124   :  { %v325_v36 = vpack.c.bf16 %v319_v35, %v319_v35 }
 0x126   :  { %359 = vmatmul.mubr.bf16.vlgmr.msra.gmra.mrb[4].mxu0 %v325_v36  ;;  %400 = vmatmul.mubr.bf16.vlgmr.msra.gmra.mrb[4].mxu1 %v325_v36 }
 0x127   :  { %443 = vmatpush1.bf16.msra.mxu0 %v1156_v2  ;;  %484 = vmatpush1.bf16.msra.mxu1 %v1184_v7 }
 0x128   :  { %444 = vmatprep.subr.bf16.mxu0 %v1162_v3  ;;  %485 = vmatprep.subr.bf16.mxu1 %v1203_v10 }
 0x129   :  { %474 = vmatprep.mubr.bf16.mxu0 %v1125_v1  ;;  %515 = vmatprep.mubr.bf16.mxu1 %v1125_v1 }
 0x12b   :  { %445 = vmatpush1.bf16.msra.mxu0 %v1168_v4  ;;  %486 = vmatpush1.bf16.msra.mxu1 %v1208_v11 }
 0x12c   :  { %446 = vmatprep.subr.bf16.mxu0 %v1174_v5  ;;  %487 = vmatprep.subr.bf16.mxu1 %v1225_v14 }
 0x12f   :  { %447 = vmatpush1.bf16.msra.mxu0 %v1190_v8  ;;  %488 = vmatpush1.bf16.msra.mxu1 %v1232_v15 }
 0x130   :  { %448 = vmatprep.subr.bf16.mxu0 %v1197_v9  ;;  %489 = vmatprep.subr.bf16.mxu1 %v1238_v16 }
 0x133   :  { %449 = vmatpush1.bf16.msra.mxu0 %v1215_v12  ;;  %490 = vmatpush1.bf16.msra.mxu1 %v1256_v19 }
 0x134   :  { %450 = vmatprep.subr.bf16.mxu0 %v1220_v13  ;;  %491 = vmatprep.subr.bf16.mxu1 %v1262_v20 }
 0x137   :  { %451 = vmatpush1.bf16.msra.mxu0 %v1244_v17  ;;  %492 = vmatpush1.bf16.msra.mxu1 %v1280_v23 }
 0x138   :  { %452 = vmatprep.subr.bf16.mxu0 %v1250_v18  ;;  %493 = vmatprep.subr.bf16.mxu1 %v1286_v24 }
 0x13b   :  { %453 = vmatpush1.bf16.msra.mxu0 %v1268_v21  ;;  %494 = vmatpush1.bf16.msra.mxu1 %v1304_v27 }
 0x13c   :  { %454 = vmatprep.subr.bf16.mxu0 %v1273_v22  ;;  %495 = vmatprep.subr.bf16.mxu1 %v1310_v28 }
 0x13f   :  { %455 = vmatpush1.bf16.msra.mxu0 %v1292_v25  ;;  %496 = vmatpush1.bf16.msra.mxu1 %v1323_v30 }
 0x140   :  { %456 = vmatprep.subr.bf16.mxu0 %v1298_v26  ;;  %497 = vmatprep.subr.bf16.mxu1 %v1329_v31 }
 0x143   :  { %457 = vmatpush1.bf16.msra.mxu0 %v1316_v29  ;;  %498 = vmatpush1.bf16.msra.mxu1 %v1336_v32 }
 0x144   :  { %558 = vmatprep.subr.bf16.mxu0 %v1149_v0  ;;  %599 = vmatprep.subr.bf16.mxu1 %v1179_v6 }
 0x1f9   :  { %v360_v39 = vpop.f32.mrb[4].mxu0  ;;  %v401_v40 = vpop.f32.mrb[4].mxu1 }
 0x1fa   :  { %v408_v41 = vadd.f32 %v945_v37, %v360_v39  ;;  %v362_v42 = vpop.f32.mrb[5].mxu0  ;;  %v403_v43 = vpop.f32.mrb[5].mxu1  ;;  %v410_v52 = vadd.f32 %v947_v51, %v401_v40 }
 0x1fb   :  { %v409_v44 = vadd.f32 %v946_v38, %v362_v42  ;;  %v364_v45 = vpop.f32.mrb[6].mxu0  ;;  %v405_v46 = vpop.f32.mrb[6].mxu1  ;;  %v411_v54 = vadd.f32 %v948_v53, %v403_v43  ;;  %v953_v42 = vld [vmem:[%s1607_s0 + $0x48] sm:$0xff] }
 0x1fc   :  { %v949_v47 = vmul.f32 -1.442695, %v408_v41  ;;  %v365_v48 = vpop.f32.mrb[7].mxu0  ;;  %v406_v49 = vpop.f32.mrb[7].mxu1  ;;  %v951_v55 = vmul.f32 -1.442695, %v410_v52 }
 0x1fd   :  { %v950_v50 = vmul.f32 -1.442695, %v409_v44 }
 0x1fe   :  { %1045 = vpow2.f32 %v949_v47 }
 0x1ff   :  { %1047 = vpow2.f32 %v950_v50 }
 0x200   :  { %1049 = vtanh.f32 %v411_v54 }
 0x201   :  { %1051 = vpow2.f32 %v951_v55  ;;  %v954_v55 = vld [vmem:[%s1607_s0 + $0x50] sm:$0xff] }
 0x208   :  { %v1046_v56 = vpop.eup %1045 }
 0x209   :  { %v415_v57 = vadd.f32 1.0, %v1046_v56  ;;  %v1048_v58 = vpop.eup %1047 }
 0x20a   :  { %v421_v59 = vadd.f32 1.0, %v1048_v58  ;;  %v1050_v60 = vpop.eup %1049 }
 0x20b   :  { %1053 = vrcp.f32 %v415_v57  ;;  %v1052_v61 = vpop.eup %1051  ;;  %v955_v57 = vld [vmem:[%s1607_s0 + $0x58] sm:$0xff] }
 0x20c   :  { %1055 = vrcp.f32 %v421_v59  ;;  %v427_v35 = vadd.f32 1.0, %v1052_v61 }
 0x20e   :  { %1057 = vrcp.f32 %v427_v35 }
 0x215   :  { %v1054_v62 = vpop.eup %1053 }
 0x216   :  { %v432_v33 = vmul.f32 %v1054_v62, %v1050_v60  ;;  %v1056_v34 = vpop.eup %1055 }
 0x217   :  { %v431_v36 = vmul.f32 %v1056_v34, %v1390_v63  ;;  %v952_v63 = vld [vmem:[%s1607_s0 + $0x40] sm:$0xff] }
 0x218   :  { %v1058_v38 = vpop.eup %1057 }
 0x219   :  { %v1440_v37 = vadd.f32 %v432_v33, %v431_v36 }
 0x21b   :  { %1059 = vtanh.f32 %v1440_v37 }
 0x225   :  { %v1060_v39 = vpop.eup %1059 }
 0x226   :  { %v435_v40 = vmul.f32 %v1060_v39, %v1058_v38 }
 0x228   :  { %v441_v41 = vpack.c.bf16 %v435_v40, %v435_v40 }
 0x22a   :  { %475 = vmatmul.mubr.bf16.vlgmr.msra.gmra.mrb[8].mxu0 %v441_v41  ;;  %516 = vmatmul.mubr.bf16.vlgmr.msra.gmra.mrb[8].mxu1 %v441_v41 }
 0x22b   :  { %559 = vmatpush1.bf16.msra.mxu0 %v1156_v2  ;;  %600 = vmatpush1.bf16.msra.mxu1 %v1184_v7 }
 0x22c   :  { %560 = vmatprep.subr.bf16.mxu0 %v1162_v3  ;;  %601 = vmatprep.subr.bf16.mxu1 %v1203_v10 }
 0x22d   :  { %590 = vmatprep.mubr.bf16.mxu0 %v1125_v1  ;;  %631 = vmatprep.mubr.bf16.mxu1 %v1125_v1 }
 0x22f   :  { %561 = vmatpush1.bf16.msra.mxu0 %v1168_v4  ;;  %602 = vmatpush1.bf16.msra.mxu1 %v1208_v11 }
 0x230   :  { %562 = vmatprep.subr.bf16.mxu0 %v1174_v5  ;;  %603 = vmatprep.subr.bf16.mxu1 %v1225_v14 }
 0x233   :  { %563 = vmatpush1.bf16.msra.mxu0 %v1190_v8  ;;  %604 = vmatpush1.bf16.msra.mxu1 %v1232_v15 }
 0x234   :  { %564 = vmatprep.subr.bf16.mxu0 %v1197_v9  ;;  %605 = vmatprep.subr.bf16.mxu1 %v1238_v16 }
 0x237   :  { %565 = vmatpush1.bf16.msra.mxu0 %v1215_v12  ;;  %606 = vmatpush1.bf16.msra.mxu1 %v1256_v19 }
 0x238   :  { %566 = vmatprep.subr.bf16.mxu0 %v1220_v13  ;;  %607 = vmatprep.subr.bf16.mxu1 %v1262_v20 }
 0x23b   :  { %567 = vmatpush1.bf16.msra.mxu0 %v1244_v17  ;;  %608 = vmatpush1.bf16.msra.mxu1 %v1280_v23 }
 0x23c   :  { %568 = vmatprep.subr.bf16.mxu0 %v1250_v18  ;;  %609 = vmatprep.subr.bf16.mxu1 %v1286_v24 }
 0x23f   :  { %569 = vmatpush1.bf16.msra.mxu0 %v1268_v21  ;;  %610 = vmatpush1.bf16.msra.mxu1 %v1304_v27 }
 0x240   :  { %570 = vmatprep.subr.bf16.mxu0 %v1273_v22  ;;  %611 = vmatprep.subr.bf16.mxu1 %v1310_v28 }
 0x243   :  { %571 = vmatpush1.bf16.msra.mxu0 %v1292_v25  ;;  %612 = vmatpush1.bf16.msra.mxu1 %v1323_v30 }
 0x244   :  { %572 = vmatprep.subr.bf16.mxu0 %v1298_v26  ;;  %613 = vmatprep.subr.bf16.mxu1 %v1329_v31 }
 0x247   :  { %573 = vmatpush1.bf16.msra.mxu0 %v1316_v29  ;;  %614 = vmatpush1.bf16.msra.mxu1 %v1336_v32 }
 0x248   :  { %674 = vmatprep.subr.bf16.mxu0 %v1149_v0  ;;  %715 = vmatprep.subr.bf16.mxu1 %v1179_v6 }
 0x2fd   :  { %v476_v43 = vpop.f32.mrb[8].mxu0  ;;  %v517_v44 = vpop.f32.mrb[8].mxu1 }
 0x2fe   :  { %v524_v45 = vadd.f32 %v952_v63, %v476_v43  ;;  %v478_v46 = vpop.f32.mrb[9].mxu0  ;;  %v519_v47 = vpop.f32.mrb[9].mxu1  ;;  %v526_v56 = vadd.f32 %v954_v55, %v517_v44 }
 0x2ff   :  { %v525_v48 = vadd.f32 %v953_v42, %v478_v46  ;;  %v480_v49 = vpop.f32.mrb[10].mxu0  ;;  %v521_v50 = vpop.f32.mrb[10].mxu1  ;;  %v527_v58 = vadd.f32 %v955_v57, %v519_v47  ;;  %v960_v46 = vld [vmem:[%s1607_s0 + $0x68] sm:$0xff]  ;;  %v961_v57 = vld [vmem:[%s1607_s0 + $0x70] sm:$0xff] }
 0x300   :  { %v956_v51 = vmul.f32 -1.442695, %v524_v45  ;;  %v481_v52 = vpop.f32.mrb[11].mxu0  ;;  %v522_v53 = vpop.f32.mrb[11].mxu1  ;;  %v958_v59 = vmul.f32 -1.442695, %v526_v56 }
 0x301   :  { %v957_v54 = vmul.f32 -1.442695, %v525_v48 }
 0x302   :  { %1061 = vpow2.f32 %v956_v51 }
 0x303   :  { %1063 = vpow2.f32 %v957_v54 }
 0x304   :  { %1065 = vtanh.f32 %v527_v58 }
 0x305   :  { %1067 = vpow2.f32 %v958_v59  ;;  %v962_v59 = vld [vmem:[%s1607_s0 + $0x78] sm:$0xff] }
 0x30c   :  { %v1062_v60 = vpop.eup %1061 }
 0x30d   :  { %v531_v61 = vadd.f32 1.0, %v1062_v60  ;;  %v1064_v62 = vpop.eup %1063 }
 0x30e   :  { %v537_v33 = vadd.f32 1.0, %v1064_v62  ;;  %v1066_v34 = vpop.eup %1065 }
 0x30f   :  { %1069 = vrcp.f32 %v531_v61  ;;  %v1068_v35 = vpop.eup %1067 }
 0x310   :  { %1071 = vrcp.f32 %v537_v33  ;;  %v543_v40 = vadd.f32 1.0, %v1068_v35 }
 0x312   :  { %1073 = vrcp.f32 %v543_v40 }
 0x319   :  { %v1070_v36 = vpop.eup %1069 }
 0x31a   :  { %v548_v38 = vmul.f32 %v1070_v36, %v1066_v34  ;;  %v1072_v39 = vpop.eup %1071 }
 0x31b   :  { %v547_v41 = vmul.f32 %v1072_v39, %v1440_v37  ;;  %v959_v37 = vld [vmem:[%s1607_s0 + $0x60] sm:$0xff] }
 0x31c   :  { %v1074_v42 = vpop.eup %1073 }
 0x31d   :  { %v1490_v63 = vadd.f32 %v548_v38, %v547_v41 }
 0x31f   :  { %1075 = vtanh.f32 %v1490_v63 }
 0x329   :  { %v1076_v43 = vpop.eup %1075 }
 0x32a   :  { %v551_v44 = vmul.f32 %v1076_v43, %v1074_v42 }
 0x32c   :  { %v557_v45 = vpack.c.bf16 %v551_v44, %v551_v44 }
 0x32e   :  { %591 = vmatmul.mubr.bf16.vlgmr.msra.gmra.mrb[12].mxu0 %v557_v45  ;;  %632 = vmatmul.mubr.bf16.vlgmr.msra.gmra.mrb[12].mxu1 %v557_v45 }
 0x32f   :  { %675 = vmatpush1.bf16.msra.mxu0 %v1156_v2  ;;  %716 = vmatpush1.bf16.msra.mxu1 %v1184_v7 }
 0x330   :  { %676 = vmatprep.subr.bf16.mxu0 %v1162_v3  ;;  %717 = vmatprep.subr.bf16.mxu1 %v1203_v10 }
 0x331   :  { %706 = vmatprep.mubr.bf16.mxu0 %v1125_v1  ;;  %747 = vmatprep.mubr.bf16.mxu1 %v1125_v1 }
 0x333   :  { %677 = vmatpush1.bf16.msra.mxu0 %v1168_v4  ;;  %718 = vmatpush1.bf16.msra.mxu1 %v1208_v11 }
 0x334   :  { %678 = vmatprep.subr.bf16.mxu0 %v1174_v5  ;;  %719 = vmatprep.subr.bf16.mxu1 %v1225_v14 }
 0x337   :  { %679 = vmatpush1.bf16.msra.mxu0 %v1190_v8  ;;  %720 = vmatpush1.bf16.msra.mxu1 %v1232_v15 }
 0x338   :  { %680 = vmatprep.subr.bf16.mxu0 %v1197_v9  ;;  %721 = vmatprep.subr.bf16.mxu1 %v1238_v16 }
 0x33b   :  { %681 = vmatpush1.bf16.msra.mxu0 %v1215_v12  ;;  %722 = vmatpush1.bf16.msra.mxu1 %v1256_v19 }
 0x33c   :  { %682 = vmatprep.subr.bf16.mxu0 %v1220_v13  ;;  %723 = vmatprep.subr.bf16.mxu1 %v1262_v20 }
 0x33f   :  { %683 = vmatpush1.bf16.msra.mxu0 %v1244_v17  ;;  %724 = vmatpush1.bf16.msra.mxu1 %v1280_v23 }
 0x340   :  { %684 = vmatprep.subr.bf16.mxu0 %v1250_v18  ;;  %725 = vmatprep.subr.bf16.mxu1 %v1286_v24 }
 0x343   :  { %685 = vmatpush1.bf16.msra.mxu0 %v1268_v21  ;;  %726 = vmatpush1.bf16.msra.mxu1 %v1304_v27 }
 0x344   :  { %686 = vmatprep.subr.bf16.mxu0 %v1273_v22  ;;  %727 = vmatprep.subr.bf16.mxu1 %v1310_v28 }
 0x347   :  { %687 = vmatpush1.bf16.msra.mxu0 %v1292_v25  ;;  %728 = vmatpush1.bf16.msra.mxu1 %v1323_v30 }
 0x348   :  { %688 = vmatprep.subr.bf16.mxu0 %v1298_v26  ;;  %729 = vmatprep.subr.bf16.mxu1 %v1329_v31 }
 0x34b   :  { %689 = vmatpush1.bf16.msra.mxu0 %v1316_v29  ;;  %730 = vmatpush1.bf16.msra.mxu1 %v1336_v32 }
 0x34c   :  { %790 = vmatprep.subr.bf16.mxu0 %v1149_v0  ;;  %831 = vmatprep.subr.bf16.mxu1 %v1179_v6 }
 0x401   :  { %v592_v47 = vpop.f32.mrb[12].mxu0  ;;  %v633_v48 = vpop.f32.mrb[12].mxu1 }
 0x402   :  { %v640_v49 = vadd.f32 %v959_v37, %v592_v47  ;;  %v594_v50 = vpop.f32.mrb[13].mxu0  ;;  %v635_v51 = vpop.f32.mrb[13].mxu1  ;;  %v642_v58 = vadd.f32 %v961_v57, %v633_v48 }
 0x403   :  { %v641_v52 = vadd.f32 %v960_v46, %v594_v50  ;;  %v596_v53 = vpop.f32.mrb[14].mxu0  ;;  %v637_v54 = vpop.f32.mrb[14].mxu1  ;;  %v643_v60 = vadd.f32 %v962_v59, %v635_v51  ;;  %v973_v51 = vld [vmem:[%s1607_s0 + $0xa0] sm:$0xff] }
 0x404   :  { %v963_v55 = vmul.f32 -1.442695, %v640_v49  ;;  %v597_v0 = vpop.f32.mrb[15].mxu0  ;;  %v638_v56 = vpop.f32.mrb[15].mxu1  ;;  %v965_v61 = vmul.f32 -1.442695, %v642_v58 }
 0x405   :  { %v964_v6 = vmul.f32 -1.442695, %v641_v52  ;;  %v974_v52 = vld [vmem:[%s1607_s0 + $0xa8] sm:$0xff] }
 0x406   :  { %1077 = vpow2.f32 %v963_v55 }
 0x407   :  { %1079 = vpow2.f32 %v964_v6 }
 0x408   :  { %1081 = vtanh.f32 %v643_v60 }
 0x409   :  { %1083 = vpow2.f32 %v965_v61 }
 0x410   :  { %v1078_v62 = vpop.eup %1077 }
 0x411   :  { %v647_v33 = vadd.f32 1.0, %v1078_v62  ;;  %v1080_v34 = vpop.eup %1079 }
 0x412   :  { %v653_v35 = vadd.f32 1.0, %v1080_v34  ;;  %v1082_v36 = vpop.eup %1081 }
 0x413   :  { %1085 = vrcp.f32 %v647_v33  ;;  %v1084_v38 = vpop.eup %1083  ;;  %v975_v33 = vld [vmem:[%s1607_s0 + $0xb0] sm:$0xff] }
 0x414   :  { %1087 = vrcp.f32 %v653_v35  ;;  %v659_v42 = vadd.f32 1.0, %v1084_v38  ;;  %v976_v35 = vld [vmem:[%s1607_s0 + $0xb8] sm:$0xff] }
 0x416   :  { %1089 = vrcp.f32 %v659_v42 }
 0x41d   :  { %v1086_v39 = vpop.eup %1085 }
 0x41e   :  { %v664_v40 = vmul.f32 %v1086_v39, %v1082_v36  ;;  %v1088_v41 = vpop.eup %1087 }
 0x41f   :  { %v663_v43 = vmul.f32 %v1088_v41, %v1490_v63 }
 0x420   :  { %v1090_v45 = vpop.eup %1089 }
 0x421   :  { %v1540_v44 = vadd.f32 %v664_v40, %v663_v43 }
 0x423   :  { %1091 = vtanh.f32 %v1540_v44 }
 0x42d   :  { %v1092_v37 = vpop.eup %1091 }
 0x42e   :  { %v667_v46 = vmul.f32 %v1092_v37, %v1090_v45 }
 0x430   :  { %v673_v47 = vpack.c.bf16 %v667_v46, %v667_v46 }
 0x432   :  { %707 = vmatmul.mubr.bf16.vlgmr.msra.gmra.mrb[16].mxu0 %v673_v47  ;;  %748 = vmatmul.mubr.bf16.vlgmr.msra.gmra.mrb[16].mxu1 %v673_v47 }
 0x433   :  { %791 = vmatpush1.bf16.msra.mxu0 %v1156_v2  ;;  %832 = vmatpush1.bf16.msra.mxu1 %v1184_v7  ;;  %v967_v2 = vld [vmem:[%s1607_s0 + $0x88] sm:$0xff] }
 0x434   :  { %792 = vmatprep.subr.bf16.mxu0 %v1162_v3  ;;  %833 = vmatprep.subr.bf16.mxu1 %v1203_v10 }
 0x435   :  { %822 = vmatprep.mubr.bf16.mxu0 %v1125_v1  ;;  %863 = vmatprep.mubr.bf16.mxu1 %v1125_v1  ;;  %v966_v1 = vld [vmem:[%s1607_s0 + $0x80] sm:$0xff] }
 0x437   :  { %793 = vmatpush1.bf16.msra.mxu0 %v1168_v4  ;;  %834 = vmatpush1.bf16.msra.mxu1 %v1208_v11 }
 0x438   :  { %794 = vmatprep.subr.bf16.mxu0 %v1174_v5  ;;  %835 = vmatprep.subr.bf16.mxu1 %v1225_v14 }
 0x43b   :  { %795 = vmatpush1.bf16.msra.mxu0 %v1190_v8  ;;  %836 = vmatpush1.bf16.msra.mxu1 %v1232_v15 }
 0x43c   :  { %796 = vmatprep.subr.bf16.mxu0 %v1197_v9  ;;  %837 = vmatprep.subr.bf16.mxu1 %v1238_v16  ;;  %v968_v16 = vld [vmem:[%s1607_s0 + $0x90] sm:$0xff] }
 0x43f   :  { %797 = vmatpush1.bf16.msra.mxu0 %v1215_v12  ;;  %838 = vmatpush1.bf16.msra.mxu1 %v1256_v19 }
 0x440   :  { %798 = vmatprep.subr.bf16.mxu0 %v1220_v13  ;;  %839 = vmatprep.subr.bf16.mxu1 %v1262_v20 }
 0x443   :  { %799 = vmatpush1.bf16.msra.mxu0 %v1244_v17  ;;  %840 = vmatpush1.bf16.msra.mxu1 %v1280_v23 }
 0x444   :  { %800 = vmatprep.subr.bf16.mxu0 %v1250_v18  ;;  %841 = vmatprep.subr.bf16.mxu1 %v1286_v24  ;;  %v969_v18 = vld [vmem:[%s1607_s0 + $0x98] sm:$0xff] }
 0x447   :  { %801 = vmatpush1.bf16.msra.mxu0 %v1268_v21  ;;  %842 = vmatpush1.bf16.msra.mxu1 %v1304_v27 }
 0x448   :  { %802 = vmatprep.subr.bf16.mxu0 %v1273_v22  ;;  %843 = vmatprep.subr.bf16.mxu1 %v1310_v28 }
 0x44b   :  { %803 = vmatpush1.bf16.msra.mxu0 %v1292_v25  ;;  %844 = vmatpush1.bf16.msra.mxu1 %v1323_v30 }
 0x44c   :  { %804 = vmatprep.subr.bf16.mxu0 %v1298_v26  ;;  %845 = vmatprep.subr.bf16.mxu1 %v1329_v31 }
 0x44f   :  { %805 = vmatpush1.bf16.msra.mxu0 %v1316_v29  ;;  %846 = vmatpush1.bf16.msra.mxu1 %v1336_v32 }
 0x505   :  { %v708_v3 = vpop.f32.mrb[16].mxu0  ;;  %v749_v4 = vpop.f32.mrb[16].mxu1 }
 0x506   :  { %v756_v5 = vadd.f32 %v966_v1, %v708_v3  ;;  %v710_v7 = vpop.f32.mrb[17].mxu0  ;;  %v751_v8 = vpop.f32.mrb[17].mxu1  ;;  %v758_v17 = vadd.f32 %v968_v16, %v749_v4 }
 0x507   :  { %v757_v9 = vadd.f32 %v967_v2, %v710_v7  ;;  %v712_v10 = vpop.f32.mrb[18].mxu0  ;;  %v753_v11 = vpop.f32.mrb[18].mxu1  ;;  %v759_v19 = vadd.f32 %v969_v18, %v751_v8 }
 0x508   :  { %v970_v12 = vmul.f32 -1.442695, %v756_v5  ;;  %v713_v13 = vpop.f32.mrb[19].mxu0  ;;  %v754_v14 = vpop.f32.mrb[19].mxu1  ;;  %v972_v20 = vmul.f32 -1.442695, %v758_v17 }
 0x509   :  { %v971_v15 = vmul.f32 -1.442695, %v757_v9 }
 0x50a   :  { %1093 = vpow2.f32 %v970_v12 }
 0x50b   :  { %1095 = vpow2.f32 %v971_v15 }
 0x50c   :  { %1097 = vtanh.f32 %v759_v19 }
 0x50d   :  { %1099 = vpow2.f32 %v972_v20 }
 0x514   :  { %v1094_v21 = vpop.eup %1093 }
 0x515   :  { %v763_v22 = vadd.f32 1.0, %v1094_v21  ;;  %v1096_v23 = vpop.eup %1095 }
 0x516   :  { %v769_v24 = vadd.f32 1.0, %v1096_v23  ;;  %v1098_v25 = vpop.eup %1097 }
 0x517   :  { %1101 = vrcp.f32 %v763_v22  ;;  %v1100_v26 = vpop.eup %1099 }
 0x518   :  { %1103 = vrcp.f32 %v769_v24  ;;  %v775_v30 = vadd.f32 1.0, %v1100_v26 }
 0x51a   :  { %1105 = vrcp.f32 %v775_v30 }
 0x521   :  { %v1102_v27 = vpop.eup %1101 }
 0x522   :  { %v780_v28 = vmul.f32 %v1102_v27, %v1098_v25  ;;  %v1104_v29 = vpop.eup %1103 }
 0x523   :  { %v779_v31 = vmul.f32 %v1104_v29, %v1540_v44 }
 0x524   :  { %v1106_v63 = vpop.eup %1105 }
 0x525   :  { %v781_v32 = vadd.f32 %v780_v28, %v779_v31 }
 0x527   :  { %1107 = vtanh.f32 %v781_v32 }
 0x531   :  { %v1108_v48 = vpop.eup %1107 }
 0x532   :  { %v783_v49 = vmul.f32 %v1108_v48, %v1106_v63 }
 0x534   :  { %v789_v50 = vpack.c.bf16 %v783_v49, %v783_v49 }
 0x536   :  { %823 = vmatmul.mubr.bf16.vlgmr.msra.gmra.mrb[20].mxu0 %v789_v50  ;;  %864 = vmatmul.mubr.bf16.vlgmr.msra.gmra.mrb[20].mxu1 %v789_v50 }
 0x609   :  { %v824_v53 = vpop.f32.mrb[20].mxu0  ;;  %v865_v54 = vpop.f32.mrb[20].mxu1 }
 0x60a   :  { %v872_v55 = vadd.f32 %v973_v51, %v824_v53  ;;  %v826_v0 = vpop.f32.mrb[21].mxu0  ;;  %v867_v56 = vpop.f32.mrb[21].mxu1  ;;  %v874_v34 = vadd.f32 %v975_v33, %v865_v54 }
 0x60b   :  { %v873_v6 = vadd.f32 %v974_v52, %v826_v0  ;;  %v828_v57 = vpop.f32.mrb[22].mxu0  ;;  %v869_v58 = vpop.f32.mrb[22].mxu1  ;;  %v875_v36 = vadd.f32 %v976_v35, %v867_v56 }
 0x60c   :  { %v977_v59 = vmul.f32 -1.442695, %v872_v55  ;;  %v829_v60 = vpop.f32.mrb[23].mxu0  ;;  %v870_v61 = vpop.f32.mrb[23].mxu1  ;;  %v979_v38 = vmul.f32 -1.442695, %v874_v34 }
 0x60d   :  { %v978_v62 = vmul.f32 -1.442695, %v873_v6 }
 0x60e   :  { %1109 = vpow2.f32 %v977_v59 }
 0x60f   :  { %1111 = vpow2.f32 %v978_v62 }
 0x610   :  { %1113 = vtanh.f32 %v875_v36 }
 0x611   :  { %1115 = vpow2.f32 %v979_v38 }
 0x618   :  { %v1110_v39 = vpop.eup %1109 }
 0x619   :  { %v879_v40 = vadd.f32 1.0, %v1110_v39  ;;  %v1112_v41 = vpop.eup %1111 }
 0x61a   :  { %v885_v42 = vadd.f32 1.0, %v1112_v41  ;;  %v1114_v43 = vpop.eup %1113 }
 0x61b   :  { %1117 = vrcp.f32 %v879_v40  ;;  %v1116_v44 = vpop.eup %1115 }
 0x61c   :  { %1119 = vrcp.f32 %v885_v42  ;;  %v891_v47 = vadd.f32 1.0, %v1116_v44 }
 0x61e   :  { %1121 = vrcp.f32 %v891_v47 }
 0x625   :  { %v1118_v45 = vpop.eup %1117 }
 0x626   :  { %v896_v37 = vmul.f32 %v1118_v45, %v1114_v43  ;;  %v1120_v46 = vpop.eup %1119 }
 0x627   :  { %v895_v1 = vmul.f32 %v1120_v46, %v781_v32 }
 0x628   :  { %v1122_v3 = vpop.eup %1121 }
 0x629   :  { %v897_v2 = vadd.f32 %v896_v37, %v895_v1 }
 0x62b   :  { %1123 = vtanh.f32 %v897_v2  ;;  %901 = vst [vmem:[%s1608_s3] sm:$0xff] %v897_v2 }
 0x635   :  { %v1124_v4 = vpop.eup %1123 }
 0x636   :  { %v899_v5 = vmul.f32 %v1124_v4, %v1122_v3 }
 0x638   :  { %900 = vst [vmem:[%s1609_s2] sm:$0xff] %v899_v5 }

// kernel: _forward.3
= control target key start
LH: loop header
LB: loop body
LE: loop exit
PB: predicated region body
PF: predicated region fallthrough
CT: control target
= control target key end

     0   :  { %13 = vsyncpa [#allocation3], 0  ;;  %s4707_s0 = inlined_call_operand.vmem [shape: s32[7], index: 0, kind: input, shape index: {}]   ;;  %s4708_s1 = inlined_call_operand.vmem [shape: f32[7,8,512], index: 1, kind: input, shape index: {}]   ;;  %s4709_s2 = inlined_call_operand.vmem [shape: f32[8,128], index: 2, kind: input, shape index: {}]   ;;  %s4710_s3 = inlined_call_operand.vmem [shape: f32[8,128], index: 3, kind: input, shape index: {}]   ;;  %s4711_s4 = inlined_call_operand.vmem [shape: bf16[128,512], index: 4, kind: input, shape index: {}]   ;;  %s4712_s5 = inlined_call_operand.vmem [shape: bf16[128,512], index: 5, kind: input, shape index: {}]   ;;  %s4713_s6 = inlined_call_operand.vmem [shape: bf16[128,128], index: 6, kind: input, shape index: {}]   ;;  %s4714_s7 = inlined_call_operand.vmem [shape: f32[1,128], index: 7, kind: input, shape index: {}]   ;;  %s4715_s8 = inlined_call_operand.vmem [shape: f32[7,8,128], index: 8, kind: output, shape index: {}]  }
   0x1   :  { %s20_s29 = sshll.u32 %s4707_s0, 4  ;;  %s21_s29 = int_to_ptr.vmem [resolvable:$true] %s20_s29 }
   0x2   :  { %s2991_s30 = scalar_lea.vmem %s21_s29, 16  ;;  %p2996_p1 = scmp.lt.s32.totalorder %s21_s29, %s21_s29 }
   0x3   :  { %p2992_p0 = scmp.ne.s32.totalorder %s21_s29, %s2991_s30  ;;  %p2997_p2 = scmp.lt.s32.totalorder %s2991_s30, %s2991_s30 }
   0x5   :  { %p2998_p3 = por %p2997_p2, %p2996_p1 }
   0x7   :  { %p2999_p4 = pnand %p2998_p3, %p2992_p0 }
   0x9   :  { %3002 = shalt.err (!%p2999_p4)
}
   0xa   :  { %s3005_s9 = smov [#allocation2]  }
   0xb   :  { %23 = dma.vmem_to_smem %s21_s29, 16, %s3005_s9, [#allocation3]  }
   0xc   :  { %3003 = dma.done.wait [#allocation3], 16  }
   0xd   :  { %3004 = vsyncadd [#allocation3], 4294967280 }
   0xe   :  { %41 = sfence }
   0xf   :  { %v3061_v0 = vld [vmem:[%s4712_s5 + $0x4] ss:$16 sps:$4 sm:$0xff]   ;;  %v3066_v1 = vld [vmem:[%s4712_s5] ss:$16 sps:$4 sm:$0xff]   ;;  %v4718_v2 = vmov 0   ;;  %s3070_s13 = sld [smem:[#allocation2]] }
  0x10   :  { %332 = vmatprep.mubr.bf16.mxu0 %v4718_v2  ;;  %373 = vmatprep.mubr.bf16.mxu1 %v4718_v2  ;;  %v3076_v3 = vld [vmem:[%s4712_s5 + $0x24] ss:$16 sps:$4 sm:$0xff]   ;;  %v3082_v4 = vld [vmem:[%s4712_s5 + $0x20] ss:$16 sps:$4 sm:$0xff]   ;;  %v3093_v6 = vld [vmem:[%s4712_s5 + $0xc] ss:$16 sps:$4 sm:$0xff]  }
  0x11   :  { %300 = vmatprep.subr.bf16.mxu0 %v3061_v0  ;;  %v3088_v5 = vld [vmem:[%s4712_s5 + $0x44] ss:$16 sps:$4 sm:$0xff]   ;;  %v3098_v7 = vld [vmem:[%s4712_s5 + $0x8] ss:$16 sps:$4 sm:$0xff]   ;;  %v3104_v8 = vld [vmem:[%s4712_s5 + $0x40] ss:$16 sps:$4 sm:$0xff]   ;;  %341 = vmatprep.subr.bf16.mxu1 %v3093_v6 }
  0x12   :  { %301 = vmatpush1.bf16.msra.mxu0 %v3066_v1  ;;  %v3111_v9 = vld [vmem:[%s4712_s5 + $0x64] ss:$16 sps:$4 sm:$0xff]   ;;  %342 = vmatpush1.bf16.msra.mxu1 %v3098_v7  ;;  %v3117_v10 = vld [vmem:[%s4712_s5 + $0x2c] ss:$16 sps:$4 sm:$0xff]   ;;  %v3122_v11 = vld [vmem:[%s4712_s5 + $0x28] ss:$16 sps:$4 sm:$0xff]  }
  0x13   :  { %302 = vmatprep.subr.bf16.mxu0 %v3076_v3  ;;  %343 = vmatprep.subr.bf16.mxu1 %v3117_v10  ;;  %v3129_v12 = vld [vmem:[%s4712_s5 + $0x60] ss:$16 sps:$4 sm:$0xff]   ;;  %v3134_v13 = vld [vmem:[%s4712_s5 + $0x84] ss:$16 sps:$4 sm:$0xff]   ;;  %v3139_v14 = vld [vmem:[%s4712_s5 + $0x4c] ss:$16 sps:$4 sm:$0xff]  }
  0x14   :  { %v3146_v15 = vld [vmem:[%s4712_s5 + $0x48] ss:$16 sps:$4 sm:$0xff]   ;;  %v3152_v16 = vld [vmem:[%s4712_s5 + $0x6c] ss:$16 sps:$4 sm:$0xff]   ;;  %v3158_v17 = vld [vmem:[%s4712_s5 + $0x80] ss:$16 sps:$4 sm:$0xff]  }
  0x15   :  { %v3164_v18 = vld [vmem:[%s4712_s5 + $0xa4] ss:$16 sps:$4 sm:$0xff]   ;;  %v3170_v19 = vld [vmem:[%s4712_s5 + $0x68] ss:$16 sps:$4 sm:$0xff]   ;;  %v3176_v20 = vld [vmem:[%s4712_s5 + $0x8c] ss:$16 sps:$4 sm:$0xff]  }
  0x16   :  { %303 = vmatpush1.bf16.msra.mxu0 %v3082_v4  ;;  %344 = vmatpush1.bf16.msra.mxu1 %v3122_v11  ;;  %v3181_v21 = vld [vmem:[%s4712_s5 + $0xa0] ss:$16 sps:$4 sm:$0xff]   ;;  %v3187_v22 = vld [vmem:[%s4712_s5 + $0xc4] ss:$16 sps:$4 sm:$0xff]   ;;  %v3194_v23 = vld [vmem:[%s4712_s5 + $0x88] ss:$16 sps:$4 sm:$0xff]  }
  0x17   :  { %304 = vmatprep.subr.bf16.mxu0 %v3088_v5  ;;  %345 = vmatprep.subr.bf16.mxu1 %v3139_v14  ;;  %v3199_v24 = vld [vmem:[%s4712_s5 + $0xc0] ss:$16 sps:$4 sm:$0xff]   ;;  %v3205_v25 = vld [vmem:[%s4712_s5 + $0xac] ss:$16 sps:$4 sm:$0xff]   ;;  %v3210_v26 = vld [vmem:[%s4712_s5 + $0xe4] ss:$16 sps:$4 sm:$0xff]  }
  0x18   :  { %v3215_v27 = vld [vmem:[%s4712_s5 + $0xa8] ss:$16 sps:$4 sm:$0xff]   ;;  %v3221_v28 = vld [vmem:[%s4712_s5 + $0xcc] ss:$16 sps:$4 sm:$0xff]   ;;  %v3228_v29 = vld [vmem:[%s4712_s5 + $0xe0] ss:$16 sps:$4 sm:$0xff]  }
  0x19   :  { %v126_v30 = vld [vmem:[%s4709_s2] sm:$0xff]  ;;  %v3237_v31 = vld [vmem:[%s4712_s5 + $0xc8] ss:$16 sps:$4 sm:$0xff]   ;;  %v3243_v32 = vld [vmem:[%s4712_s5 + $0xec] ss:$16 sps:$4 sm:$0xff]   ;;  %v4716_v36 = vmov 0.0  }
  0x1a   :  { %305 = vmatpush1.bf16.msra.mxu0 %v3104_v8  ;;  %346 = vmatpush1.bf16.msra.mxu1 %v3146_v15  ;;  %v139_v33 = vpack.c.bf16 %v126_v30, %v126_v30  ;;  %v3251_v34 = vld [vmem:[%s4712_s5 + $0xe8] ss:$16 sps:$4 sm:$0xff]   ;;  %v3261_v35 = vld [vmem:[%s4713_s6] sm:$0xff]   ;;  %v3276_v38 = vld [vmem:[%s4713_s6 + $0x10] sm:$0xff]   ;;  %vm3008_vm0 = vmmov 0   ;;  %p2701_p5 = scmp.ne.s32.totalorder %s3070_s13, 0 }
  0x1b   :  { %306 = vmatprep.subr.bf16.mxu0 %v3111_v9  ;;  %347 = vmatprep.subr.bf16.mxu1 %v3152_v16  ;;  %v3269_v37 = vld [vmem:[%s4713_s6 + $0x8] sm:$0xff]   ;;  %4841 = vst [vmem:[#allocation6_spill] sm:$0xff] %v3276_v38  ;;  %v3283_v39 = vld [vmem:[%s4713_s6 + $0x18] sm:$0xff]   ;;  %v3290_v40 = vld [vmem:[%s4713_s6 + $0x20] sm:$0xff]   ;;  %s2366_s29 = sld [smem:[#allocation2 + $0x1]]  ;;  %s2380_s17 = sld [smem:[#allocation2 + $0x2]] }
  0x1c   :  { %4840 = vst [vmem:[#allocation5_spill] sm:$0xff] %v3269_v37  ;;  %4842 = vst [vmem:[#allocation7_spill] sm:$0xff] %v3283_v39  ;;  %v3296_v41 = vld [vmem:[%s4713_s6 + $0x28] sm:$0xff]   ;;  %v3305_v42 = vld [vmem:[%s4713_s6 + $0x30] sm:$0xff]   ;;  %s2702_s25 = scalar_select %p2701_p5, 255, 0 }
  0x1d   :  { %4843 = vst [vmem:[#allocation8_spill] sm:$0xff] %v3290_v40  ;;  %4844 = vst [vmem:[#allocation9_spill] sm:$0xff] %v3296_v41  ;;  %v3312_v43 = vld [vmem:[%s4713_s6 + $0x38] sm:$0xff]   ;;  %s2394_s30 = sld [smem:[#allocation2 + $0x3]]  ;;  %s2408_s27 = sld [smem:[#allocation2 + $0x4]] }
  0x1e   :  { %307 = vmatpush1.bf16.msra.mxu0 %v3129_v12  ;;  %348 = vmatpush1.bf16.msra.mxu1 %v3170_v19  ;;  %4845 = vst [vmem:[#allocation10_spill] sm:$0xff] %v3305_v42  ;;  %4846 = vst [vmem:[#allocation11_spill] sm:$0xff] %v3312_v43  ;;  %v2703_v44 = vld [vmem:[%s4708_s1] sm:%s2702_s25]  ;;  %v2706_v45 = vld [vmem:[%s4708_s1 + $0x8] sm:%s2702_s25]  ;;  %s2422_s18 = sld [smem:[#allocation2 + $0x5]] }
  0x1f   :  { %308 = vmatprep.subr.bf16.mxu0 %v3134_v13  ;;  %349 = vmatprep.subr.bf16.mxu1 %v3176_v20  ;;  %v2709_v54 = vld [vmem:[%s4708_s1 + $0x10] sm:%s2702_s25]  ;;  %v2712_v60 = vld [vmem:[%s4708_s1 + $0x18] sm:%s2702_s25] }
  0x22   :  { %309 = vmatpush1.bf16.msra.mxu0 %v3158_v17  ;;  %350 = vmatpush1.bf16.msra.mxu1 %v3194_v23 }
  0x23   :  { %310 = vmatprep.subr.bf16.mxu0 %v3164_v18  ;;  %351 = vmatprep.subr.bf16.mxu1 %v3205_v25 }
  0x26   :  { %311 = vmatpush1.bf16.msra.mxu0 %v3181_v21  ;;  %352 = vmatpush1.bf16.msra.mxu1 %v3215_v27 }
  0x27   :  { %312 = vmatprep.subr.bf16.mxu0 %v3187_v22  ;;  %353 = vmatprep.subr.bf16.mxu1 %v3221_v28 }
  0x2a   :  { %313 = vmatpush1.bf16.msra.mxu0 %v3199_v24  ;;  %354 = vmatpush1.bf16.msra.mxu1 %v3237_v31 }
  0x2b   :  { %314 = vmatprep.subr.bf16.mxu0 %v3210_v26  ;;  %355 = vmatprep.subr.bf16.mxu1 %v3243_v32 }
  0x2e   :  { %315 = vmatpush1.bf16.msra.mxu0 %v3228_v29  ;;  %356 = vmatpush1.bf16.msra.mxu1 %v3251_v34 }
  0x2f   :  { %2508 = vmatprep.subr.bf16.mxu0 %v4716_v36 }
  0x31   :  { %333 = vmatmul.mubr.bf16.vlgmr.msra.gmra.mrb[0].mxu0 %v139_v33  ;;  %374 = vmatmul.mubr.bf16.vlgmr.msra.gmra.mrb[0].mxu1 %v139_v33 }
  0x32   :  { %720 = vmatprep.mubr.bf16.mxu1 %v4718_v2  ;;  %2509 = vmatpush3.bf16.msra.mxu0 %v3261_v35 }
  0x33   :  { %2510 = vmatprep.subr.bf16.mxu0 %v4716_v36  ;;  %2524 = vmatprep.mubr.msk.bf16.mxu0 %vm3008_vm0, %v4716_v36 }
  0x36   :  { %2511 = vmatpush3.bf16.msra.mxu0 %v3269_v37 }
  0x37   :  { %2512 = vmatprep.subr.bf16.mxu0 %v4716_v36 }
  0x3a   :  { %2513 = vmatpush3.bf16.msra.mxu0 %v3276_v38 }
  0x3b   :  { %2514 = vmatprep.subr.bf16.mxu0 %v4716_v36 }
  0x3e   :  { %2515 = vmatpush3.bf16.msra.mxu0 %v3283_v39 }
  0x3f   :  { %2516 = vmatprep.subr.bf16.mxu0 %v4716_v36 }
  0x42   :  { %2517 = vmatpush3.bf16.msra.mxu0 %v3290_v40 }
  0x43   :  { %2518 = vmatprep.subr.bf16.mxu0 %v4716_v36 }
  0x46   :  { %2519 = vmatpush3.bf16.msra.mxu0 %v3296_v41 }
  0x47   :  { %2520 = vmatprep.subr.bf16.mxu0 %v4716_v36 }
  0x4a   :  { %2521 = vmatpush3.bf16.msra.mxu0 %v3305_v42  ;;  %v4757_v42 = vmov 1.0|1.0  }
  0x4b   :  { %2522 = vmatprep.subr.bf16.mxu0 %v4716_v36  ;;  %v3451_v36 = vld [vmem:[%s4711_s4 + $0x84] ss:$16 sps:$4 sm:$0xff]  }
  0x4c   :  { %4863 = vst [vmem:[#allocation28_spill] sm:$0xff] %v3451_v36 }
  0x4e   :  { %2523 = vmatpush3.bf16.msra.mxu0 %v3312_v43  ;;  %v3526_v43 = vld [vmem:[%s4711_s4 + $0xe4] ss:$16 sps:$4 sm:$0xff]  }
  0x4f   :  { %4875 = vst [vmem:[#allocation40_spill] sm:$0xff] %v3526_v43 }
 0x104   :  { %v334_v46 = vpop.f32.mrb[0].mxu0  ;;  %v375_v55 = vpop.f32.mrb[0].mxu1 }
 0x105   :  { %v382_v47 = vadd.f32 %v2703_v44, %v334_v46  ;;  %v336_v48 = vpop.f32.mrb[1].mxu0  ;;  %v377_v56 = vpop.f32.mrb[1].mxu1  ;;  %v384_v57 = vadd.f32 %v2709_v54, %v375_v55 }
 0x106   :  { %v383_v49 = vadd.f32 %v2706_v45, %v336_v48  ;;  %v338_v50 = vpop.f32.mrb[2].mxu0  ;;  %v379_v58 = vpop.f32.mrb[2].mxu1  ;;  %v385_v62 = vadd.f32 %v2712_v60, %v377_v56 }
 0x107   :  { %v2317_v51 = vmul.f32 -1.442695, %v382_v47  ;;  %v339_v52 = vpop.f32.mrb[3].mxu0  ;;  %v380_v59 = vpop.f32.mrb[3].mxu1  ;;  %v2319_v61 = vmul.f32 -1.442695, %v384_v57 }
 0x108   :  { %v2318_v53 = vmul.f32 -1.442695, %v383_v49  ;;  %v127_v47 = vld [vmem:[%s4710_s3] sm:$0xff] }
 0x109   :  { %2769 = vpow2.f32 %v2317_v51  ;;  %v3342_v58 = vld [vmem:[%s4714_s7] ss:$0 sm:$0xff] }
 0x10a   :  { %2771 = vpow2.f32 %v2318_v53  ;;  %4848 = vst [vmem:[#allocation13_spill] sm:$0xff] %v3342_v58 }
 0x10b   :  { %2773 = vpow2.f32 %v2319_v61 }
 0x10c   :  { %2775 = vtanh.f32 %v385_v62 }
 0x113   :  { %v2770_v63 = vpop.eup %2769 }
 0x114   :  { %v2772_v30 = vpop.eup %2771  ;;  %v389_v33 = vadd.f32 1.0, %v2770_v63 }
 0x115   :  { %v395_v44 = vadd.f32 1.0, %v2772_v30  ;;  %v2774_v45 = vpop.eup %2773  ;;  %v43_v30 = vlaneseq }
 0x116   :  { %2777 = vrcp.f32 %v389_v33  ;;  %v2776_v46 = vpop.eup %2775  ;;  %v401_v49 = vadd.f32 1.0, %v2774_v45 }
 0x117   :  { %2779 = vrcp.f32 %v395_v44  ;;  %v3348_v33 = vand.u32 127, %v43_v30  ;;  %v3432_v30 = vld [vmem:[%s4711_s4 + $0x6c] ss:$16 sps:$4 sm:$0xff]  }
 0x118   :  { %2781 = vrcp.f32 %v401_v49  ;;  %v3362_v49 = vld [vmem:[%s4711_s4 + $0xc] ss:$16 sps:$4 sm:$0xff]   ;;  %4860 = vst [vmem:[#allocation25_spill] sm:$0xff] %v3432_v30 }
 0x119   :  { %4849 = vst [vmem:[#allocation14_spill] sm:$0xff] %v3362_v49  ;;  %729 = vmatprep.subr.bf16.mxu0 %v3362_v49 }
 0x120   :  { %v2778_v48 = vpop.eup %2777 }
 0x121   :  { %v2780_v50 = vpop.eup %2779  ;;  %v406_v51 = vmul.f32 %v2778_v48, %v2776_v46  ;;  %v3357_v48 = vld [vmem:[%s4711_s4 + $0x4] ss:$16 sps:$4 sm:$0xff]  }
 0x122   :  { %v405_v52 = vmul.f32 %v2780_v50, %v127_v47  ;;  %v2782_v54 = vpop.eup %2781  ;;  %v3367_v50 = vld [vmem:[%s4711_s4] ss:$16 sps:$4 sm:$0xff]   ;;  %688 = vmatprep.subr.bf16.mxu1 %v3357_v48 }
 0x123   :  { %689 = vmatpush1.bf16.msra.mxu1 %v3367_v50 }
 0x124   :  { %v3332_v53 = vadd.f32 %v406_v51, %v405_v52  ;;  %v3372_v51 = vld [vmem:[%s4711_s4 + $0x8] ss:$16 sps:$4 sm:$0xff]   ;;  %v3377_v52 = vld [vmem:[%s4711_s4 + $0x24] ss:$16 sps:$4 sm:$0xff]  }
 0x125   :  { %4850 = vst [vmem:[#allocation15_spill] sm:$0xff] %v3372_v51  ;;  %4851 = vst [vmem:[#allocation16_spill] sm:$0xff] %v3377_v52  ;;  %690 = vmatprep.subr.bf16.mxu1 %v3377_v52 }
 0x126   :  { %4847 = vst [vmem:[#allocation12_spill] sm:$0xff] %v3332_v53  ;;  %2783 = vtanh.f32 %v3332_v53 }
 0x130   :  { %v2784_v55 = vpop.eup %2783 }
 0x131   :  { %v409_v56 = vmul.f32 %v2784_v55, %v2782_v54  ;;  %v3382_v54 = vld [vmem:[%s4711_s4 + $0x2c] ss:$16 sps:$4 sm:$0xff]   ;;  %v3391_v55 = vld [vmem:[%s4711_s4 + $0x20] ss:$16 sps:$4 sm:$0xff]  }
 0x132   :  { %4852 = vst [vmem:[#allocation17_spill] sm:$0xff] %v3382_v54  ;;  %4853 = vst [vmem:[#allocation18_spill] sm:$0xff] %v3391_v55  ;;  %691 = vmatpush1.bf16.msra.mxu1 %v3391_v55 }
 0x133   :  { %v3335_v57 = vpack.c.bf16 %v409_v56, %v409_v56  ;;  %v3396_v56 = vld [vmem:[%s4711_s4 + $0x28] ss:$16 sps:$4 sm:$0xff]  }
 0x134   :  { %4854 = vst [vmem:[#allocation19_spill] sm:$0xff] %v3396_v56 }
 0x135   :  { %2525 = vmatmul.mubr.bf16.vlgmr.msra.gmra.mrb[4].mxu0 %v3335_v57 }
 0x136   :  { %761 = vmatprep.mubr.bf16.mxu0 %v4718_v2  ;;  %730 = vmatpush1.bf16.msra.mxu0 %v3372_v51  ;;  %v3456_v2 = vld [vmem:[%s4711_s4 + $0x8c] ss:$16 sps:$4 sm:$0xff]  }
 0x137   :  { %731 = vmatprep.subr.bf16.mxu0 %v3382_v54  ;;  %4864 = vst [vmem:[#allocation29_spill] sm:$0xff] %v3456_v2  ;;  %v3511_v54 = vld [vmem:[%s4711_s4 + $0xc0] ss:$16 sps:$4 sm:$0xff]  }
 0x138   :  { %4873 = vst [vmem:[#allocation38_spill] sm:$0xff] %v3511_v54 }
 0x13a   :  { %732 = vmatpush1.bf16.msra.mxu0 %v3396_v56  ;;  %v3499_v56 = vld [vmem:[%s4711_s4 + $0xc4] ss:$16 sps:$4 sm:$0xff]  }
 0x13b   :  { %4871 = vst [vmem:[#allocation36_spill] sm:$0xff] %v3499_v56 }
 0x208   :  { %v499_v59 = vpop.f32.mrb[4].mxu0 }
 0x209   :  { %v500_v60 = vadd.f32 %v3342_v58, %v499_v59  ;;  %v2526_v61 = vpop.f32.mrb[5].mxu0  ;;  %v3403_v59 = vld [vmem:[%s4711_s4 + $0x44] ss:$16 sps:$4 sm:$0xff]   ;;  %v3463_v58 = vld [vmem:[%s4711_s4 + $0x80] ss:$16 sps:$4 sm:$0xff]  }
 0x20a   :  { %v502_v62 = vpop.f32.mrb[6].mxu0  ;;  %4855 = vst [vmem:[#allocation20_spill] sm:$0xff] %v3403_v59  ;;  %v3415_v61 = vld [vmem:[%s4711_s4 + $0x40] ss:$16 sps:$4 sm:$0xff]   ;;  %692 = vmatprep.subr.bf16.mxu1 %v3403_v59  ;;  %4865 = vst [vmem:[#allocation30_spill] sm:$0xff] %v3463_v58 }
 0x20b   :  { %505 = vst [vmem:[%s4715_s8] sm:$0xff] %v500_v60  ;;  %506 = vmax.xlane.f32.xlu0 %v500_v60  ;;  %v2527_v63 = vpop.f32.mrb[7].mxu0  ;;  %4857 = vst [vmem:[#allocation22_spill] sm:$0xff] %v3415_v61  ;;  %v3420_v62 = vld [vmem:[%s4711_s4 + $0x48] ss:$16 sps:$4 sm:$0xff]   ;;  %693 = vmatpush1.bf16.msra.mxu1 %v3415_v61 }
 0x20c   :  { %4858 = vst [vmem:[#allocation23_spill] sm:$0xff] %v3420_v62  ;;  %v3427_v63 = vld [vmem:[%s4711_s4 + $0x64] ss:$16 sps:$4 sm:$0xff]  }
 0x20d   :  { %4859 = vst [vmem:[#allocation24_spill] sm:$0xff] %v3427_v63  ;;  %694 = vmatprep.subr.bf16.mxu1 %v3427_v63 }
 0x298   :  { %v507_v44 = vpop.xlane.xlu0 %506 }
 0x299   :  { %vm508_vm1 = vcmp.eq.f32.partialorder %v500_v60, %v507_v44  ;;  %v3408_v60 = vld [vmem:[%s4711_s4 + $0x4c] ss:$16 sps:$4 sm:$0xff]   ;;  %v3439_v44 = vld [vmem:[%s4711_s4 + $0x60] ss:$16 sps:$4 sm:$0xff]  }
 0x29a   :  { %v509_v45 = vsel %vm508_vm1, %v3348_v33, 128  ;;  %4856 = vst [vmem:[#allocation21_spill] sm:$0xff] %v3408_v60  ;;  %733 = vmatprep.subr.bf16.mxu0 %v3408_v60  ;;  %4861 = vst [vmem:[#allocation26_spill] sm:$0xff] %v3439_v44  ;;  %695 = vmatpush1.bf16.msra.mxu1 %v3439_v44  ;;  %v3487_v60 = vld [vmem:[%s4711_s4 + $0xa0] ss:$16 sps:$4 sm:$0xff]  }
 0x29b   :  { %v511_v46 = vshra.s32 %v509_v45, 16  ;;  %734 = vmatpush1.bf16.msra.mxu0 %v3420_v62  ;;  %696 = vmatprep.subr.bf16.mxu1 %v3451_v36  ;;  %v3475_v62 = vld [vmem:[%s4711_s4 + $0xa4] ss:$16 sps:$4 sm:$0xff]   ;;  %4869 = vst [vmem:[#allocation34_spill] sm:$0xff] %v3487_v60  ;;  %v510_v51 = vand.u32 65535, %v509_v45 }
 0x29c   :  { %735 = vmatprep.subr.bf16.mxu0 %v3432_v30  ;;  %v3468_v30 = vld [vmem:[%s4711_s4 + $0x88] ss:$16 sps:$4 sm:$0xff]   ;;  %4867 = vst [vmem:[#allocation32_spill] sm:$0xff] %v3475_v62  ;;  %v3536_v45 = vld [vmem:[%s4711_s4 + $0xe0] ss:$16 sps:$4 sm:$0xff]  }
 0x29d   :  { %v3351_v47 = vcvt.s32.f32 %v511_v46  ;;  %v3444_v46 = vld [vmem:[%s4711_s4 + $0x68] ss:$16 sps:$4 sm:$0xff]   ;;  %4866 = vst [vmem:[#allocation31_spill] sm:$0xff] %v3468_v30  ;;  %v512_v53 = vcvt.s32.f32 %v510_v51  ;;  %4877 = vst [vmem:[#allocation42_spill] sm:$0xff] %v3536_v45 }
 0x29e   :  { %4862 = vst [vmem:[#allocation27_spill] sm:$0xff] %v3444_v46  ;;  %697 = vmatpush1.bf16.msra.mxu1 %v3463_v58 }
 0x29f   :  { %514 = vmin.xlane.f32.xlu0 %v3351_v47  ;;  %736 = vmatpush1.bf16.msra.mxu0 %v3444_v46  ;;  %v3480_v46 = vld [vmem:[%s4711_s4 + $0xac] ss:$16 sps:$4 sm:$0xff]  }
 0x2a0   :  { %737 = vmatprep.subr.bf16.mxu0 %v3456_v2  ;;  %4868 = vst [vmem:[#allocation33_spill] sm:$0xff] %v3480_v46  ;;  %v3492_v2 = vld [vmem:[%s4711_s4 + $0xa8] ss:$16 sps:$4 sm:$0xff]   ;;  %698 = vmatprep.subr.bf16.mxu1 %v3475_v62 }
 0x2a1   :  { %4870 = vst [vmem:[#allocation35_spill] sm:$0xff] %v3492_v2 }
 0x2a2   :  { %699 = vmatpush1.bf16.msra.mxu1 %v3487_v60 }
 0x2a3   :  { %738 = vmatpush1.bf16.msra.mxu0 %v3468_v30  ;;  %v3504_v30 = vld [vmem:[%s4711_s4 + $0xcc] ss:$16 sps:$4 sm:$0xff]   ;;  %700 = vmatprep.subr.bf16.mxu1 %v3499_v56 }
 0x2a4   :  { %739 = vmatprep.subr.bf16.mxu0 %v3480_v46  ;;  %4872 = vst [vmem:[#allocation37_spill] sm:$0xff] %v3504_v30  ;;  %v3516_v46 = vld [vmem:[%s4711_s4 + $0xc8] ss:$16 sps:$4 sm:$0xff]  }
 0x2a5   :  { %4874 = vst [vmem:[#allocation39_spill] sm:$0xff] %v3516_v46 }
 0x2a6   :  { %701 = vmatpush1.bf16.msra.mxu1 %v3511_v54 }
 0x2a7   :  { %740 = vmatpush1.bf16.msra.mxu0 %v3492_v2  ;;  %702 = vmatprep.subr.bf16.mxu1 %v3526_v43 }
 0x2a8   :  { %741 = vmatprep.subr.bf16.mxu0 %v3504_v30  ;;  %v3531_v30 = vld [vmem:[%s4711_s4 + $0xec] ss:$16 sps:$4 sm:$0xff]  }
 0x2a9   :  { %4876 = vst [vmem:[#allocation41_spill] sm:$0xff] %v3531_v30 }
 0x2aa   :  { %703 = vmatpush1.bf16.msra.mxu1 %v3536_v45 }
 0x2ab   :  { %742 = vmatpush1.bf16.msra.mxu0 %v3516_v46  ;;  %782 = vmatprep.subr.bf16.mxu1 %v3061_v0 }
 0x2ac   :  { %743 = vmatprep.subr.bf16.mxu0 %v3531_v30 }
 0x32c   :  { %v515_v2 = vpop.xlane.xlu0 %514 }
 0x32d   :  { %vm516_vm2 = vcmp.eq.f32.partialorder %v3351_v47, %v515_v2  ;;  %v521_v47 = vcvt.f32.s32 %v515_v2  ;;  %v4879_v2 = vmov 0  }
 0x32e   :  { %v517_v49 = vsel %vm516_vm2, %v512_v53, inf  ;;  %v3541_v53 = vld [vmem:[%s4711_s4 + $0xe8] ss:$16 sps:$4 sm:$0xff]  }
 0x32f   :  { %518 = vmin.xlane.f32.xlu1 %v517_v49  ;;  %4878 = vst [vmem:[#allocation43_spill] sm:$0xff] %v3541_v53  ;;  %744 = vmatpush1.bf16.msra.mxu0 %v3541_v53  ;;  %v522_v51 = vshll.u32 %v521_v47, 16  ;;  %v4883_v47 = vld [vmem:[#allocation11_spill] sm:$0xff] }
 0x330   :  { %823 = vmatprep.subr.bf16.mxu0 %v3093_v6 }
 0x3bc   :  { %v519_v49 = vpop.xlane.xlu1 %518 }
 0x3bd   :  { %v520_v46 = vcvt.f32.s32 %v519_v49  ;;  %v4884_v49 = vld [vmem:[#allocation14_spill] sm:$0xff] }
 0x3bf   :  { %v523_v54 = vadd.s32 %v522_v51, %v520_v46  ;;  %v4882_v46 = vld [vmem:[#allocation38_spill] sm:$0xff] }
 0x3c1   :  { %vm524_vm3 = vcmp.eq.s32.totalorder %v3348_v33, %v523_v54  ;;  %v4880_v54 = vmov 0.0  }
 0x3c2   :  { %vm2362_vm4 = vmpackc.low %vm524_vm3, %vm524_vm3 }
 0x3c3   :  { %2363 = vmatmul.mubr.msk.bf16.vlgmr.msra.gmra.mrb[4].mxu1 %vm2362_vm4, %v4757_v42  ;;  %2365 = vmatmul.mubr.msk.bf16.vlgmr.msra.gmra.mrb[8].mxu0 %vm2362_vm4, %v4757_v42 }
 0x3c4   :  { %783 = vmatpush1.bf16.msra.mxu1 %v3066_v1  ;;  %824 = vmatpush1.bf16.msra.mxu0 %v3098_v7 }
 0x3c5   :  { %784 = vmatprep.subr.bf16.mxu1 %v3076_v3  ;;  %825 = vmatprep.subr.bf16.mxu0 %v3117_v10 }
 0x3c6   :  { %814 = vmatprep.mubr.bf16.mxu1 %v4879_v2  ;;  %855 = vmatprep.mubr.bf16.mxu0 %v4879_v2 }
 0x3c8   :  { %785 = vmatpush1.bf16.msra.mxu1 %v3082_v4  ;;  %826 = vmatpush1.bf16.msra.mxu0 %v3122_v11 }
 0x3c9   :  { %786 = vmatprep.subr.bf16.mxu1 %v3088_v5  ;;  %827 = vmatprep.subr.bf16.mxu0 %v3139_v14 }
 0x3cc   :  { %787 = vmatpush1.bf16.msra.mxu1 %v3104_v8  ;;  %828 = vmatpush1.bf16.msra.mxu0 %v3146_v15 }
 0x3cd   :  { %788 = vmatprep.subr.bf16.mxu1 %v3111_v9  ;;  %829 = vmatprep.subr.bf16.mxu0 %v3152_v16 }
 0x3d0   :  { %789 = vmatpush1.bf16.msra.mxu1 %v3129_v12  ;;  %830 = vmatpush1.bf16.msra.mxu0 %v3170_v19 }
 0x3d1   :  { %790 = vmatprep.subr.bf16.mxu1 %v3134_v13  ;;  %831 = vmatprep.subr.bf16.mxu0 %v3176_v20 }
 0x3d4   :  { %791 = vmatpush1.bf16.msra.mxu1 %v3158_v17  ;;  %832 = vmatpush1.bf16.msra.mxu0 %v3194_v23 }
 0x3d5   :  { %792 = vmatprep.subr.bf16.mxu1 %v3164_v18  ;;  %833 = vmatprep.subr.bf16.mxu0 %v3205_v25 }
 0x3d8   :  { %793 = vmatpush1.bf16.msra.mxu1 %v3181_v21  ;;  %834 = vmatpush1.bf16.msra.mxu0 %v3215_v27 }
 0x3d9   :  { %794 = vmatprep.subr.bf16.mxu1 %v3187_v22  ;;  %835 = vmatprep.subr.bf16.mxu0 %v3221_v28 }
 0x3dc   :  { %795 = vmatpush1.bf16.msra.mxu1 %v3199_v24  ;;  %836 = vmatpush1.bf16.msra.mxu0 %v3237_v31 }
 0x3dd   :  { %796 = vmatprep.subr.bf16.mxu1 %v3210_v26  ;;  %837 = vmatprep.subr.bf16.mxu0 %v3243_v32 }
 0x3e0   :  { %797 = vmatpush1.bf16.msra.mxu1 %v3228_v29  ;;  %838 = vmatpush1.bf16.msra.mxu0 %v3251_v34 }
 0x3e1   :  { %2528 = vmatprep.subr.bf16.mxu1 %v4880_v54  ;;  %957 = vmatprep.subr.bf16.mxu0 %v3357_v48 }
 0x3e3   :  { %815 = vmatmul.mubr.bf16.vlgmr.msra.gmra.mrb[8].mxu1 %v3335_v57  ;;  %856 = vmatmul.mubr.bf16.vlgmr.msra.gmra.mrb[12].mxu0 %v3335_v57  ;;  %v4881_v57 = vld [vmem:[#allocation10_spill] sm:$0xff] }
 0x3e4   :  { %2529 = vmatpush3.bf16.msra.mxu1 %v3261_v35  ;;  %2544 = vmatprep.mubr.msk.bf16.mxu1 %vm3008_vm0, %v4880_v54 }
 0x3e5   :  { %2530 = vmatprep.subr.bf16.mxu1 %v4880_v54  ;;  %958 = vmatpush1.bf16.msra.mxu0 %v3367_v50 }
 0x3e6   :  { %959 = vmatprep.subr.bf16.mxu0 %v3377_v52  ;;  %989 = vmatprep.mubr.bf16.mxu0 %v4879_v2 }
 0x3e8   :  { %2531 = vmatpush3.bf16.msra.mxu1 %v3269_v37 }
 0x3e9   :  { %2532 = vmatprep.subr.bf16.mxu1 %v4880_v54  ;;  %960 = vmatpush1.bf16.msra.mxu0 %v3391_v55 }
 0x3ea   :  { %961 = vmatprep.subr.bf16.mxu0 %v3403_v59 }
 0x3ec   :  { %2533 = vmatpush3.bf16.msra.mxu1 %v3276_v38 }
 0x3ed   :  { %2534 = vmatprep.subr.bf16.mxu1 %v4880_v54  ;;  %962 = vmatpush1.bf16.msra.mxu0 %v3415_v61 }
 0x3ee   :  { %963 = vmatprep.subr.bf16.mxu0 %v3427_v63 }
 0x3f0   :  { %2535 = vmatpush3.bf16.msra.mxu1 %v3283_v39 }
 0x3f1   :  { %2536 = vmatprep.subr.bf16.mxu1 %v4880_v54  ;;  %964 = vmatpush1.bf16.msra.mxu0 %v3439_v44 }
 0x3f2   :  { %965 = vmatprep.subr.bf16.mxu0 %v3451_v36 }
 0x3f4   :  { %2537 = vmatpush3.bf16.msra.mxu1 %v3290_v40 }
 0x3f5   :  { %2538 = vmatprep.subr.bf16.mxu1 %v4880_v54  ;;  %966 = vmatpush1.bf16.msra.mxu0 %v3463_v58 }
 0x3f6   :  { %967 = vmatprep.subr.bf16.mxu0 %v3475_v62 }
 0x3f8   :  { %2539 = vmatpush3.bf16.msra.mxu1 %v3296_v41 }
 0x3f9   :  { %2540 = vmatprep.subr.bf16.mxu1 %v4880_v54  ;;  %968 = vmatpush1.bf16.msra.mxu0 %v3487_v60 }
 0x3fa   :  { %969 = vmatprep.subr.bf16.mxu0 %v3499_v56 }
 0x3fc   :  { %2541 = vmatpush3.bf16.msra.mxu1 %v4881_v57 }
 0x3fd   :  { %2542 = vmatprep.subr.bf16.mxu1 %v4880_v54  ;;  %970 = vmatpush1.bf16.msra.mxu0 %v4882_v46  ;;  %v771_v46 = vstv %s2366_s29 }
 0x3fe   :  { %971 = vmatprep.subr.bf16.mxu0 %v3526_v43  ;;  %vm3623_vm5 = vcmp.ne.s32.totalorder %v771_v46, 0 }
 0x400   :  { %2543 = vmatpush3.bf16.msra.mxu1 %v4883_v47 }
 0x401   :  { %998 = vmatprep.subr.bf16.mxu1 %v4884_v49  ;;  %972 = vmatpush1.bf16.msra.mxu0 %v3536_v45  ;;  %v2367_v45 = vld [vmem:[%s4708_s1 + $0x20] sm:$0xff] }
 0x402   :  { %1051 = vmatprep.subr.bf16.mxu0 %v3061_v0  ;;  %v2369_v0 = vld [vmem:[%s4708_s1 + $0x30] sm:$0xff] }
 0x496   :  { %v722_v51 = vpop.f32.mrb[4].mxu1  ;;  %v763_v42 = vpop.f32.mrb[8].mxu0 }
 0x497   :  { %v724_v60 = vpop.f32.mrb[5].mxu1  ;;  %v765_v56 = vpop.f32.mrb[9].mxu0  ;;  %v780_v46 = vsel %vm3623_vm5, %v2369_v0, %v763_v42 }
 0x498   :  { %v726_v41 = vpop.f32.mrb[6].mxu1  ;;  %v767_v57 = vpop.f32.mrb[10].mxu0 }
 0x499   :  { %v727_v62 = vpop.f32.mrb[7].mxu1  ;;  %v768_v58 = vpop.f32.mrb[11].mxu0  ;;  %v2368_v41 = vld [vmem:[%s4708_s1 + $0x28] sm:$0xff] }
 0x49a   :  { %v2370_v58 = vld [vmem:[%s4708_s1 + $0x38] sm:$0xff]  ;;  %v778_v62 = vsel %vm3623_vm5, %v2367_v45, %v722_v51  ;;  %v779_v36 = vsel %vm3623_vm5, %v2368_v41, %v724_v60  ;;  %v4888_v41 = vld [vmem:[#allocation15_spill] sm:$0xff] }
 0x49b   :  { %v781_v39 = vsel %vm3623_vm5, %v2370_v58, %v765_v56  ;;  %v4889_v58 = vld [vmem:[#allocation17_spill] sm:$0xff] }
 0x4b6   :  { %v816_v57 = vpop.f32.mrb[8].mxu1  ;;  %v857_v49 = vpop.f32.mrb[12].mxu0 }
 0x4b7   :  { %v864_v47 = vadd.f32 %v816_v57, %v778_v62  ;;  %v866_v40 = vadd.f32 %v857_v49, %v780_v46  ;;  %v818_v44 = vpop.f32.mrb[9].mxu1  ;;  %v859_v63 = vpop.f32.mrb[13].mxu0  ;;  %v4890_v62 = vld [vmem:[#allocation19_spill] sm:$0xff]  ;;  %v4891_v57 = vld [vmem:[#allocation21_spill] sm:$0xff] }
 0x4b8   :  { %v865_v61 = vadd.f32 %v818_v44, %v779_v36  ;;  %v867_v38 = vadd.f32 %v859_v63, %v781_v39  ;;  %v820_v59 = vpop.f32.mrb[10].mxu1  ;;  %v861_v55 = vpop.f32.mrb[14].mxu0  ;;  %v4887_v44 = vld [vmem:[#allocation12_spill] sm:$0xff]  ;;  %v4892_v46 = vld [vmem:[#allocation23_spill] sm:$0xff] }
 0x4b9   :  { %v2371_v45 = vmul.f32 -1.442695, %v864_v47  ;;  %v821_v51 = vpop.f32.mrb[11].mxu1  ;;  %v862_v37 = vpop.f32.mrb[15].mxu0  ;;  %v2373_v42 = vmul.f32 -1.442695, %v866_v40 }
 0x4ba   :  { %v2372_v52 = vmul.f32 -1.442695, %v865_v61  ;;  %v4894_v51 = vld [vmem:[#allocation27_spill] sm:$0xff] }
 0x4bb   :  { %2785 = vpow2.f32 %v2371_v45  ;;  %v4893_v45 = vld [vmem:[#allocation25_spill] sm:$0xff] }
 0x4bc   :  { %2787 = vpow2.f32 %v2372_v52 }
 0x4bd   :  { %2789 = vtanh.f32 %v867_v38 }
 0x4be   :  { %2791 = vpow2.f32 %v2373_v42  ;;  %v4895_v42 = vld [vmem:[#allocation29_spill] sm:$0xff] }
 0x4c5   :  { %v2786_v49 = vpop.eup %2785 }
 0x4c6   :  { %v871_v0 = vadd.f32 1.0, %v2786_v49  ;;  %v2788_v60 = vpop.eup %2787  ;;  %v4896_v49 = vld [vmem:[#allocation31_spill] sm:$0xff] }
 0x4c7   :  { %v877_v43 = vadd.f32 1.0, %v2788_v60  ;;  %v2790_v56 = vpop.eup %2789  ;;  %v4898_v60 = vld [vmem:[#allocation35_spill] sm:$0xff] }
 0x4c8   :  { %2793 = vrcp.f32 %v871_v0  ;;  %v2792_v36 = vpop.eup %2791  ;;  %v4897_v0 = vld [vmem:[#allocation33_spill] sm:$0xff] }
 0x4c9   :  { %2795 = vrcp.f32 %v877_v43  ;;  %v883_v63 = vadd.f32 1.0, %v2792_v36  ;;  %v4899_v43 = vld [vmem:[#allocation37_spill] sm:$0xff] }
 0x4cb   :  { %2797 = vrcp.f32 %v883_v63 }
 0x4d2   :  { %v2794_v39 = vpop.eup %2793 }
 0x4d3   :  { %v888_v59 = vmul.f32 %v2794_v39, %v2790_v56  ;;  %v2796_v55 = vpop.eup %2795  ;;  %v4900_v56 = vld [vmem:[#allocation39_spill] sm:$0xff]  ;;  %v4901_v39 = vld [vmem:[#allocation13_spill] sm:$0xff] }
 0x4d4   :  { %v887_v37 = vmul.f32 %v2796_v55, %v4887_v44 }
 0x4d5   :  { %v2798_v40 = vpop.eup %2797 }
 0x4d6   :  { %v3648_v61 = vadd.f32 %v888_v59, %v887_v37 }
 0x4d8   :  { %2799 = vtanh.f32 %v3648_v61 }
 0x4e2   :  { %v2800_v38 = vpop.eup %2799 }
 0x4e3   :  { %v891_v52 = vmul.f32 %v2800_v38, %v2798_v40 }
 0x4e5   :  { %v3651_v47 = vpack.c.bf16 %v891_v52, %v891_v52 }
 0x4e7   :  { %2545 = vmatmul.mubr.bf16.vlgmr.msra.gmra.mrb[12].mxu1 %v3651_v47 }
 0x4e8   :  { %999 = vmatpush1.bf16.msra.mxu1 %v4888_v41  ;;  %1030 = vmatprep.mubr.bf16.mxu1 %v4879_v2 }
 0x4e9   :  { %1000 = vmatprep.subr.bf16.mxu1 %v4889_v58 }
 0x4ec   :  { %1001 = vmatpush1.bf16.msra.mxu1 %v4890_v62 }
 0x4ed   :  { %1002 = vmatprep.subr.bf16.mxu1 %v4891_v57 }
 0x4f0   :  { %1003 = vmatpush1.bf16.msra.mxu1 %v4892_v46 }
 0x4f1   :  { %1004 = vmatprep.subr.bf16.mxu1 %v4893_v45 }
 0x4f4   :  { %1005 = vmatpush1.bf16.msra.mxu1 %v4894_v51 }
 0x4f5   :  { %1006 = vmatprep.subr.bf16.mxu1 %v4895_v42 }
 0x4f8   :  { %1007 = vmatpush1.bf16.msra.mxu1 %v4896_v49 }
 0x4f9   :  { %1008 = vmatprep.subr.bf16.mxu1 %v4897_v0 }
 0x4fc   :  { %1009 = vmatpush1.bf16.msra.mxu1 %v4898_v60 }
 0x4fd   :  { %1010 = vmatprep.subr.bf16.mxu1 %v4899_v43 }
 0x500   :  { %1011 = vmatpush1.bf16.msra.mxu1 %v4900_v56 }
 0x501   :  { %1012 = vmatprep.subr.bf16.mxu1 %v3531_v30 }
 0x504   :  { %1013 = vmatpush1.bf16.msra.mxu1 %v3541_v53 }
 0x505   :  { %1092 = vmatprep.subr.bf16.mxu1 %v3093_v6 }
 0x5ba   :  { %v927_v36 = vpop.f32.mrb[12].mxu1 }
 0x5bb   :  { %v928_v59 = vadd.f32 %v4901_v39, %v927_v36  ;;  %v2546_v55 = vpop.f32.mrb[13].mxu1 }
 0x5bc   :  { %v930_v63 = vpop.f32.mrb[14].mxu1 }
 0x5bd   :  { %2374 = vst [vmem:[%s4715_s8 + $0x8] sm:$0xff] %v928_v59  ;;  %935 = vmax.xlane.f32.xlu1 %v928_v59  ;;  %v2547_v44 = vpop.f32.mrb[15].mxu1 }
 0x64a   :  { %v936_v37 = vpop.xlane.xlu1 %935 }
 0x64b   :  { %vm937_vm6 = vcmp.eq.f32.partialorder %v928_v59, %v936_v37  ;;  %v4902_v59 = vmov 1.0|1.0  }
 0x64c   :  { %v938_v40 = vsel %vm937_vm6, %v3348_v33, 128 }
 0x64d   :  { %v940_v38 = vshra.s32 %v938_v40, 16  ;;  %v939_v53 = vand.u32 65535, %v938_v40 }
 0x64f   :  { %v942_v52 = vcvt.s32.f32 %v940_v38  ;;  %v941_v30 = vcvt.s32.f32 %v939_v53 }
 0x651   :  { %943 = vmin.xlane.f32.xlu0 %v942_v52 }
 0x6de   :  { %v944_v6 = vpop.xlane.xlu0 %943 }
 0x6df   :  { %vm945_vm7 = vcmp.eq.f32.partialorder %v942_v52, %v944_v6  ;;  %v950_v55 = vcvt.f32.s32 %v944_v6 }
 0x6e0   :  { %v946_v36 = vsel %vm945_vm7, %v941_v30, inf  ;;  %v1040_v30 = vstv %s2380_s17 }
 0x6e1   :  { %947 = vmin.xlane.f32.xlu1 %v946_v36  ;;  %v951_v39 = vshll.u32 %v950_v55, 16  ;;  %vm3755_vm10 = vcmp.ne.s32.totalorder %v1040_v30, 0 }
 0x76e   :  { %v948_v63 = vpop.xlane.xlu1 %947 }
 0x76f   :  { %v949_v56 = vcvt.f32.s32 %v948_v63 }
 0x771   :  { %v952_v43 = vadd.s32 %v951_v39, %v949_v56  ;;  %v2382_v56 = vld [vmem:[%s4708_s1 + $0x48] sm:$0xff]  ;;  %v2384_v39 = vld [vmem:[%s4708_s1 + $0x58] sm:$0xff] }
 0x773   :  { %vm953_vm8 = vcmp.eq.s32.totalorder %v3348_v33, %v952_v43  ;;  %v2383_v43 = vld [vmem:[%s4708_s1 + $0x50] sm:$0xff] }
 0x774   :  { %vm2376_vm9 = vmpackc.low %vm953_vm8, %vm953_vm8 }
 0x775   :  { %2377 = vmatmul.mubr.msk.bf16.vlgmr.msra.gmra.mrb[16].mxu0 %vm2376_vm9, %v4902_v59  ;;  %2379 = vmatmul.mubr.msk.bf16.vlgmr.msra.gmra.mrb[16].mxu1 %vm2376_vm9, %v4902_v59 }
 0x776   :  { %1052 = vmatpush1.bf16.msra.mxu0 %v3066_v1  ;;  %1093 = vmatpush1.bf16.msra.mxu1 %v3098_v7  ;;  %v4903_v1 = vld [vmem:[#allocation16_spill] sm:$0xff]  ;;  %v4907_v7 = vld [vmem:[#allocation6_spill] sm:$0xff] }
 0x777   :  { %1053 = vmatprep.subr.bf16.mxu0 %v3076_v3  ;;  %1094 = vmatprep.subr.bf16.mxu1 %v3117_v10  ;;  %v4904_v3 = vld [vmem:[#allocation5_spill] sm:$0xff]  ;;  %v4910_v10 = vld [vmem:[#allocation7_spill] sm:$0xff] }
 0x778   :  { %1083 = vmatprep.mubr.bf16.mxu0 %v4879_v2  ;;  %1124 = vmatprep.mubr.bf16.mxu1 %v4879_v2 }
 0x77a   :  { %1054 = vmatpush1.bf16.msra.mxu0 %v3082_v4  ;;  %1095 = vmatpush1.bf16.msra.mxu1 %v3122_v11  ;;  %v4905_v4 = vld [vmem:[#allocation18_spill] sm:$0xff] }
 0x77b   :  { %1055 = vmatprep.subr.bf16.mxu0 %v3088_v5  ;;  %1096 = vmatprep.subr.bf16.mxu1 %v3139_v14  ;;  %v4906_v5 = vld [vmem:[#allocation20_spill] sm:$0xff]  ;;  %v4911_v11 = vld [vmem:[#allocation26_spill] sm:$0xff] }
 0x77c   :  { %v4914_v14 = vld [vmem:[#allocation30_spill] sm:$0xff] }
 0x77e   :  { %1056 = vmatpush1.bf16.msra.mxu0 %v3104_v8  ;;  %1097 = vmatpush1.bf16.msra.mxu1 %v3146_v15  ;;  %v4908_v8 = vld [vmem:[#allocation22_spill] sm:$0xff]  ;;  %v4915_v15 = vld [vmem:[#allocation32_spill] sm:$0xff] }
 0x77f   :  { %1057 = vmatprep.subr.bf16.mxu0 %v3111_v9  ;;  %1098 = vmatprep.subr.bf16.mxu1 %v3152_v16  ;;  %v4909_v9 = vld [vmem:[#allocation24_spill] sm:$0xff]  ;;  %v4916_v16 = vld [vmem:[#allocation9_spill] sm:$0xff] }
 0x782   :  { %1058 = vmatpush1.bf16.msra.mxu0 %v3129_v12  ;;  %1099 = vmatpush1.bf16.msra.mxu1 %v3170_v19  ;;  %v4912_v12 = vld [vmem:[#allocation28_spill] sm:$0xff]  ;;  %v4919_v19 = vld [vmem:[#allocation10_spill] sm:$0xff] }
 0x783   :  { %1059 = vmatprep.subr.bf16.mxu0 %v3134_v13  ;;  %1100 = vmatprep.subr.bf16.mxu1 %v3176_v20  ;;  %v4913_v13 = vld [vmem:[#allocation8_spill] sm:$0xff]  ;;  %v4920_v20 = vld [vmem:[#allocation38_spill] sm:$0xff] }
 0x786   :  { %1060 = vmatpush1.bf16.msra.mxu0 %v3158_v17  ;;  %1101 = vmatpush1.bf16.msra.mxu1 %v3194_v23  ;;  %v4917_v17 = vld [vmem:[#allocation34_spill] sm:$0xff] }
 0x787   :  { %1061 = vmatprep.subr.bf16.mxu0 %v3164_v18  ;;  %1102 = vmatprep.subr.bf16.mxu1 %v3205_v25  ;;  %v4918_v18 = vld [vmem:[#allocation36_spill] sm:$0xff]  ;;  %v4923_v23 = vld [vmem:[#allocation14_spill] sm:$0xff]  ;;  %v3752_v25 = vld [vmem:[%s4712_s5 + $0x4] ss:$16 sps:$4 sm:$0xff]  }
 0x788   :  { %4925 = vst [vmem:[#allocation12_spill] sm:$0xff] %v3752_v25 }
 0x78a   :  { %1062 = vmatpush1.bf16.msra.mxu0 %v3181_v21  ;;  %1103 = vmatpush1.bf16.msra.mxu1 %v3215_v27  ;;  %v4921_v21 = vld [vmem:[#allocation40_spill] sm:$0xff] }
 0x78b   :  { %1063 = vmatprep.subr.bf16.mxu0 %v3187_v22  ;;  %1104 = vmatprep.subr.bf16.mxu1 %v3221_v28  ;;  %v4922_v22 = vld [vmem:[#allocation11_spill] sm:$0xff] }
 0x78e   :  { %1064 = vmatpush1.bf16.msra.mxu0 %v3199_v24  ;;  %1105 = vmatpush1.bf16.msra.mxu1 %v3237_v31  ;;  %v4924_v24 = vld [vmem:[#allocation42_spill] sm:$0xff] }
 0x78f   :  { %1065 = vmatprep.subr.bf16.mxu0 %v3210_v26  ;;  %1106 = vmatprep.subr.bf16.mxu1 %v3243_v32 }
 0x792   :  { %1066 = vmatpush1.bf16.msra.mxu0 %v3228_v29  ;;  %1107 = vmatpush1.bf16.msra.mxu1 %v3251_v34 }
 0x793   :  { %2548 = vmatprep.subr.bf16.mxu0 %v4880_v54  ;;  %1226 = vmatprep.subr.bf16.mxu1 %v3357_v48 }
 0x795   :  { %1084 = vmatmul.mubr.bf16.vlgmr.msra.gmra.mrb[20].mxu0 %v3651_v47  ;;  %1125 = vmatmul.mubr.bf16.vlgmr.msra.gmra.mrb[20].mxu1 %v3651_v47  ;;  %v2381_v47 = vld [vmem:[%s4708_s1 + $0x40] sm:$0xff] }
 0x796   :  { %2549 = vmatpush3.bf16.msra.mxu0 %v3261_v35  ;;  %2564 = vmatprep.mubr.msk.bf16.mxu0 %vm3008_vm0, %v4880_v54 }
 0x797   :  { %2550 = vmatprep.subr.bf16.mxu0 %v4880_v54  ;;  %1227 = vmatpush1.bf16.msra.mxu1 %v3367_v50 }
 0x798   :  { %1228 = vmatprep.subr.bf16.mxu1 %v4903_v1  ;;  %1258 = vmatprep.mubr.bf16.mxu1 %v4879_v2 }
 0x79a   :  { %2551 = vmatpush3.bf16.msra.mxu0 %v4904_v3 }
 0x79b   :  { %2552 = vmatprep.subr.bf16.mxu0 %v4880_v54  ;;  %1229 = vmatpush1.bf16.msra.mxu1 %v4905_v4 }
 0x79c   :  { %1230 = vmatprep.subr.bf16.mxu1 %v4906_v5 }
 0x79e   :  { %2553 = vmatpush3.bf16.msra.mxu0 %v4907_v7 }
 0x79f   :  { %2554 = vmatprep.subr.bf16.mxu0 %v4880_v54  ;;  %1231 = vmatpush1.bf16.msra.mxu1 %v4908_v8 }
 0x7a0   :  { %1232 = vmatprep.subr.bf16.mxu1 %v4909_v9 }
 0x7a2   :  { %2555 = vmatpush3.bf16.msra.mxu0 %v4910_v10 }
 0x7a3   :  { %2556 = vmatprep.subr.bf16.mxu0 %v4880_v54  ;;  %1233 = vmatpush1.bf16.msra.mxu1 %v4911_v11 }
 0x7a4   :  { %1234 = vmatprep.subr.bf16.mxu1 %v4912_v12 }
 0x7a6   :  { %2557 = vmatpush3.bf16.msra.mxu0 %v4913_v13 }
 0x7a7   :  { %2558 = vmatprep.subr.bf16.mxu0 %v4880_v54  ;;  %1235 = vmatpush1.bf16.msra.mxu1 %v4914_v14 }
 0x7a8   :  { %1236 = vmatprep.subr.bf16.mxu1 %v4915_v15 }
 0x7aa   :  { %2559 = vmatpush3.bf16.msra.mxu0 %v4916_v16 }
 0x7ab   :  { %2560 = vmatprep.subr.bf16.mxu0 %v4880_v54  ;;  %1237 = vmatpush1.bf16.msra.mxu1 %v4917_v17 }
 0x7ac   :  { %1238 = vmatprep.subr.bf16.mxu1 %v4918_v18 }
 0x7ae   :  { %2561 = vmatpush3.bf16.msra.mxu0 %v4919_v19 }
 0x7af   :  { %2562 = vmatprep.subr.bf16.mxu0 %v4880_v54  ;;  %1239 = vmatpush1.bf16.msra.mxu1 %v4920_v20 }
 0x7b0   :  { %1240 = vmatprep.subr.bf16.mxu1 %v4921_v21 }
 0x7b2   :  { %2563 = vmatpush3.bf16.msra.mxu0 %v4922_v22 }
 0x7b3   :  { %1267 = vmatprep.subr.bf16.mxu0 %v4923_v23  ;;  %1241 = vmatpush1.bf16.msra.mxu1 %v4924_v24 }
 0x7b4   :  { %1320 = vmatprep.subr.bf16.mxu1 %v3752_v25 }
 0x848   :  { %v991_v26 = vpop.f32.mrb[16].mxu0  ;;  %v1032_v27 = vpop.f32.mrb[16].mxu1 }
 0x849   :  { %v993_v28 = vpop.f32.mrb[17].mxu0  ;;  %v1034_v29 = vpop.f32.mrb[17].mxu1  ;;  %v1047_v44 = vsel %vm3755_vm10, %v2381_v47, %v991_v26  ;;  %v1049_v40 = vsel %vm3755_vm10, %v2383_v43, %v1032_v27 }
 0x84a   :  { %v995_v31 = vpop.f32.mrb[18].mxu0  ;;  %v1036_v32 = vpop.f32.mrb[18].mxu1  ;;  %v1048_v36 = vsel %vm3755_vm10, %v2382_v56, %v993_v28  ;;  %v1050_v63 = vsel %vm3755_vm10, %v2384_v39, %v1034_v29 }
 0x84b   :  { %v996_v34 = vpop.f32.mrb[19].mxu0  ;;  %v1037_v35 = vpop.f32.mrb[19].mxu1 }
 0x868   :  { %v1085_v37 = vpop.f32.mrb[20].mxu0  ;;  %v1126_v38 = vpop.f32.mrb[20].mxu1 }
 0x869   :  { %v1133_v52 = vadd.f32 %v1085_v37, %v1047_v44  ;;  %v1135_v6 = vadd.f32 %v1126_v38, %v1049_v40  ;;  %v1087_v55 = vpop.f32.mrb[21].mxu0  ;;  %v1128_v3 = vpop.f32.mrb[21].mxu1 }
 0x86a   :  { %v1134_v7 = vadd.f32 %v1087_v55, %v1048_v36  ;;  %v1136_v10 = vadd.f32 %v1128_v3, %v1050_v63  ;;  %v1089_v13 = vpop.f32.mrb[22].mxu0  ;;  %v1130_v16 = vpop.f32.mrb[22].mxu1 }
 0x86b   :  { %v2385_v19 = vmul.f32 -1.442695, %v1133_v52  ;;  %v1090_v22 = vpop.f32.mrb[23].mxu0  ;;  %v1131_v26 = vpop.f32.mrb[23].mxu1  ;;  %v2387_v27 = vmul.f32 -1.442695, %v1135_v6 }
 0x86c   :  { %v2386_v31 = vmul.f32 -1.442695, %v1134_v7 }
 0x86d   :  { %2801 = vpow2.f32 %v2385_v19 }
 0x86e   :  { %2803 = vpow2.f32 %v2386_v31  ;;  %v3819_v31 = vld [vmem:[%s4712_s5] ss:$16 sps:$4 sm:$0xff]  }
 0x86f   :  { %2805 = vtanh.f32 %v1136_v10 }
 0x870   :  { %2807 = vpow2.f32 %v2387_v27  ;;  %v3825_v27 = vld [vmem:[%s4712_s5 + $0x8] ss:$16 sps:$4 sm:$0xff]  }
 0x877   :  { %v2802_v32 = vpop.eup %2801 }
 0x878   :  { %v1140_v34 = vadd.f32 1.0, %v2802_v32  ;;  %v2804_v28 = vpop.eup %2803  ;;  %v3831_v32 = vld [vmem:[%s4712_s5 + $0x24] ss:$16 sps:$4 sm:$0xff]  }
 0x879   :  { %v1146_v35 = vadd.f32 1.0, %v2804_v28  ;;  %v2806_v29 = vpop.eup %2805  ;;  %v3845_v28 = vld [vmem:[%s4712_s5 + $0x20] ss:$16 sps:$4 sm:$0xff]  }
 0x87a   :  { %2809 = vrcp.f32 %v1140_v34  ;;  %v2808_v30 = vpop.eup %2807  ;;  %v3837_v34 = vld [vmem:[%s4712_s5 + $0x2c] ss:$16 sps:$4 sm:$0xff]  }
 0x87b   :  { %2811 = vrcp.f32 %v1146_v35  ;;  %v1152_v56 = vadd.f32 1.0, %v2808_v30  ;;  %v3851_v35 = vld [vmem:[%s4712_s5 + $0x28] ss:$16 sps:$4 sm:$0xff]   ;;  %v3863_v30 = vld [vmem:[%s4712_s5 + $0x4c] ss:$16 sps:$4 sm:$0xff]  }
 0x87d   :  { %2813 = vrcp.f32 %v1152_v56  ;;  %v3887_v56 = vld [vmem:[%s4712_s5 + $0x6c] ss:$16 sps:$4 sm:$0xff]  }
 0x884   :  { %v2810_v53 = vpop.eup %2809 }
 0x885   :  { %v1157_v47 = vmul.f32 %v2810_v53, %v2806_v29  ;;  %v2812_v43 = vpop.eup %2811  ;;  %v3857_v29 = vld [vmem:[%s4712_s5 + $0x44] ss:$16 sps:$4 sm:$0xff]   ;;  %v3869_v53 = vld [vmem:[%s4712_s5 + $0x40] ss:$16 sps:$4 sm:$0xff]  }
 0x886   :  { %v1156_v39 = vmul.f32 %v2812_v43, %v3648_v61  ;;  %v4928_v61 = vld [vmem:[#allocation37_spill] sm:$0xff] }
 0x887   :  { %v2814_v37 = vpop.eup %2813  ;;  %v3881_v43 = vld [vmem:[%s4712_s5 + $0x64] ss:$16 sps:$4 sm:$0xff]  }
 0x888   :  { %v3780_v44 = vadd.f32 %v1157_v47, %v1156_v39  ;;  %v3875_v47 = vld [vmem:[%s4712_s5 + $0x48] ss:$16 sps:$4 sm:$0xff]   ;;  %v3893_v39 = vld [vmem:[%s4712_s5 + $0x60] ss:$16 sps:$4 sm:$0xff]  }
 0x88a   :  { %2815 = vtanh.f32 %v3780_v44 }
 0x894   :  { %v2816_v40 = vpop.eup %2815 }
 0x895   :  { %v1160_v38 = vmul.f32 %v2816_v40, %v2814_v37  ;;  %v3899_v37 = vld [vmem:[%s4712_s5 + $0x68] ss:$16 sps:$4 sm:$0xff]   ;;  %v3905_v40 = vld [vmem:[%s4712_s5 + $0x84] ss:$16 sps:$4 sm:$0xff]  }
 0x897   :  { %v3783_v52 = vpack.c.bf16 %v1160_v38, %v1160_v38  ;;  %v3911_v38 = vld [vmem:[%s4712_s5 + $0x8c] ss:$16 sps:$4 sm:$0xff]  }
 0x899   :  { %2565 = vmatmul.mubr.bf16.vlgmr.msra.gmra.mrb[24].mxu0 %v3783_v52 }
 0x89a   :  { %1268 = vmatpush1.bf16.msra.mxu0 %v4888_v41  ;;  %1299 = vmatprep.mubr.bf16.mxu0 %v4879_v2  ;;  %v4929_v41 = vld [vmem:[#allocation39_spill] sm:$0xff] }
 0x89b   :  { %1269 = vmatprep.subr.bf16.mxu0 %v4889_v58  ;;  %v4930_v58 = vld [vmem:[#allocation41_spill] sm:$0xff] }
 0x89e   :  { %1270 = vmatpush1.bf16.msra.mxu0 %v4890_v62  ;;  %v4931_v62 = vld [vmem:[#allocation43_spill] sm:$0xff] }
 0x89f   :  { %1271 = vmatprep.subr.bf16.mxu0 %v4891_v57  ;;  %v3805_v57 = vld [vmem:[%s4712_s5 + $0xc] ss:$16 sps:$4 sm:$0xff]  }
 0x8a0   :  { %4932 = vst [vmem:[#allocation15_spill] sm:$0xff] %v3805_v57 }
 0x8a2   :  { %1272 = vmatpush1.bf16.msra.mxu0 %v4892_v46 }
 0x8a3   :  { %1273 = vmatprep.subr.bf16.mxu0 %v4893_v45  ;;  %v4933_v45 = vld [vmem:[#allocation13_spill] sm:$0xff] }
 0x8a6   :  { %1274 = vmatpush1.bf16.msra.mxu0 %v4894_v51 }
 0x8a7   :  { %1275 = vmatprep.subr.bf16.mxu0 %v4895_v42 }
 0x8aa   :  { %1276 = vmatpush1.bf16.msra.mxu0 %v4896_v49 }
 0x8ab   :  { %1277 = vmatprep.subr.bf16.mxu0 %v4897_v0 }
 0x8ae   :  { %1278 = vmatpush1.bf16.msra.mxu0 %v4898_v60 }
 0x8af   :  { %1279 = vmatprep.subr.bf16.mxu0 %v4928_v61  ;;  %v3917_v61 = vld [vmem:[%s4712_s5 + $0x80] ss:$16 sps:$4 sm:$0xff]  }
 0x8b2   :  { %1280 = vmatpush1.bf16.msra.mxu0 %v4929_v41  ;;  %v3923_v41 = vld [vmem:[%s4712_s5 + $0x88] ss:$16 sps:$4 sm:$0xff]  }
 0x8b3   :  { %1281 = vmatprep.subr.bf16.mxu0 %v4930_v58 }
 0x8b6   :  { %1282 = vmatpush1.bf16.msra.mxu0 %v4931_v62 }
 0x8b7   :  { %1361 = vmatprep.subr.bf16.mxu0 %v3805_v57 }
 0x96c   :  { %v1196_v46 = vpop.f32.mrb[24].mxu0 }
 0x96d   :  { %v1197_v51 = vadd.f32 %v4933_v45, %v1196_v46  ;;  %v2566_v42 = vpop.f32.mrb[25].mxu0  ;;  %v3929_v46 = vld [vmem:[%s4712_s5 + $0xa4] ss:$16 sps:$4 sm:$0xff]   ;;  %v3935_v45 = vld [vmem:[%s4712_s5 + $0xac] ss:$16 sps:$4 sm:$0xff]  }
 0x96e   :  { %v1199_v49 = vpop.f32.mrb[26].mxu0  ;;  %v3947_v42 = vld [vmem:[%s4712_s5 + $0xa8] ss:$16 sps:$4 sm:$0xff]  }
 0x96f   :  { %2388 = vst [vmem:[%s4715_s8 + $0x10] sm:$0xff] %v1197_v51  ;;  %1204 = vmax.xlane.f32.xlu0 %v1197_v51  ;;  %v2567_v0 = vpop.f32.mrb[27].mxu0  ;;  %v3953_v49 = vld [vmem:[%s4712_s5 + $0xc4] ss:$16 sps:$4 sm:$0xff]  }
 0x970   :  { %v3959_v0 = vld [vmem:[%s4712_s5 + $0xcc] ss:$16 sps:$4 sm:$0xff]  }
 0x971   :  { %4934 = vst [vmem:[#allocation17_spill] sm:$0xff] %v3959_v0 }
 0x9fc   :  { %v1205_v60 = vpop.xlane.xlu0 %1204 }
 0x9fd   :  { %vm1206_vm11 = vcmp.eq.f32.partialorder %v1197_v51, %v1205_v60  ;;  %v3941_v51 = vld [vmem:[%s4712_s5 + $0xa0] ss:$16 sps:$4 sm:$0xff]  }
 0x9fe   :  { %v1207_v6 = vsel %vm1206_vm11, %v3348_v33, 128  ;;  %v3965_v60 = vld [vmem:[%s4712_s5 + $0xc0] ss:$16 sps:$4 sm:$0xff]  }
 0x9ff   :  { %v1209_v36 = vshra.s32 %v1207_v6, 16  ;;  %v1208_v63 = vand.u32 65535, %v1207_v6  ;;  %4935 = vst [vmem:[#allocation19_spill] sm:$0xff] %v3965_v60  ;;  %v3971_v6 = vld [vmem:[%s4712_s5 + $0xc8] ss:$16 sps:$4 sm:$0xff]  }
 0xa00   :  { %4936 = vst [vmem:[#allocation21_spill] sm:$0xff] %v3971_v6 }
 0xa01   :  { %v1211_v55 = vcvt.s32.f32 %v1209_v36  ;;  %v1210_v7 = vcvt.s32.f32 %v1208_v63  ;;  %v3977_v36 = vld [vmem:[%s4712_s5 + $0xe4] ss:$16 sps:$4 sm:$0xff]   ;;  %v3989_v63 = vld [vmem:[%s4712_s5 + $0xe0] ss:$16 sps:$4 sm:$0xff]  }
 0xa02   :  { %4937 = vst [vmem:[#allocation23_spill] sm:$0xff] %v3977_v36  ;;  %4939 = vst [vmem:[#allocation27_spill] sm:$0xff] %v3989_v63 }
 0xa03   :  { %1212 = vmin.xlane.f32.xlu1 %v1211_v55 }
 0xa90   :  { %v1213_v3 = vpop.xlane.xlu1 %1212 }
 0xa91   :  { %vm1214_vm12 = vcmp.eq.f32.partialorder %v1211_v55, %v1213_v3  ;;  %v1219_v13 = vcvt.f32.s32 %v1213_v3  ;;  %v3983_v55 = vld [vmem:[%s4712_s5 + $0xec] ss:$16 sps:$4 sm:$0xff]   ;;  %v3995_v3 = vld [vmem:[%s4712_s5 + $0xe8] ss:$16 sps:$4 sm:$0xff]  }
 0xa92   :  { %v1215_v10 = vsel %vm1214_vm12, %v1210_v7, inf  ;;  %4938 = vst [vmem:[#allocation25_spill] sm:$0xff] %v3983_v55  ;;  %4940 = vst [vmem:[#allocation29_spill] sm:$0xff] %v3995_v3  ;;  %v4005_v7 = vld [vmem:[%s4713_s6] sm:$0xff]  }
 0xa93   :  { %1216 = vmin.xlane.f32.xlu0 %v1215_v10  ;;  %v1220_v19 = vshll.u32 %v1219_v13, 16  ;;  %4941 = vst [vmem:[#allocation31_spill] sm:$0xff] %v4005_v7  ;;  %v2396_v13 = vld [vmem:[%s4708_s1 + $0x68] sm:$0xff] }
 0xb20   :  { %v1217_v16 = vpop.xlane.xlu0 %1216 }
 0xb21   :  { %v1218_v22 = vcvt.f32.s32 %v1217_v16  ;;  %v2398_v16 = vld [vmem:[%s4708_s1 + $0x78] sm:$0xff] }
 0xb23   :  { %v1221_v26 = vadd.s32 %v1220_v19, %v1218_v22 }
 0xb25   :  { %vm1222_vm13 = vcmp.eq.s32.totalorder %v3348_v33, %v1221_v26 }
 0xb26   :  { %vm2390_vm14 = vmpackc.low %vm1222_vm13, %vm1222_vm13 }
 0xb27   :  { %2391 = vmatmul.mubr.msk.bf16.vlgmr.msra.gmra.mrb[24].mxu1 %vm2390_vm14, %v4902_v59  ;;  %2393 = vmatmul.mubr.msk.bf16.vlgmr.msra.gmra.mrb[28].mxu0 %vm2390_vm14, %v4902_v59 }
 0xb28   :  { %1321 = vmatpush1.bf16.msra.mxu1 %v3819_v31  ;;  %1362 = vmatpush1.bf16.msra.mxu0 %v3825_v27 }
 0xb29   :  { %1322 = vmatprep.subr.bf16.mxu1 %v3831_v32  ;;  %1363 = vmatprep.subr.bf16.mxu0 %v3837_v34 }
 0xb2a   :  { %1352 = vmatprep.mubr.bf16.mxu1 %v4879_v2  ;;  %1393 = vmatprep.mubr.bf16.mxu0 %v4879_v2 }
 0xb2c   :  { %1323 = vmatpush1.bf16.msra.mxu1 %v3845_v28  ;;  %1364 = vmatpush1.bf16.msra.mxu0 %v3851_v35 }
 0xb2d   :  { %1324 = vmatprep.subr.bf16.mxu1 %v3857_v29  ;;  %1365 = vmatprep.subr.bf16.mxu0 %v3863_v30 }
 0xb30   :  { %1325 = vmatpush1.bf16.msra.mxu1 %v3869_v53  ;;  %1366 = vmatpush1.bf16.msra.mxu0 %v3875_v47 }
 0xb31   :  { %1326 = vmatprep.subr.bf16.mxu1 %v3881_v43  ;;  %1367 = vmatprep.subr.bf16.mxu0 %v3887_v56 }
 0xb34   :  { %1327 = vmatpush1.bf16.msra.mxu1 %v3893_v39  ;;  %1368 = vmatpush1.bf16.msra.mxu0 %v3899_v37 }
 0xb35   :  { %1328 = vmatprep.subr.bf16.mxu1 %v3905_v40  ;;  %1369 = vmatprep.subr.bf16.mxu0 %v3911_v38 }
 0xb38   :  { %1329 = vmatpush1.bf16.msra.mxu1 %v3917_v61  ;;  %1370 = vmatpush1.bf16.msra.mxu0 %v3923_v41 }
 0xb39   :  { %1330 = vmatprep.subr.bf16.mxu1 %v3929_v46  ;;  %1371 = vmatprep.subr.bf16.mxu0 %v3935_v45 }
 0xb3c   :  { %1331 = vmatpush1.bf16.msra.mxu1 %v3941_v51  ;;  %1372 = vmatpush1.bf16.msra.mxu0 %v3947_v42 }
 0xb3d   :  { %1332 = vmatprep.subr.bf16.mxu1 %v3953_v49  ;;  %1373 = vmatprep.subr.bf16.mxu0 %v3959_v0 }
 0xb40   :  { %1333 = vmatpush1.bf16.msra.mxu1 %v3965_v60  ;;  %1374 = vmatpush1.bf16.msra.mxu0 %v3971_v6 }
 0xb41   :  { %1334 = vmatprep.subr.bf16.mxu1 %v3977_v36  ;;  %1375 = vmatprep.subr.bf16.mxu0 %v3983_v55 }
 0xb44   :  { %1335 = vmatpush1.bf16.msra.mxu1 %v3989_v63  ;;  %1376 = vmatpush1.bf16.msra.mxu0 %v3995_v3 }
 0xb45   :  { %2568 = vmatprep.subr.bf16.mxu1 %v4880_v54  ;;  %1495 = vmatprep.subr.bf16.mxu0 %v3357_v48  ;;  %v4017_v48 = vld [vmem:[%s4713_s6 + $0x8] sm:$0xff]  }
 0xb46   :  { %4942 = vst [vmem:[#allocation33_spill] sm:$0xff] %v4017_v48 }
 0xb47   :  { %1353 = vmatmul.mubr.bf16.vlgmr.msra.gmra.mrb[28].mxu1 %v3783_v52  ;;  %1394 = vmatmul.mubr.bf16.vlgmr.msra.gmra.mrb[32].mxu0 %v3783_v52  ;;  %v1309_v52 = vstv %s2394_s30 }
 0xb48   :  { %2569 = vmatpush3.bf16.msra.mxu1 %v4005_v7  ;;  %2584 = vmatprep.mubr.msk.bf16.mxu1 %vm3008_vm0, %v4880_v54  ;;  %vm4077_vm15 = vcmp.ne.s32.totalorder %v1309_v52, 0 }
 0xb49   :  { %2570 = vmatprep.subr.bf16.mxu1 %v4880_v54  ;;  %1496 = vmatpush1.bf16.msra.mxu0 %v3367_v50  ;;  %v4026_v50 = vld [vmem:[%s4713_s6 + $0x10] sm:$0xff]  }
 0xb4a   :  { %1497 = vmatprep.subr.bf16.mxu0 %v4903_v1  ;;  %1527 = vmatprep.mubr.bf16.mxu0 %v4879_v2  ;;  %4943 = vst [vmem:[#allocation35_spill] sm:$0xff] %v4026_v50  ;;  %v4035_v1 = vld [vmem:[%s4713_s6 + $0x18] sm:$0xff]  }
 0xb4b   :  { %4944 = vst [vmem:[#allocation16_spill] sm:$0xff] %v4035_v1 }
 0xb4c   :  { %2571 = vmatpush3.bf16.msra.mxu1 %v4017_v48 }
 0xb4d   :  { %2572 = vmatprep.subr.bf16.mxu1 %v4880_v54  ;;  %1498 = vmatpush1.bf16.msra.mxu0 %v4905_v4  ;;  %v4044_v4 = vld [vmem:[%s4713_s6 + $0x20] sm:$0xff]  }
 0xb4e   :  { %1499 = vmatprep.subr.bf16.mxu0 %v4906_v5  ;;  %4945 = vst [vmem:[#allocation5_spill] sm:$0xff] %v4044_v4  ;;  %v4053_v5 = vld [vmem:[%s4713_s6 + $0x28] sm:$0xff]  }
 0xb4f   :  { %4946 = vst [vmem:[#allocation18_spill] sm:$0xff] %v4053_v5 }
 0xb50   :  { %2573 = vmatpush3.bf16.msra.mxu1 %v4026_v50 }
 0xb51   :  { %2574 = vmatprep.subr.bf16.mxu1 %v4880_v54  ;;  %1500 = vmatpush1.bf16.msra.mxu0 %v4908_v8  ;;  %v4062_v8 = vld [vmem:[%s4713_s6 + $0x30] sm:$0xff]  }
 0xb52   :  { %1501 = vmatprep.subr.bf16.mxu0 %v4909_v9  ;;  %4947 = vst [vmem:[#allocation20_spill] sm:$0xff] %v4062_v8  ;;  %v4071_v9 = vld [vmem:[%s4713_s6 + $0x38] sm:$0xff]  }
 0xb53   :  { %4948 = vst [vmem:[#allocation6_spill] sm:$0xff] %v4071_v9 }
 0xb54   :  { %2575 = vmatpush3.bf16.msra.mxu1 %v4035_v1 }
 0xb55   :  { %2576 = vmatprep.subr.bf16.mxu1 %v4880_v54  ;;  %1502 = vmatpush1.bf16.msra.mxu0 %v4911_v11 }
 0xb56   :  { %1503 = vmatprep.subr.bf16.mxu0 %v4912_v12 }
 0xb58   :  { %2577 = vmatpush3.bf16.msra.mxu1 %v4044_v4 }
 0xb59   :  { %2578 = vmatprep.subr.bf16.mxu1 %v4880_v54  ;;  %1504 = vmatpush1.bf16.msra.mxu0 %v4914_v14 }
 0xb5a   :  { %1505 = vmatprep.subr.bf16.mxu0 %v4915_v15 }
 0xb5c   :  { %2579 = vmatpush3.bf16.msra.mxu1 %v4053_v5 }
 0xb5d   :  { %2580 = vmatprep.subr.bf16.mxu1 %v4880_v54  ;;  %1506 = vmatpush1.bf16.msra.mxu0 %v4917_v17 }
 0xb5e   :  { %1507 = vmatprep.subr.bf16.mxu0 %v4918_v18 }
 0xb60   :  { %2581 = vmatpush3.bf16.msra.mxu1 %v4062_v8 }
 0xb61   :  { %2582 = vmatprep.subr.bf16.mxu1 %v4880_v54  ;;  %1508 = vmatpush1.bf16.msra.mxu0 %v4920_v20 }
 0xb62   :  { %1509 = vmatprep.subr.bf16.mxu0 %v4921_v21 }
 0xb64   :  { %2583 = vmatpush3.bf16.msra.mxu1 %v4071_v9 }
 0xb65   :  { %1536 = vmatprep.subr.bf16.mxu1 %v4923_v23  ;;  %1510 = vmatpush1.bf16.msra.mxu0 %v4924_v24  ;;  %v2395_v23 = vld [vmem:[%s4708_s1 + $0x60] sm:$0xff]  ;;  %v2397_v24 = vld [vmem:[%s4708_s1 + $0x70] sm:$0xff] }
 0xb66   :  { %1589 = vmatprep.subr.bf16.mxu0 %v3752_v25 }
 0xbfa   :  { %v1260_v11 = vpop.f32.mrb[24].mxu1  ;;  %v1301_v12 = vpop.f32.mrb[28].mxu0 }
 0xbfb   :  { %v1262_v14 = vpop.f32.mrb[25].mxu1  ;;  %v1303_v15 = vpop.f32.mrb[29].mxu0  ;;  %v1316_v19 = vsel %vm4077_vm15, %v2395_v23, %v1260_v11  ;;  %v1318_v26 = vsel %vm4077_vm15, %v2397_v24, %v1301_v12 }
 0xbfc   :  { %v1264_v17 = vpop.f32.mrb[26].mxu1  ;;  %v1305_v18 = vpop.f32.mrb[30].mxu0  ;;  %v1319_v25 = vsel %vm4077_vm15, %v2398_v16, %v1303_v15 }
 0xbfd   :  { %v1265_v20 = vpop.f32.mrb[27].mxu1  ;;  %v1306_v21 = vpop.f32.mrb[31].mxu0 }
 0xbfe   :  { %v1317_v21 = vsel %vm4077_vm15, %v2396_v13, %v1262_v14 }
 0xc1a   :  { %v1354_v22 = vpop.f32.mrb[28].mxu1  ;;  %v1395_v17 = vpop.f32.mrb[32].mxu0 }
 0xc1b   :  { %v1402_v18 = vadd.f32 %v1354_v22, %v1316_v19  ;;  %v1404_v20 = vadd.f32 %v1395_v17, %v1318_v26  ;;  %v1356_v52 = vpop.f32.mrb[29].mxu1  ;;  %v1397_v9 = vpop.f32.mrb[33].mxu0  ;;  %v4111_v26 = vld [vmem:[%s4711_s4 + $0x8] ss:$16 sps:$4 sm:$0xff]  }
 0xc1c   :  { %v1403_v8 = vadd.f32 %v1356_v52, %v1317_v21  ;;  %v1405_v5 = vadd.f32 %v1397_v9, %v1319_v25  ;;  %v1358_v4 = vpop.f32.mrb[30].mxu1  ;;  %v1399_v1 = vpop.f32.mrb[34].mxu0  ;;  %v4124_v17 = vld [vmem:[%s4711_s4 + $0x28] ss:$16 sps:$4 sm:$0xff]   ;;  %v4142_v21 = vld [vmem:[%s4711_s4 + $0x6c] ss:$16 sps:$4 sm:$0xff]  }
 0xc1d   :  { %v2399_v11 = vmul.f32 -1.442695, %v1402_v18  ;;  %v1359_v23 = vpop.f32.mrb[31].mxu1  ;;  %v1400_v50 = vpop.f32.mrb[35].mxu0  ;;  %v2401_v12 = vmul.f32 -1.442695, %v1404_v20 }
 0xc1e   :  { %v2400_v48 = vmul.f32 -1.442695, %v1403_v8  ;;  %v4130_v18 = vld [vmem:[%s4711_s4 + $0x4c] ss:$16 sps:$4 sm:$0xff]   ;;  %v4136_v20 = vld [vmem:[%s4711_s4 + $0x48] ss:$16 sps:$4 sm:$0xff]  }
 0xc1f   :  { %2817 = vpow2.f32 %v2399_v11  ;;  %v4148_v52 = vld [vmem:[%s4711_s4 + $0x68] ss:$16 sps:$4 sm:$0xff]   ;;  %v4154_v11 = vld [vmem:[%s4711_s4 + $0x8c] ss:$16 sps:$4 sm:$0xff]  }
 0xc20   :  { %2819 = vpow2.f32 %v2400_v48  ;;  %v4160_v23 = vld [vmem:[%s4711_s4 + $0x88] ss:$16 sps:$4 sm:$0xff]  }
 0xc21   :  { %2821 = vtanh.f32 %v1405_v5 }
 0xc22   :  { %2823 = vpow2.f32 %v2401_v12  ;;  %v4166_v12 = vld [vmem:[%s4711_s4 + $0xac] ss:$16 sps:$4 sm:$0xff]  }
 0xc29   :  { %v2818_v24 = vpop.eup %2817 }
 0xc2a   :  { %v1409_v19 = vadd.f32 1.0, %v2818_v24  ;;  %v2820_v14 = vpop.eup %2819  ;;  %v4172_v24 = vld [vmem:[%s4711_s4 + $0xa8] ss:$16 sps:$4 sm:$0xff]  }
 0xc2b   :  { %v1415_v10 = vadd.f32 1.0, %v2820_v14  ;;  %v2822_v15 = vpop.eup %2821  ;;  %v4184_v14 = vld [vmem:[%s4711_s4 + $0xc8] ss:$16 sps:$4 sm:$0xff]  }
 0xc2c   :  { %2825 = vrcp.f32 %v1409_v19  ;;  %v2824_v13 = vpop.eup %2823  ;;  %v4178_v19 = vld [vmem:[%s4711_s4 + $0xcc] ss:$16 sps:$4 sm:$0xff]   ;;  %4951 = vst [vmem:[#allocation22_spill] sm:$0xff] %v4184_v14 }
 0xc2d   :  { %2827 = vrcp.f32 %v1415_v10  ;;  %v1421_v9 = vadd.f32 1.0, %v2824_v13 }
 0xc2f   :  { %2829 = vrcp.f32 %v1421_v9 }
 0xc36   :  { %v2826_v25 = vpop.eup %2825 }
 0xc37   :  { %v1426_v4 = vmul.f32 %v2826_v25, %v2822_v15  ;;  %v2828_v1 = vpop.eup %2827  ;;  %v4193_v15 = vld [vmem:[%s4714_s7] ss:$0 sm:$0xff] }
 0xc38   :  { %v1425_v50 = vmul.f32 %v2828_v1, %v3780_v44  ;;  %v4118_v44 = vld [vmem:[%s4711_s4 + $0x2c] ss:$16 sps:$4 sm:$0xff]   ;;  %4952 = vst [vmem:[#allocation24_spill] sm:$0xff] %v4193_v15 }
 0xc39   :  { %v2830_v48 = vpop.eup %2829 }
 0xc3a   :  { %v4102_v8 = vadd.f32 %v1426_v4, %v1425_v50 }
 0xc3c   :  { %2831 = vtanh.f32 %v4102_v8 }
 0xc46   :  { %v2832_v5 = vpop.eup %2831 }
 0xc47   :  { %v1429_v16 = vmul.f32 %v2832_v5, %v2830_v48 }
 0xc49   :  { %v4105_v22 = vpack.c.bf16 %v1429_v16, %v1429_v16 }
 0xc4b   :  { %2585 = vmatmul.mubr.bf16.vlgmr.msra.gmra.mrb[32].mxu1 %v4105_v22 }
 0xc4c   :  { %1537 = vmatpush1.bf16.msra.mxu1 %v4111_v26  ;;  %1568 = vmatprep.mubr.bf16.mxu1 %v4879_v2 }
 0xc4d   :  { %1538 = vmatprep.subr.bf16.mxu1 %v4118_v44 }
 0xc50   :  { %1539 = vmatpush1.bf16.msra.mxu1 %v4124_v17 }
 0xc51   :  { %1540 = vmatprep.subr.bf16.mxu1 %v4130_v18 }
 0xc54   :  { %1541 = vmatpush1.bf16.msra.mxu1 %v4136_v20 }
 0xc55   :  { %1542 = vmatprep.subr.bf16.mxu1 %v4142_v21 }
 0xc58   :  { %1543 = vmatpush1.bf16.msra.mxu1 %v4148_v52 }
 0xc59   :  { %1544 = vmatprep.subr.bf16.mxu1 %v4154_v11 }
 0xc5c   :  { %1545 = vmatpush1.bf16.msra.mxu1 %v4160_v23 }
 0xc5d   :  { %1546 = vmatprep.subr.bf16.mxu1 %v4166_v12 }
 0xc60   :  { %1547 = vmatpush1.bf16.msra.mxu1 %v4172_v24 }
 0xc61   :  { %1548 = vmatprep.subr.bf16.mxu1 %v4178_v19 }
 0xc64   :  { %1549 = vmatpush1.bf16.msra.mxu1 %v4184_v14 }
 0xc65   :  { %1550 = vmatprep.subr.bf16.mxu1 %v4930_v58 }
 0xc68   :  { %1551 = vmatpush1.bf16.msra.mxu1 %v4931_v62 }
 0xc69   :  { %1630 = vmatprep.subr.bf16.mxu1 %v3805_v57 }
 0xd1e   :  { %v1465_v10 = vpop.f32.mrb[32].mxu1 }
 0xd1f   :  { %v1466_v13 = vadd.f32 %v4193_v15, %v1465_v10  ;;  %v2586_v25 = vpop.f32.mrb[33].mxu1 }
 0xd20   :  { %v1468_v4 = vpop.f32.mrb[34].mxu1 }
 0xd21   :  { %2402 = vst [vmem:[%s4715_s8 + $0x18] sm:$0xff] %v1466_v13  ;;  %1473 = vmax.xlane.f32.xlu1 %v1466_v13  ;;  %v2587_v58 = vpop.f32.mrb[35].mxu1 }
 0xd22   :  { %v4272_v58 = vld [vmem:[%s4711_s4 + $0x44] ss:$16 sps:$4 sm:$0xff]  }
 0xd23   :  { %4958 = vst [vmem:[#allocation30_spill] sm:$0xff] %v4272_v58 }
 0xdae   :  { %v1474_v1 = vpop.xlane.xlu1 %1473 }
 0xdaf   :  { %vm1475_vm1 = vcmp.eq.f32.partialorder %v1466_v13, %v1474_v1  ;;  %v4266_v13 = vld [vmem:[%s4711_s4 + $0x20] ss:$16 sps:$4 sm:$0xff]  }
 0xdb0   :  { %v1476_v62 = vsel %vm1475_vm1, %v3348_v33, 128  ;;  %4957 = vst [vmem:[#allocation8_spill] sm:$0xff] %v4266_v13  ;;  %v4959_v1 = vld [vmem:[#allocation35_spill] sm:$0xff] }
 0xdb1   :  { %v1478_v9 = vshra.s32 %v1476_v62, 16  ;;  %v1477_v48 = vand.u32 65535, %v1476_v62  ;;  %v4280_v62 = vld [vmem:[%s4711_s4 + $0x40] ss:$16 sps:$4 sm:$0xff]  }
 0xdb2   :  { %4960 = vst [vmem:[#allocation32_spill] sm:$0xff] %v4280_v62 }
 0xdb3   :  { %v1480_v50 = vcvt.s32.f32 %v1478_v9  ;;  %v1479_v16 = vcvt.s32.f32 %v1477_v48  ;;  %v4286_v9 = vld [vmem:[%s4711_s4 + $0x64] ss:$16 sps:$4 sm:$0xff]   ;;  %v4294_v48 = vld [vmem:[%s4711_s4 + $0x60] ss:$16 sps:$4 sm:$0xff]  }
 0xdb4   :  { %4961 = vst [vmem:[#allocation9_spill] sm:$0xff] %v4286_v9  ;;  %4963 = vst [vmem:[#allocation34_spill] sm:$0xff] %v4294_v48 }
 0xdb5   :  { %1481 = vmin.xlane.f32.xlu0 %v1480_v50 }
 0xe42   :  { %v1482_v5 = vpop.xlane.xlu0 %1481 }
 0xe43   :  { %vm1483_vm2 = vcmp.eq.f32.partialorder %v1480_v50, %v1482_v5  ;;  %v1488_v25 = vcvt.f32.s32 %v1482_v5  ;;  %v4962_v50 = vld [vmem:[#allocation16_spill] sm:$0xff]  ;;  %v4300_v5 = vld [vmem:[%s4711_s4 + $0x84] ss:$16 sps:$4 sm:$0xff]  }
 0xe44   :  { %v1484_v10 = vsel %vm1483_vm2, %v1479_v16, inf  ;;  %4964 = vst [vmem:[#allocation36_spill] sm:$0xff] %v4300_v5  ;;  %v4965_v16 = vld [vmem:[#allocation5_spill] sm:$0xff] }
 0xe45   :  { %1485 = vmin.xlane.f32.xlu1 %v1484_v10  ;;  %v1489_v15 = vshll.u32 %v1488_v25, 16  ;;  %v4308_v10 = vld [vmem:[%s4711_s4 + $0x80] ss:$16 sps:$4 sm:$0xff]   ;;  %v4314_v25 = vld [vmem:[%s4711_s4 + $0xa4] ss:$16 sps:$4 sm:$0xff]  }
 0xe46   :  { %4966 = vst [vmem:[#allocation10_spill] sm:$0xff] %v4308_v10  ;;  %4967 = vst [vmem:[#allocation38_spill] sm:$0xff] %v4314_v25 }
 0xed2   :  { %v1486_v4 = vpop.xlane.xlu1 %1485 }
 0xed3   :  { %v1487_v57 = vcvt.f32.s32 %v1486_v4  ;;  %v4968_v4 = vld [vmem:[#allocation18_spill] sm:$0xff] }
 0xed5   :  { %v1490_v14 = vadd.s32 %v1489_v15, %v1487_v57  ;;  %v4239_v57 = vld [vmem:[%s4711_s4 + $0x4] ss:$16 sps:$4 sm:$0xff]  }
 0xed6   :  { %4953 = vst [vmem:[#allocation7_spill] sm:$0xff] %v4239_v57  ;;  %v4257_v15 = vld [vmem:[%s4711_s4 + $0x24] ss:$16 sps:$4 sm:$0xff]  }
 0xed7   :  { %vm1491_vm3 = vcmp.eq.s32.totalorder %v3348_v33, %v1490_v14  ;;  %v4251_v14 = vld [vmem:[%s4711_s4] ss:$16 sps:$4 sm:$0xff]   ;;  %4955 = vst [vmem:[#allocation28_spill] sm:$0xff] %v4257_v15 }
 0xed8   :  { %vm2404_vm4 = vmpackc.low %vm1491_vm3, %vm1491_vm3  ;;  %4954 = vst [vmem:[#allocation26_spill] sm:$0xff] %v4251_v14 }
 0xed9   :  { %2405 = vmatmul.mubr.msk.bf16.vlgmr.msra.gmra.mrb[36].mxu0 %vm2404_vm4, %v4902_v59  ;;  %2407 = vmatmul.mubr.msk.bf16.vlgmr.msra.gmra.mrb[36].mxu1 %vm2404_vm4, %v4902_v59 }
 0xeda   :  { %1590 = vmatpush1.bf16.msra.mxu0 %v3819_v31  ;;  %1631 = vmatpush1.bf16.msra.mxu1 %v3825_v27 }
 0xedb   :  { %1591 = vmatprep.subr.bf16.mxu0 %v3831_v32  ;;  %1632 = vmatprep.subr.bf16.mxu1 %v3837_v34 }
 0xedc   :  { %1621 = vmatprep.mubr.bf16.mxu0 %v4879_v2  ;;  %1662 = vmatprep.mubr.bf16.mxu1 %v4879_v2 }
 0xede   :  { %1592 = vmatpush1.bf16.msra.mxu0 %v3845_v28  ;;  %1633 = vmatpush1.bf16.msra.mxu1 %v3851_v35 }
 0xedf   :  { %1593 = vmatprep.subr.bf16.mxu0 %v3857_v29  ;;  %1634 = vmatprep.subr.bf16.mxu1 %v3863_v30 }
 0xee2   :  { %1594 = vmatpush1.bf16.msra.mxu0 %v3869_v53  ;;  %1635 = vmatpush1.bf16.msra.mxu1 %v3875_v47 }
 0xee3   :  { %1595 = vmatprep.subr.bf16.mxu0 %v3881_v43  ;;  %1636 = vmatprep.subr.bf16.mxu1 %v3887_v56 }
 0xee6   :  { %1596 = vmatpush1.bf16.msra.mxu0 %v3893_v39  ;;  %1637 = vmatpush1.bf16.msra.mxu1 %v3899_v37 }
 0xee7   :  { %1597 = vmatprep.subr.bf16.mxu0 %v3905_v40  ;;  %1638 = vmatprep.subr.bf16.mxu1 %v3911_v38 }
 0xeea   :  { %1598 = vmatpush1.bf16.msra.mxu0 %v3917_v61  ;;  %1639 = vmatpush1.bf16.msra.mxu1 %v3923_v41 }
 0xeeb   :  { %1599 = vmatprep.subr.bf16.mxu0 %v3929_v46  ;;  %1640 = vmatprep.subr.bf16.mxu1 %v3935_v45 }
 0xeee   :  { %1600 = vmatpush1.bf16.msra.mxu0 %v3941_v51  ;;  %1641 = vmatpush1.bf16.msra.mxu1 %v3947_v42 }
 0xeef   :  { %1601 = vmatprep.subr.bf16.mxu0 %v3953_v49  ;;  %1642 = vmatprep.subr.bf16.mxu1 %v3959_v0 }
 0xef2   :  { %1602 = vmatpush1.bf16.msra.mxu0 %v3965_v60  ;;  %1643 = vmatpush1.bf16.msra.mxu1 %v3971_v6 }
 0xef3   :  { %1603 = vmatprep.subr.bf16.mxu0 %v3977_v36  ;;  %1644 = vmatprep.subr.bf16.mxu1 %v3983_v55 }
 0xef6   :  { %1604 = vmatpush1.bf16.msra.mxu0 %v3989_v63  ;;  %1645 = vmatpush1.bf16.msra.mxu1 %v3995_v3 }
 0xef7   :  { %2588 = vmatprep.subr.bf16.mxu0 %v4880_v54  ;;  %1764 = vmatprep.subr.bf16.mxu1 %v4239_v57 }
 0xef9   :  { %1622 = vmatmul.mubr.bf16.vlgmr.msra.gmra.mrb[40].mxu0 %v4105_v22  ;;  %1663 = vmatmul.mubr.bf16.vlgmr.msra.gmra.mrb[40].mxu1 %v4105_v22  ;;  %v4956_v22 = vld [vmem:[#allocation33_spill] sm:$0xff] }
 0xefa   :  { %2589 = vmatpush3.bf16.msra.mxu0 %v4005_v7  ;;  %2604 = vmatprep.mubr.msk.bf16.mxu0 %vm3008_vm0, %v4880_v54 }
 0xefb   :  { %2590 = vmatprep.subr.bf16.mxu0 %v4880_v54  ;;  %1765 = vmatpush1.bf16.msra.mxu1 %v4251_v14 }
 0xefc   :  { %1766 = vmatprep.subr.bf16.mxu1 %v4257_v15  ;;  %1796 = vmatprep.mubr.bf16.mxu1 %v4879_v2 }
 0xefe   :  { %2591 = vmatpush3.bf16.msra.mxu0 %v4956_v22 }
 0xeff   :  { %2592 = vmatprep.subr.bf16.mxu0 %v4880_v54  ;;  %1767 = vmatpush1.bf16.msra.mxu1 %v4266_v13  ;;  %v1578_v13 = vstv %s2408_s27 }
 0xf00   :  { %1768 = vmatprep.subr.bf16.mxu1 %v4272_v58  ;;  %vm4359_vm5 = vcmp.ne.s32.totalorder %v1578_v13, 0 }
 0xf02   :  { %2593 = vmatpush3.bf16.msra.mxu0 %v4959_v1 }
 0xf03   :  { %2594 = vmatprep.subr.bf16.mxu0 %v4880_v54  ;;  %1769 = vmatpush1.bf16.msra.mxu1 %v4280_v62 }
 0xf04   :  { %1770 = vmatprep.subr.bf16.mxu1 %v4286_v9 }
 0xf06   :  { %2595 = vmatpush3.bf16.msra.mxu0 %v4962_v50 }
 0xf07   :  { %2596 = vmatprep.subr.bf16.mxu0 %v4880_v54  ;;  %1771 = vmatpush1.bf16.msra.mxu1 %v4294_v48 }
 0xf08   :  { %1772 = vmatprep.subr.bf16.mxu1 %v4300_v5  ;;  %v4971_v5 = vld [vmem:[#allocation20_spill] sm:$0xff] }
 0xf0a   :  { %2597 = vmatpush3.bf16.msra.mxu0 %v4965_v16  ;;  %v4322_v16 = vld [vmem:[%s4711_s4 + $0xa0] ss:$16 sps:$4 sm:$0xff]  }
 0xf0b   :  { %2598 = vmatprep.subr.bf16.mxu0 %v4880_v54  ;;  %1773 = vmatpush1.bf16.msra.mxu1 %v4308_v10  ;;  %4969 = vst [vmem:[#allocation40_spill] sm:$0xff] %v4322_v16  ;;  %v4328_v10 = vld [vmem:[%s4711_s4 + $0xc4] ss:$16 sps:$4 sm:$0xff]  }
 0xf0c   :  { %1774 = vmatprep.subr.bf16.mxu1 %v4314_v25  ;;  %4970 = vst [vmem:[#allocation11_spill] sm:$0xff] %v4328_v10  ;;  %v4974_v25 = vld [vmem:[#allocation6_spill] sm:$0xff] }
 0xf0e   :  { %2599 = vmatpush3.bf16.msra.mxu0 %v4968_v4  ;;  %v4336_v4 = vld [vmem:[%s4711_s4 + $0xc0] ss:$16 sps:$4 sm:$0xff]  }
 0xf0f   :  { %2600 = vmatprep.subr.bf16.mxu0 %v4880_v54  ;;  %1775 = vmatpush1.bf16.msra.mxu1 %v4322_v16  ;;  %4972 = vst [vmem:[#allocation14_spill] sm:$0xff] %v4336_v4  ;;  %v4342_v16 = vld [vmem:[%s4711_s4 + $0xe4] ss:$16 sps:$4 sm:$0xff]  }
 0xf10   :  { %1776 = vmatprep.subr.bf16.mxu1 %v4328_v10  ;;  %4973 = vst [vmem:[#allocation42_spill] sm:$0xff] %v4342_v16  ;;  %v4977_v10 = vld [vmem:[#allocation12_spill] sm:$0xff] }
 0xf12   :  { %2601 = vmatpush3.bf16.msra.mxu0 %v4971_v5  ;;  %v4349_v5 = vld [vmem:[%s4711_s4 + $0xc] ss:$16 sps:$4 sm:$0xff]  }
 0xf13   :  { %2602 = vmatprep.subr.bf16.mxu0 %v4880_v54  ;;  %1777 = vmatpush1.bf16.msra.mxu1 %v4336_v4  ;;  %4975 = vst [vmem:[#allocation37_spill] sm:$0xff] %v4349_v5  ;;  %v4355_v4 = vld [vmem:[%s4711_s4 + $0xe0] ss:$16 sps:$4 sm:$0xff]  }
 0xf14   :  { %1778 = vmatprep.subr.bf16.mxu1 %v4342_v16  ;;  %4976 = vst [vmem:[#allocation39_spill] sm:$0xff] %v4355_v4 }
 0xf16   :  { %2603 = vmatpush3.bf16.msra.mxu0 %v4974_v25 }
 0xf17   :  { %1805 = vmatprep.subr.bf16.mxu0 %v4349_v5  ;;  %1779 = vmatpush1.bf16.msra.mxu1 %v4355_v4  ;;  %v2409_v4 = vld [vmem:[%s4708_s1 + $0x80] sm:$0xff] }
 0xf18   :  { %1858 = vmatprep.subr.bf16.mxu1 %v4977_v10  ;;  %v2411_v10 = vld [vmem:[%s4708_s1 + $0x90] sm:$0xff] }
 0xfac   :  { %v1529_v48 = vpop.f32.mrb[36].mxu0  ;;  %v1570_v16 = vpop.f32.mrb[36].mxu1 }
 0xfad   :  { %v1531_v50 = vpop.f32.mrb[37].mxu0  ;;  %v1572_v25 = vpop.f32.mrb[37].mxu1  ;;  %v1585_v13 = vsel %vm4359_vm5, %v2409_v4, %v1529_v48 }
 0xfae   :  { %v1533_v9 = vpop.f32.mrb[38].mxu0  ;;  %v1574_v62 = vpop.f32.mrb[38].mxu1 }
 0xfaf   :  { %v1534_v1 = vpop.f32.mrb[39].mxu0  ;;  %v1575_v58 = vpop.f32.mrb[39].mxu1  ;;  %v2410_v62 = vld [vmem:[%s4708_s1 + $0x88] sm:$0xff]  ;;  %v1587_v9 = vsel %vm4359_vm5, %v2411_v10, %v1570_v16 }
 0xfb0   :  { %v2412_v58 = vld [vmem:[%s4708_s1 + $0x98] sm:$0xff]  ;;  %v1586_v7 = vsel %vm4359_vm5, %v2410_v62, %v1531_v50 }
 0xfb1   :  { %v1588_v54 = vsel %vm4359_vm5, %v2412_v58, %v1572_v25  ;;  %v4413_v62 = vld [vmem:[%s4711_s4 + $0xe8] ss:$16 sps:$4 sm:$0xff]   ;;  %v4981_v58 = vld [vmem:[#allocation15_spill] sm:$0xff] }
 0xfcc   :  { %v1623_v1 = vpop.f32.mrb[40].mxu0  ;;  %v1664_v22 = vpop.f32.mrb[40].mxu1 }
 0xfcd   :  { %v1671_v15 = vadd.f32 %v1623_v1, %v1585_v13  ;;  %v1673_v14 = vadd.f32 %v1664_v22, %v1587_v9  ;;  %v1625_v57 = vpop.f32.mrb[41].mxu0  ;;  %v1666_v3 = vpop.f32.mrb[41].mxu1  ;;  %v4982_v1 = vld [vmem:[#allocation24_spill] sm:$0xff] }
 0xfce   :  { %v1672_v63 = vadd.f32 %v1625_v57, %v1586_v7  ;;  %v1674_v55 = vadd.f32 %v1666_v3, %v1588_v54  ;;  %v1627_v36 = vpop.f32.mrb[42].mxu0  ;;  %v1668_v6 = vpop.f32.mrb[42].mxu1 }
 0xfcf   :  { %v2413_v48 = vmul.f32 -1.442695, %v1671_v15  ;;  %v1628_v4 = vpop.f32.mrb[43].mxu0  ;;  %v1669_v60 = vpop.f32.mrb[43].mxu1  ;;  %v2415_v16 = vmul.f32 -1.442695, %v1673_v14 }
 0xfd0   :  { %v2414_v0 = vmul.f32 -1.442695, %v1672_v63  ;;  %v4407_v15 = vld [vmem:[%s4711_s4 + $0xec] ss:$16 sps:$4 sm:$0xff]  }
 0xfd1   :  { %2833 = vpow2.f32 %v2413_v48 }
 0xfd2   :  { %2835 = vpow2.f32 %v2414_v0 }
 0xfd3   :  { %2837 = vtanh.f32 %v1674_v55 }
 0xfd4   :  { %2839 = vpow2.f32 %v2415_v16 }
 0xfdb   :  { %v2834_v22 = vpop.eup %2833 }
 0xfdc   :  { %v1678_v10 = vadd.f32 1.0, %v2834_v22  ;;  %v2836_v50 = vpop.eup %2835 }
 0xfdd   :  { %v1684_v5 = vadd.f32 1.0, %v2836_v50  ;;  %v2838_v25 = vpop.eup %2837 }
 0xfde   :  { %2841 = vrcp.f32 %v1678_v10  ;;  %v2840_v7 = vpop.eup %2839 }
 0xfdf   :  { %2843 = vrcp.f32 %v1684_v5  ;;  %v1690_v3 = vadd.f32 1.0, %v2840_v7 }
 0xfe1   :  { %2845 = vrcp.f32 %v1690_v3 }
 0xfe8   :  { %v2842_v54 = vpop.eup %2841 }
 0xfe9   :  { %v1695_v36 = vmul.f32 %v2842_v54, %v2838_v25  ;;  %v2844_v6 = vpop.eup %2843 }
 0xfea   :  { %v1694_v60 = vmul.f32 %v2844_v6, %v4102_v8  ;;  %v4980_v8 = vld [vmem:[#allocation22_spill] sm:$0xff] }
 0xfeb   :  { %v2846_v0 = vpop.eup %2845 }
 0xfec   :  { %v4384_v63 = vadd.f32 %v1695_v36, %v1694_v60 }
 0xfee   :  { %2847 = vtanh.f32 %v4384_v63 }
 0xff8   :  { %v2848_v55 = vpop.eup %2847 }
 0xff9   :  { %v1698_v57 = vmul.f32 %v2848_v55, %v2846_v0 }
 0xffb   :  { %v4387_v14 = vpack.c.bf16 %v1698_v57, %v1698_v57  ;;  %v5006_v57 = vld [vmem:[#allocation38_spill] sm:$0xff] }
 0xffd   :  { %2605 = vmatmul.mubr.bf16.vlgmr.msra.gmra.mrb[44].mxu0 %v4387_v14 }
 0xffe   :  { %1806 = vmatpush1.bf16.msra.mxu0 %v4111_v26  ;;  %1837 = vmatprep.mubr.bf16.mxu0 %v4879_v2 }
 0xfff   :  { %1807 = vmatprep.subr.bf16.mxu0 %v4118_v44 }
0x1002   :  { %1808 = vmatpush1.bf16.msra.mxu0 %v4124_v17 }
0x1003   :  { %1809 = vmatprep.subr.bf16.mxu0 %v4130_v18 }
0x1006   :  { %1810 = vmatpush1.bf16.msra.mxu0 %v4136_v20 }
0x1007   :  { %1811 = vmatprep.subr.bf16.mxu0 %v4142_v21 }
0x100a   :  { %1812 = vmatpush1.bf16.msra.mxu0 %v4148_v52 }
0x100b   :  { %1813 = vmatprep.subr.bf16.mxu0 %v4154_v11 }
0x100e   :  { %1814 = vmatpush1.bf16.msra.mxu0 %v4160_v23 }
0x100f   :  { %1815 = vmatprep.subr.bf16.mxu0 %v4166_v12 }
0x1012   :  { %1816 = vmatpush1.bf16.msra.mxu0 %v4172_v24 }
0x1013   :  { %1817 = vmatprep.subr.bf16.mxu0 %v4178_v19 }
0x1016   :  { %1818 = vmatpush1.bf16.msra.mxu0 %v4980_v8 }
0x1017   :  { %1819 = vmatprep.subr.bf16.mxu0 %v4407_v15 }
0x101a   :  { %1820 = vmatpush1.bf16.msra.mxu0 %v4413_v62 }
0x101b   :  { %1899 = vmatprep.subr.bf16.mxu0 %v4981_v58  ;;  %v5008_v58 = vld [vmem:[#allocation40_spill] sm:$0xff] }
0x10d0   :  { %v1734_v13 = vpop.f32.mrb[44].mxu0 }
0x10d1   :  { %v1735_v9 = vadd.f32 %v4982_v1, %v1734_v13  ;;  %v2606_v48 = vpop.f32.mrb[45].mxu0  ;;  %v5009_v13 = vld [vmem:[#allocation11_spill] sm:$0xff] }
0x10d2   :  { %v1737_v4 = vpop.f32.mrb[46].mxu0  ;;  %v5011_v48 = vld [vmem:[#allocation14_spill] sm:$0xff] }
0x10d3   :  { %2416 = vst [vmem:[%s4715_s8 + $0x20] sm:$0xff] %v1735_v9  ;;  %1742 = vmax.xlane.f32.xlu0 %v1735_v9  ;;  %v2607_v16 = vpop.f32.mrb[47].mxu0  ;;  %v5012_v4 = vld [vmem:[#allocation42_spill] sm:$0xff] }
0x10d4   :  { %v5013_v16 = vld [vmem:[#allocation6_spill] sm:$0xff] }
0x1160   :  { %v1743_v22 = vpop.xlane.xlu0 %1742 }
0x1161   :  { %vm1744_vm6 = vcmp.eq.f32.partialorder %v1735_v9, %v1743_v22  ;;  %v5010_v9 = vld [vmem:[#allocation20_spill] sm:$0xff]  ;;  %v5014_v22 = vld [vmem:[#allocation37_spill] sm:$0xff] }
0x1162   :  { %v1745_v10 = vsel %vm1744_vm6, %v3348_v33, 128 }
0x1163   :  { %v1747_v50 = vshra.s32 %v1745_v10, 16  ;;  %v1746_v25 = vand.u32 65535, %v1745_v10  ;;  %v5015_v10 = vld [vmem:[#allocation39_spill] sm:$0xff] }
0x1165   :  { %v1749_v5 = vcvt.s32.f32 %v1747_v50  ;;  %v1748_v54 = vcvt.s32.f32 %v1746_v25  ;;  %v2954_v50 = vld [vmem:[%s4712_s5 + $0x4] ss:$16 sps:$4 sm:$0xff]  }
0x1167   :  { %1750 = vmin.xlane.f32.xlu1 %v1749_v5 }
0x11f4   :  { %v1751_v7 = vpop.xlane.xlu1 %1750 }
0x11f5   :  { %vm1752_vm7 = vcmp.eq.f32.partialorder %v1749_v5, %v1751_v7  ;;  %v1757_v6 = vcvt.f32.s32 %v1751_v7 }
0x11f6   :  { %v1753_v36 = vsel %vm1752_vm7, %v1748_v54, inf }
0x11f7   :  { %1754 = vmin.xlane.f32.xlu0 %v1753_v36  ;;  %v1758_v60 = vshll.u32 %v1757_v6, 16 }
0x1284   :  { %v1755_v3 = vpop.xlane.xlu0 %1754 }
0x1285   :  { %v1756_v0 = vcvt.f32.s32 %v1755_v3 }
0x1287   :  { %v1759_v55 = vadd.s32 %v1758_v60, %v1756_v0  ;;  %v1847_v0 = vstv %s2422_s18 }
0x1288   :  { %vm4498_vm10 = vcmp.ne.s32.totalorder %v1847_v0, 0 }
0x1289   :  { %vm1760_vm8 = vcmp.eq.s32.totalorder %v3348_v33, %v1759_v55 }
0x128a   :  { %vm2418_vm9 = vmpackc.low %vm1760_vm8, %vm1760_vm8 }
0x128b   :  { %2419 = vmatmul.mubr.msk.bf16.vlgmr.msra.gmra.mrb[44].mxu1 %vm2418_vm9, %v4902_v59  ;;  %2421 = vmatmul.mubr.msk.bf16.vlgmr.msra.gmra.mrb[48].mxu0 %vm2418_vm9, %v4902_v59 }
0x128c   :  { %1859 = vmatpush1.bf16.msra.mxu1 %v3819_v31  ;;  %1900 = vmatpush1.bf16.msra.mxu0 %v3825_v27  ;;  %v4983_v31 = vld [vmem:[#allocation17_spill] sm:$0xff]  ;;  %v4984_v27 = vld [vmem:[#allocation19_spill] sm:$0xff] }
0x128d   :  { %1860 = vmatprep.subr.bf16.mxu1 %v3831_v32  ;;  %1901 = vmatprep.subr.bf16.mxu0 %v3837_v34  ;;  %v4985_v32 = vld [vmem:[#allocation21_spill] sm:$0xff]  ;;  %v4986_v34 = vld [vmem:[#allocation23_spill] sm:$0xff] }
0x128e   :  { %1890 = vmatprep.mubr.bf16.mxu1 %v4879_v2  ;;  %1931 = vmatprep.mubr.bf16.mxu0 %v4879_v2 }
0x1290   :  { %1861 = vmatpush1.bf16.msra.mxu1 %v3845_v28  ;;  %1902 = vmatpush1.bf16.msra.mxu0 %v3851_v35  ;;  %v4987_v28 = vld [vmem:[#allocation25_spill] sm:$0xff]  ;;  %v4988_v35 = vld [vmem:[#allocation27_spill] sm:$0xff] }
0x1291   :  { %1862 = vmatprep.subr.bf16.mxu1 %v3857_v29  ;;  %1903 = vmatprep.subr.bf16.mxu0 %v3863_v30  ;;  %v4989_v29 = vld [vmem:[#allocation29_spill] sm:$0xff]  ;;  %v4990_v30 = vmov 0.0  }
0x1294   :  { %1863 = vmatpush1.bf16.msra.mxu1 %v3869_v53  ;;  %1904 = vmatpush1.bf16.msra.mxu0 %v3875_v47  ;;  %v4991_v53 = vld [vmem:[#allocation7_spill] sm:$0xff] }
0x1295   :  { %1864 = vmatprep.subr.bf16.mxu1 %v3881_v43  ;;  %1905 = vmatprep.subr.bf16.mxu0 %v3887_v56  ;;  %v4992_v47 = vld [vmem:[#allocation31_spill] sm:$0xff]  ;;  %v4993_v43 = vld [vmem:[#allocation26_spill] sm:$0xff]  ;;  %v4994_v56 = vld [vmem:[#allocation28_spill] sm:$0xff] }
0x1298   :  { %1865 = vmatpush1.bf16.msra.mxu1 %v3893_v39  ;;  %1906 = vmatpush1.bf16.msra.mxu0 %v3899_v37  ;;  %v4995_v39 = vld [vmem:[#allocation33_spill] sm:$0xff]  ;;  %v4996_v37 = vld [vmem:[#allocation8_spill] sm:$0xff] }
0x1299   :  { %1866 = vmatprep.subr.bf16.mxu1 %v3905_v40  ;;  %1907 = vmatprep.subr.bf16.mxu0 %v3911_v38  ;;  %v4997_v40 = vld [vmem:[#allocation30_spill] sm:$0xff]  ;;  %v4998_v38 = vld [vmem:[#allocation35_spill] sm:$0xff] }
0x129c   :  { %1867 = vmatpush1.bf16.msra.mxu1 %v3917_v61  ;;  %1908 = vmatpush1.bf16.msra.mxu0 %v3923_v41  ;;  %v4999_v61 = vld [vmem:[#allocation32_spill] sm:$0xff]  ;;  %v5000_v41 = vld [vmem:[#allocation9_spill] sm:$0xff] }
0x129d   :  { %1868 = vmatprep.subr.bf16.mxu1 %v3929_v46  ;;  %1909 = vmatprep.subr.bf16.mxu0 %v3935_v45  ;;  %v5001_v46 = vld [vmem:[#allocation16_spill] sm:$0xff]  ;;  %v5002_v45 = vld [vmem:[#allocation34_spill] sm:$0xff] }
0x12a0   :  { %1869 = vmatpush1.bf16.msra.mxu1 %v3941_v51  ;;  %1910 = vmatpush1.bf16.msra.mxu0 %v3947_v42  ;;  %v5003_v51 = vld [vmem:[#allocation36_spill] sm:$0xff]  ;;  %v5004_v42 = vld [vmem:[#allocation5_spill] sm:$0xff] }
0x12a1   :  { %1870 = vmatprep.subr.bf16.mxu1 %v3953_v49  ;;  %1911 = vmatprep.subr.bf16.mxu0 %v4983_v31  ;;  %v5005_v49 = vld [vmem:[#allocation10_spill] sm:$0xff]  ;;  %v2423_v31 = vld [vmem:[%s4708_s1 + $0xa0] sm:$0xff] }
0x12a4   :  { %1871 = vmatpush1.bf16.msra.mxu1 %v4984_v27  ;;  %1912 = vmatpush1.bf16.msra.mxu0 %v4985_v32  ;;  %v2425_v27 = vld [vmem:[%s4708_s1 + $0xb0] sm:$0xff]  ;;  %v2424_v32 = vld [vmem:[%s4708_s1 + $0xa8] sm:$0xff] }
0x12a5   :  { %1872 = vmatprep.subr.bf16.mxu1 %v4986_v34  ;;  %1913 = vmatprep.subr.bf16.mxu0 %v4987_v28  ;;  %v2426_v34 = vld [vmem:[%s4708_s1 + $0xb8] sm:$0xff] }
0x12a8   :  { %1873 = vmatpush1.bf16.msra.mxu1 %v4988_v35  ;;  %1914 = vmatpush1.bf16.msra.mxu0 %v4989_v29 }
0x12a9   :  { %2608 = vmatprep.subr.bf16.mxu1 %v4990_v30  ;;  %2033 = vmatprep.subr.bf16.mxu0 %v4991_v53 }
0x12ab   :  { %1891 = vmatmul.mubr.bf16.vlgmr.msra.gmra.mrb[48].mxu1 %v4387_v14  ;;  %1932 = vmatmul.mubr.bf16.vlgmr.msra.gmra.mrb[52].mxu0 %v4387_v14  ;;  %v5007_v14 = vld [vmem:[#allocation18_spill] sm:$0xff] }
0x12ac   :  { %2609 = vmatpush3.bf16.msra.mxu1 %v4992_v47  ;;  %2624 = vmatprep.mubr.msk.bf16.mxu1 %vm3008_vm0, %v4990_v30 }
0x12ad   :  { %2610 = vmatprep.subr.bf16.mxu1 %v4990_v30  ;;  %2034 = vmatpush1.bf16.msra.mxu0 %v4993_v43 }
0x12ae   :  { %2035 = vmatprep.subr.bf16.mxu0 %v4994_v56  ;;  %2065 = vmatprep.mubr.bf16.mxu0 %v4879_v2 }
0x12b0   :  { %2611 = vmatpush3.bf16.msra.mxu1 %v4995_v39 }
0x12b1   :  { %2612 = vmatprep.subr.bf16.mxu1 %v4990_v30  ;;  %2036 = vmatpush1.bf16.msra.mxu0 %v4996_v37 }
0x12b2   :  { %2037 = vmatprep.subr.bf16.mxu0 %v4997_v40 }
0x12b4   :  { %2613 = vmatpush3.bf16.msra.mxu1 %v4998_v38 }
0x12b5   :  { %2614 = vmatprep.subr.bf16.mxu1 %v4990_v30  ;;  %2038 = vmatpush1.bf16.msra.mxu0 %v4999_v61 }
0x12b6   :  { %2039 = vmatprep.subr.bf16.mxu0 %v5000_v41 }
0x12b8   :  { %2615 = vmatpush3.bf16.msra.mxu1 %v5001_v46 }
0x12b9   :  { %2616 = vmatprep.subr.bf16.mxu1 %v4990_v30  ;;  %2040 = vmatpush1.bf16.msra.mxu0 %v5002_v45 }
0x12ba   :  { %2041 = vmatprep.subr.bf16.mxu0 %v5003_v51 }
0x12bc   :  { %2617 = vmatpush3.bf16.msra.mxu1 %v5004_v42 }
0x12bd   :  { %2618 = vmatprep.subr.bf16.mxu1 %v4990_v30  ;;  %2042 = vmatpush1.bf16.msra.mxu0 %v5005_v49 }
0x12be   :  { %2043 = vmatprep.subr.bf16.mxu0 %v5006_v57 }
0x12c0   :  { %2619 = vmatpush3.bf16.msra.mxu1 %v5007_v14 }
0x12c1   :  { %2620 = vmatprep.subr.bf16.mxu1 %v4990_v30  ;;  %2044 = vmatpush1.bf16.msra.mxu0 %v5008_v58 }
0x12c2   :  { %2045 = vmatprep.subr.bf16.mxu0 %v5009_v13 }
0x12c4   :  { %2621 = vmatpush3.bf16.msra.mxu1 %v5010_v9 }
0x12c5   :  { %2622 = vmatprep.subr.bf16.mxu1 %v4990_v30  ;;  %2046 = vmatpush1.bf16.msra.mxu0 %v5011_v48 }
0x12c6   :  { %2047 = vmatprep.subr.bf16.mxu0 %v5012_v4 }
0x12c8   :  { %2623 = vmatpush3.bf16.msra.mxu1 %v5013_v16 }
0x12c9   :  { %2074 = vmatprep.subr.bf16.mxu1 %v5014_v22  ;;  %2048 = vmatpush1.bf16.msra.mxu0 %v5015_v10 }
0x12ca   :  { %2127 = vmatprep.subr.bf16.mxu0 %v2954_v50 }
0x135e   :  { %v1798_v5 = vpop.f32.mrb[44].mxu1  ;;  %v1839_v25 = vpop.f32.mrb[48].mxu0 }
0x135f   :  { %v1800_v7 = vpop.f32.mrb[45].mxu1  ;;  %v1841_v54 = vpop.f32.mrb[49].mxu0  ;;  %v1854_v28 = vsel %vm4498_vm10, %v2423_v31, %v1798_v5  ;;  %v1856_v29 = vsel %vm4498_vm10, %v2425_v27, %v1839_v25 }
0x1360   :  { %v1802_v36 = vpop.f32.mrb[46].mxu1  ;;  %v1843_v6 = vpop.f32.mrb[50].mxu0  ;;  %v1855_v56 = vsel %vm4498_vm10, %v2424_v32, %v1800_v7  ;;  %v1857_v37 = vsel %vm4498_vm10, %v2426_v34, %v1841_v54  ;;  %v2956_v32 = vld [vmem:[%s4712_s5] ss:$16 sps:$4 sm:$0xff]   ;;  %v2957_v34 = vld [vmem:[%s4712_s5 + $0x8] ss:$16 sps:$4 sm:$0xff]  }
0x1361   :  { %v1803_v3 = vpop.f32.mrb[47].mxu1  ;;  %v1844_v60 = vpop.f32.mrb[51].mxu0 }
0x137e   :  { %v1892_v35 = vpop.f32.mrb[48].mxu1  ;;  %v1933_v53 = vpop.f32.mrb[52].mxu0 }
0x137f   :  { %v1940_v47 = vadd.f32 %v1892_v35, %v1854_v28  ;;  %v1942_v43 = vadd.f32 %v1933_v53, %v1856_v29  ;;  %v1894_v39 = vpop.f32.mrb[49].mxu1  ;;  %v1935_v40 = vpop.f32.mrb[53].mxu0  ;;  %v2958_v28 = vld [vmem:[%s4712_s5 + $0x24] ss:$16 sps:$4 sm:$0xff]   ;;  %v2961_v35 = vld [vmem:[%s4712_s5 + $0x28] ss:$16 sps:$4 sm:$0xff]  }
0x1380   :  { %v1941_v38 = vadd.f32 %v1894_v39, %v1855_v56  ;;  %v1943_v61 = vadd.f32 %v1935_v40, %v1857_v37  ;;  %v1896_v41 = vpop.f32.mrb[50].mxu1  ;;  %v1937_v46 = vpop.f32.mrb[54].mxu0  ;;  %v2962_v29 = vld [vmem:[%s4712_s5 + $0x44] ss:$16 sps:$4 sm:$0xff]   ;;  %v2963_v53 = vld [vmem:[%s4712_s5 + $0x4c] ss:$16 sps:$4 sm:$0xff]  }
0x1381   :  { %v2427_v45 = vmul.f32 -1.442695, %v1940_v47  ;;  %v1897_v51 = vpop.f32.mrb[51].mxu1  ;;  %v1938_v42 = vpop.f32.mrb[55].mxu0  ;;  %v2429_v57 = vmul.f32 -1.442695, %v1942_v43 }
0x1382   :  { %v2428_v49 = vmul.f32 -1.442695, %v1941_v38  ;;  %v2965_v47 = vld [vmem:[%s4712_s5 + $0x48] ss:$16 sps:$4 sm:$0xff]   ;;  %v2966_v43 = vld [vmem:[%s4712_s5 + $0x64] ss:$16 sps:$4 sm:$0xff]  }
0x1383   :  { %2849 = vpow2.f32 %v2427_v45  ;;  %v2967_v56 = vld [vmem:[%s4712_s5 + $0x6c] ss:$16 sps:$4 sm:$0xff]   ;;  %v2968_v39 = vld [vmem:[%s4712_s5 + $0x60] ss:$16 sps:$4 sm:$0xff]   ;;  %v2969_v37 = vld [vmem:[%s4712_s5 + $0x68] ss:$16 sps:$4 sm:$0xff]  }
0x1384   :  { %2851 = vpow2.f32 %v2428_v49  ;;  %v2970_v40 = vld [vmem:[%s4712_s5 + $0x84] ss:$16 sps:$4 sm:$0xff]   ;;  %v2971_v38 = vld [vmem:[%s4712_s5 + $0x8c] ss:$16 sps:$4 sm:$0xff]   ;;  %v2973_v41 = vld [vmem:[%s4712_s5 + $0x88] ss:$16 sps:$4 sm:$0xff]  }
0x1385   :  { %2853 = vtanh.f32 %v1943_v61  ;;  %v2972_v61 = vld [vmem:[%s4712_s5 + $0x80] ss:$16 sps:$4 sm:$0xff]   ;;  %v2974_v46 = vld [vmem:[%s4712_s5 + $0xa4] ss:$16 sps:$4 sm:$0xff]   ;;  %v2975_v45 = vld [vmem:[%s4712_s5 + $0xac] ss:$16 sps:$4 sm:$0xff]  }
0x1386   :  { %2855 = vpow2.f32 %v2429_v57  ;;  %v2976_v51 = vld [vmem:[%s4712_s5 + $0xa0] ss:$16 sps:$4 sm:$0xff]   ;;  %v2977_v42 = vld [vmem:[%s4712_s5 + $0xa8] ss:$16 sps:$4 sm:$0xff]   ;;  %v2978_v49 = vld [vmem:[%s4712_s5 + $0xc4] ss:$16 sps:$4 sm:$0xff]  }
0x1387   :  { %v2979_v57 = vld [vmem:[%s4712_s5 + $0xcc] ss:$16 sps:$4 sm:$0xff]  }
0x138d   :  { %v2850_v58 = vpop.eup %2849 }
0x138e   :  { %v1947_v13 = vadd.f32 1.0, %v2850_v58  ;;  %v2852_v48 = vpop.eup %2851  ;;  %v2980_v58 = vld [vmem:[%s4712_s5 + $0xc0] ss:$16 sps:$4 sm:$0xff]  }
0x138f   :  { %v1953_v4 = vadd.f32 1.0, %v2852_v48  ;;  %v2854_v22 = vpop.eup %2853  ;;  %v2982_v48 = vld [vmem:[%s4712_s5 + $0xe4] ss:$16 sps:$4 sm:$0xff]  }
0x1390   :  { %2857 = vrcp.f32 %v1947_v13  ;;  %v2856_v10 = vpop.eup %2855  ;;  %v2981_v13 = vld [vmem:[%s4712_s5 + $0xc8] ss:$16 sps:$4 sm:$0xff]  }
0x1391   :  { %2859 = vrcp.f32 %v1953_v4  ;;  %v1959_v7 = vadd.f32 1.0, %v2856_v10  ;;  %v2983_v4 = vld [vmem:[%s4712_s5 + $0xec] ss:$16 sps:$4 sm:$0xff]   ;;  %v2985_v10 = vld [vmem:[%s4712_s5 + $0xe8] ss:$16 sps:$4 sm:$0xff]  }
0x1393   :  { %2861 = vrcp.f32 %v1959_v7  ;;  %v2989_v7 = vld [vmem:[%s4713_s6 + $0x18] sm:$0xff]  }
0x139a   :  { %v2858_v50 = vpop.eup %2857 }
0x139b   :  { %v1964_v5 = vmul.f32 %v2858_v50, %v2854_v22  ;;  %v2860_v25 = vpop.eup %2859  ;;  %v2984_v22 = vld [vmem:[%s4712_s5 + $0xe0] ss:$16 sps:$4 sm:$0xff]  }
0x139c   :  { %v1963_v54 = vmul.f32 %v2860_v25, %v4384_v63  ;;  %v2986_v50 = vld [vmem:[%s4713_s6] sm:$0xff]   ;;  %v2988_v25 = vld [vmem:[%s4713_s6 + $0x10] sm:$0xff]  }
0x139d   :  { %v2862_v6 = vpop.eup %2861 }
0x139e   :  { %v4523_v36 = vadd.f32 %v1964_v5, %v1963_v54  ;;  %v2987_v5 = vld [vmem:[%s4713_s6 + $0x8] sm:$0xff]   ;;  %v2990_v54 = vld [vmem:[%s4713_s6 + $0x20] sm:$0xff]   ;;  %s2436_s6 = sld [smem:[#allocation2 + $0x6]] }
0x13a0   :  { %2863 = vtanh.f32 %v4523_v36 }
0x13aa   :  { %v2864_v3 = vpop.eup %2863 }
0x13ab   :  { %v1967_v60 = vmul.f32 %v2864_v3, %v2862_v6 }
0x13ad   :  { %v4526_v0 = vpack.c.bf16 %v1967_v60, %v1967_v60 }
0x13af   :  { %2625 = vmatmul.mubr.bf16.vlgmr.msra.gmra.mrb[52].mxu1 %v4526_v0 }
0x13b0   :  { %2075 = vmatpush1.bf16.msra.mxu1 %v4111_v26  ;;  %2106 = vmatprep.mubr.bf16.mxu1 %v4879_v2  ;;  %v2955_v26 = vld [vmem:[%s4712_s5 + $0xc] ss:$16 sps:$4 sm:$0xff]  }
0x13b1   :  { %2076 = vmatprep.subr.bf16.mxu1 %v4118_v44 }
0x13b4   :  { %2077 = vmatpush1.bf16.msra.mxu1 %v4124_v17 }
0x13b5   :  { %2078 = vmatprep.subr.bf16.mxu1 %v4130_v18 }
0x13b8   :  { %2079 = vmatpush1.bf16.msra.mxu1 %v4136_v20 }
0x13b9   :  { %2080 = vmatprep.subr.bf16.mxu1 %v4142_v21 }
0x13bc   :  { %2081 = vmatpush1.bf16.msra.mxu1 %v4148_v52 }
0x13bd   :  { %2082 = vmatprep.subr.bf16.mxu1 %v4154_v11 }
0x13c0   :  { %2083 = vmatpush1.bf16.msra.mxu1 %v4160_v23 }
0x13c1   :  { %2084 = vmatprep.subr.bf16.mxu1 %v4166_v12 }
0x13c4   :  { %2085 = vmatpush1.bf16.msra.mxu1 %v4172_v24 }
0x13c5   :  { %2086 = vmatprep.subr.bf16.mxu1 %v4178_v19 }
0x13c8   :  { %2087 = vmatpush1.bf16.msra.mxu1 %v4980_v8 }
0x13c9   :  { %2088 = vmatprep.subr.bf16.mxu1 %v4407_v15 }
0x13cc   :  { %2089 = vmatpush1.bf16.msra.mxu1 %v4413_v62 }
0x13cd   :  { %2168 = vmatprep.subr.bf16.mxu1 %v2955_v26 }
0x1482   :  { %v2003_v44 = vpop.f32.mrb[52].mxu1 }
0x1483   :  { %v2004_v17 = vadd.f32 %v4982_v1, %v2003_v44  ;;  %v2626_v18 = vpop.f32.mrb[53].mxu1 }
0x1484   :  { %v2006_v20 = vpop.f32.mrb[54].mxu1 }
0x1485   :  { %2430 = vst [vmem:[%s4715_s8 + $0x28] sm:$0xff] %v2004_v17  ;;  %2011 = vmax.xlane.f32.xlu1 %v2004_v17  ;;  %v2627_v21 = vpop.f32.mrb[55].mxu1  ;;  %v2116_v20 = vstv %s2436_s6 }
0x1486   :  { %v2440_v21 = vld [vmem:[%s4708_s1 + $0xd8] sm:$0xff] }
0x1512   :  { %v2012_v52 = vpop.xlane.xlu1 %2011 }
0x1513   :  { %vm2013_vm11 = vcmp.eq.f32.partialorder %v2004_v17, %v2012_v52 }
0x1514   :  { %v2014_v11 = vsel %vm2013_vm11, %v3348_v33, 128 }
0x1515   :  { %v2016_v23 = vshra.s32 %v2014_v11, 16  ;;  %v2015_v24 = vand.u32 65535, %v2014_v11 }
0x1517   :  { %v2018_v12 = vcvt.s32.f32 %v2016_v23  ;;  %v2017_v63 = vcvt.s32.f32 %v2015_v24 }
0x1519   :  { %2019 = vmin.xlane.f32.xlu0 %v2018_v12 }
0x15a6   :  { %v2020_v19 = vpop.xlane.xlu0 %2019 }
0x15a7   :  { %vm2021_vm12 = vcmp.eq.f32.partialorder %v2018_v12, %v2020_v19  ;;  %v2026_v15 = vcvt.f32.s32 %v2020_v19 }
0x15a8   :  { %v2022_v8 = vsel %vm2021_vm12, %v2017_v63, inf }
0x15a9   :  { %2023 = vmin.xlane.f32.xlu1 %v2022_v8  ;;  %v2027_v55 = vshll.u32 %v2026_v15, 16 }
0x1636   :  { %v2024_v62 = vpop.xlane.xlu1 %2023 }
0x1637   :  { %v2025_v31 = vcvt.f32.s32 %v2024_v62 }
0x1639   :  { %v2028_v27 = vadd.s32 %v2027_v55, %v2025_v31 }
0x163b   :  { %vm2029_vm13 = vcmp.eq.s32.totalorder %v3348_v33, %v2028_v27  ;;  %v2959_v33 = vld [vmem:[%s4712_s5 + $0x2c] ss:$16 sps:$4 sm:$0xff]  }
0x163c   :  { %vm2432_vm14 = vmpackc.low %vm2029_vm13, %vm2029_vm13 }
0x163d   :  { %2433 = vmatmul.mubr.msk.bf16.vlgmr.msra.gmra.mrb[56].mxu0 %vm2432_vm14, %v4902_v59  ;;  %2435 = vmatmul.mubr.msk.bf16.vlgmr.msra.gmra.mrb[56].mxu1 %vm2432_vm14, %v4902_v59  ;;  %v2960_v59 = vld [vmem:[%s4712_s5 + $0x20] ss:$16 sps:$4 sm:$0xff]  }
0x163e   :  { %2128 = vmatpush1.bf16.msra.mxu0 %v2956_v32  ;;  %2169 = vmatpush1.bf16.msra.mxu1 %v2957_v34 }
0x163f   :  { %2129 = vmatprep.subr.bf16.mxu0 %v2958_v28  ;;  %2170 = vmatprep.subr.bf16.mxu1 %v2959_v33 }
0x1640   :  { %2159 = vmatprep.mubr.bf16.mxu0 %v4879_v2  ;;  %2200 = vmatprep.mubr.bf16.mxu1 %v4879_v2  ;;  %v2964_v2 = vld [vmem:[%s4712_s5 + $0x40] ss:$16 sps:$4 sm:$0xff]  }
0x1642   :  { %2130 = vmatpush1.bf16.msra.mxu0 %v2960_v59  ;;  %2171 = vmatpush1.bf16.msra.mxu1 %v2961_v35 }
0x1643   :  { %2131 = vmatprep.subr.bf16.mxu0 %v2962_v29  ;;  %2172 = vmatprep.subr.bf16.mxu1 %v2963_v53 }
0x1646   :  { %2132 = vmatpush1.bf16.msra.mxu0 %v2964_v2  ;;  %2173 = vmatpush1.bf16.msra.mxu1 %v2965_v47 }
0x1647   :  { %2133 = vmatprep.subr.bf16.mxu0 %v2966_v43  ;;  %2174 = vmatprep.subr.bf16.mxu1 %v2967_v56 }
0x164a   :  { %2134 = vmatpush1.bf16.msra.mxu0 %v2968_v39  ;;  %2175 = vmatpush1.bf16.msra.mxu1 %v2969_v37 }
0x164b   :  { %2135 = vmatprep.subr.bf16.mxu0 %v2970_v40  ;;  %2176 = vmatprep.subr.bf16.mxu1 %v2971_v38 }
0x164e   :  { %2136 = vmatpush1.bf16.msra.mxu0 %v2972_v61  ;;  %2177 = vmatpush1.bf16.msra.mxu1 %v2973_v41 }
0x164f   :  { %2137 = vmatprep.subr.bf16.mxu0 %v2974_v46  ;;  %2178 = vmatprep.subr.bf16.mxu1 %v2975_v45 }
0x1652   :  { %2138 = vmatpush1.bf16.msra.mxu0 %v2976_v51  ;;  %2179 = vmatpush1.bf16.msra.mxu1 %v2977_v42 }
0x1653   :  { %2139 = vmatprep.subr.bf16.mxu0 %v2978_v49  ;;  %2180 = vmatprep.subr.bf16.mxu1 %v2979_v57 }
0x1656   :  { %2140 = vmatpush1.bf16.msra.mxu0 %v2980_v58  ;;  %2181 = vmatpush1.bf16.msra.mxu1 %v2981_v13 }
0x1657   :  { %2141 = vmatprep.subr.bf16.mxu0 %v2982_v48  ;;  %2182 = vmatprep.subr.bf16.mxu1 %v2983_v4 }
0x165a   :  { %2142 = vmatpush1.bf16.msra.mxu0 %v2984_v22  ;;  %2183 = vmatpush1.bf16.msra.mxu1 %v2985_v10 }
0x165b   :  { %2628 = vmatprep.subr.bf16.mxu0 %v4990_v30 }
0x165d   :  { %2160 = vmatmul.mubr.bf16.vlgmr.msra.gmra.mrb[60].mxu0 %v4526_v0  ;;  %2201 = vmatmul.mubr.bf16.vlgmr.msra.gmra.mrb[60].mxu1 %v4526_v0 }
0x165e   :  { %2629 = vmatpush3.bf16.msra.mxu0 %v2986_v50  ;;  %2644 = vmatprep.mubr.msk.bf16.mxu0 %vm3008_vm0, %v4990_v30  ;;  %vm4678_vm0 = vcmp.ne.s32.totalorder %v2116_v20, 0 }
0x165f   :  { %2630 = vmatprep.subr.bf16.mxu0 %v4990_v30 }
0x1662   :  { %2631 = vmatpush3.bf16.msra.mxu0 %v2987_v5 }
0x1663   :  { %2632 = vmatprep.subr.bf16.mxu0 %v4990_v30 }
0x1666   :  { %2633 = vmatpush3.bf16.msra.mxu0 %v2988_v25 }
0x1667   :  { %2634 = vmatprep.subr.bf16.mxu0 %v4990_v30 }
0x166a   :  { %2635 = vmatpush3.bf16.msra.mxu0 %v2989_v7 }
0x166b   :  { %2636 = vmatprep.subr.bf16.mxu0 %v4990_v30 }
0x166e   :  { %2637 = vmatpush3.bf16.msra.mxu0 %v2990_v54 }
0x166f   :  { %2638 = vmatprep.subr.bf16.mxu0 %v4990_v30 }
0x1672   :  { %2639 = vmatpush3.bf16.msra.mxu0 %v5007_v14 }
0x1673   :  { %2640 = vmatprep.subr.bf16.mxu0 %v4990_v30 }
0x1676   :  { %2641 = vmatpush3.bf16.msra.mxu0 %v5010_v9  ;;  %v2439_v9 = vld [vmem:[%s4708_s1 + $0xd0] sm:$0xff] }
0x1677   :  { %2642 = vmatprep.subr.bf16.mxu0 %v4990_v30  ;;  %v2437_v30 = vld [vmem:[%s4708_s1 + $0xc0] sm:$0xff] }
0x167a   :  { %2643 = vmatpush3.bf16.msra.mxu0 %v5013_v16  ;;  %v2438_v16 = vld [vmem:[%s4708_s1 + $0xc8] sm:$0xff] }
0x1710   :  { %v2067_v6 = vpop.f32.mrb[56].mxu0  ;;  %v2108_v3 = vpop.f32.mrb[56].mxu1 }
0x1711   :  { %v2069_v60 = vpop.f32.mrb[57].mxu0  ;;  %v2110_v0 = vpop.f32.mrb[57].mxu1  ;;  %v2123_v52 = vsel %vm4678_vm0, %v2437_v30, %v2067_v6  ;;  %v2125_v23 = vsel %vm4678_vm0, %v2439_v9, %v2108_v3 }
0x1712   :  { %v2071_v26 = vpop.f32.mrb[58].mxu0  ;;  %v2112_v44 = vpop.f32.mrb[58].mxu1  ;;  %v2124_v63 = vsel %vm4678_vm0, %v2438_v16, %v2069_v60  ;;  %v2126_v15 = vsel %vm4678_vm0, %v2440_v21, %v2110_v0 }
0x1713   :  { %v2072_v17 = vpop.f32.mrb[59].mxu0  ;;  %v2113_v18 = vpop.f32.mrb[59].mxu1 }
0x1730   :  { %v2161_v11 = vpop.f32.mrb[60].mxu0  ;;  %v2202_v12 = vpop.f32.mrb[60].mxu1 }
0x1731   :  { %v2209_v24 = vadd.f32 %v2161_v11, %v2123_v52  ;;  %v2211_v19 = vadd.f32 %v2202_v12, %v2125_v23  ;;  %v2163_v8 = vpop.f32.mrb[61].mxu0  ;;  %v2204_v62 = vpop.f32.mrb[61].mxu1 }
0x1732   :  { %v2210_v55 = vadd.f32 %v2163_v8, %v2124_v63  ;;  %v2212_v31 = vadd.f32 %v2204_v62, %v2126_v15  ;;  %v2165_v27 = vpop.f32.mrb[62].mxu0  ;;  %v2206_v32 = vpop.f32.mrb[62].mxu1 }
0x1733   :  { %v2441_v34 = vmul.f32 -1.442695, %v2209_v24  ;;  %v2166_v28 = vpop.f32.mrb[63].mxu0  ;;  %v2207_v33 = vpop.f32.mrb[63].mxu1  ;;  %v2443_v35 = vmul.f32 -1.442695, %v2211_v19 }
0x1734   :  { %v2442_v59 = vmul.f32 -1.442695, %v2210_v55 }
0x1735   :  { %2865 = vpow2.f32 %v2441_v34 }
0x1736   :  { %2867 = vpow2.f32 %v2442_v59 }
0x1737   :  { %2869 = vtanh.f32 %v2212_v31 }
0x1738   :  { %2871 = vpow2.f32 %v2443_v35 }
0x173f   :  { %v2866_v29 = vpop.eup %2865 }
0x1740   :  { %v2216_v53 = vadd.f32 1.0, %v2866_v29  ;;  %v2868_v2 = vpop.eup %2867 }
0x1741   :  { %v2222_v47 = vadd.f32 1.0, %v2868_v2  ;;  %v2870_v43 = vpop.eup %2869 }
0x1742   :  { %2873 = vrcp.f32 %v2216_v53  ;;  %v2872_v56 = vpop.eup %2871 }
0x1743   :  { %2875 = vrcp.f32 %v2222_v47  ;;  %v2228_v38 = vadd.f32 1.0, %v2872_v56 }
0x1745   :  { %2877 = vrcp.f32 %v2228_v38 }
0x174c   :  { %v2874_v39 = vpop.eup %2873 }
0x174d   :  { %v2233_v37 = vmul.f32 %v2874_v39, %v2870_v43  ;;  %v2876_v40 = vpop.eup %2875 }
0x174e   :  { %v2232_v61 = vmul.f32 %v2876_v40, %v4523_v36 }
0x174f   :  { %v2878_v46 = vpop.eup %2877 }
0x1750   :  { %v2234_v41 = vadd.f32 %v2233_v37, %v2232_v61 }
0x1752   :  { %2879 = vtanh.f32 %v2234_v41 }
0x175c   :  { %v2880_v45 = vpop.eup %2879 }
0x175d   :  { %v2236_v51 = vmul.f32 %v2880_v45, %v2878_v46 }
0x175f   :  { %v2237_v42 = vpack.c.bf16 %v2236_v51, %v2236_v51 }
0x1761   :  { %2645 = vmatmul.mubr.bf16.vlgmr.msra.gmra.mrb[64].mxu0 %v2237_v42 }
0x1834   :  { %v2272_v49 = vpop.f32.mrb[64].mxu0 }
0x1835   :  { %v2273_v57 = vadd.f32 %v4982_v1, %v2272_v49  ;;  %v2646_v58 = vpop.f32.mrb[65].mxu0 }
0x1836   :  { %v2275_v13 = vpop.f32.mrb[66].mxu0 }
0x1837   :  { %2444 = vst [vmem:[%s4715_s8 + $0x30] sm:$0xff] %v2273_v57  ;;  %v2647_v48 = vpop.f32.mrb[67].mxu0 }
0x1838   :  { %2284 = vsyncpa [#allocation3], 1 }

</bundles_post_ra>
